<compile_context>
chip_gen: v5e
topology: v5e:2x2
jax: 0.10.0
libtpu: 0.0.40
codegen_flags: <defaults>
</compile_context>

<pallas_src>
import functools

import jax
import jax.numpy as jnp
import numpy as np
from jax import lax
from jax.experimental import pallas as pl
from jax.experimental.pallas import tpu as pltpu


def _round_up(n, m):
    return ((n + m - 1) // m) * m


def _make_kernel(H, W, cdt):
    def kernel(x_ref, w1_ref, b1_ref, kdw_ref, b2_ref, w3_ref, b3_ref, wf_ref,
               o_ref, pad_ref):
        Cp = x_ref.shape[-1]

        # Zero only the 1-pixel halo of the padded scratch; the interior is
        # fully overwritten before every read (stages 2 and 3).
        zrow = jnp.zeros((1, W + 2, Cp), jnp.float32)
        zcol = jnp.zeros((H + 2, 1, Cp), jnp.float32)
        pad_ref[0:1, :, :] = zrow
        pad_ref[H + 1:H + 2, :, :] = zrow
        pad_ref[:, 0:1, :] = zcol
        pad_ref[:, W + 1:W + 2, :] = zcol

        # ---- stage 1: four branch 1x1 convs as ONE matmul; BN scale is folded
        #      into the weight columns, so only +bias and ReLU remain here.
        y1 = jnp.dot(x_ref[0], w1_ref[...], preferred_element_type=jnp.float32)
        y1 = jnp.maximum(y1 + b1_ref[...], 0.0)                      # (HW, Cp)

        # ---- stage 2: fixed depthwise 3x3 edge filters (pad=1); BN scale is
        #      folded into the taps.  Only the 3 dw-shifted column windows are
        #      materialized; dh sub-slices of those values are free.
        pad_ref[1:H + 1, 1:W + 1, :] = y1.reshape(H, W, Cp)
        cols = [pad_ref[:, dw:dw + W, :] for dw in range(3)]          # 3x (H+2,W,Cp)
        z = jnp.zeros((H, W, Cp), jnp.float32)
        for dh in range(3):
            for dw in range(3):
                z = z + cols[dw][dh:dh + H] * kdw_ref[dh * 3 + dw, :]
        y2 = jnp.maximum(z + b2_ref[...], 0.0)                        # (H, W, Cp)

        # ---- stage 3: dense 3x3 conv as NINE accumulated (HW,Cp)x(Cp,Cp)
        #      matmuls (no im2col buffer / concat copy); BN scale folded into
        #      the weight's output columns.  Same 3-column hoist as stage 2.
        pad_ref[1:H + 1, 1:W + 1, :] = y2                             # halo still zero
        acc = jnp.zeros((H * W, Cp), jnp.float32)
        for dw in range(3):
            col = pad_ref[:, dw:dw + W, :].astype(cdt)                # one shift+cast per dw
            for dh in range(3):
                tap = col[dh:dh + H].reshape(H * W, Cp)
                acc = acc + jnp.dot(tap, w3_ref[dh * 3 + dw],
                                    preferred_element_type=jnp.float32)
        y3 = jnp.maximum(acc + b3_ref[...], 0.0)                      # (HW, Cp)

        # ---- stage 4: final 1x1 conv + residual; residual is re-read from the
        #      resident input tile at the point of use (short live range).
        o_ref[0] = (jnp.dot(y3.astype(cdt), wf_ref[...],
                            preferred_element_type=jnp.float32)
                    + x_ref[0].astype(jnp.float32))

    return kernel


@functools.partial(jax.jit, static_argnames=("use_bf16",))
def light_edge_block(x, w1, s1, b1, kdw, s2, b2, w3, s3, b3, wf, *, use_bf16=False):
    """x: (B,H,W,C) f32 NHWC.  w1/wf: (C,C) (in,out).  kdw: (3,3,C) depthwise taps.
    w3: (3,3,C,C) HWIO.  s*/b*: (C,) folded (inference) BatchNorm scale/bias.

    use_bf16=True streams the activation tile in bf16 and feeds bf16 operands to
    all four matmuls (f32 accumulation).  Beneficial on v5e, v6e and v7x alike
    (bf16-native MXUs); BN bias / ReLU / depthwise stay f32 on the VPU.
    """
    B, H, W, C = x.shape
    Cp = _round_up(C, 128)                       # lane-dense channel padding
    cdt = jnp.bfloat16 if use_bf16 else jnp.float32

    # --- fold the three BatchNorm scales into the weights (kernel keeps +bias) ---
    w1s = w1 * s1[None, :]                              # scale 1x1 output columns
    kdws = (kdw * s2[None, None, :]).reshape(9, C)      # scale depthwise taps
    w3s = w3 * s3[None, None, None, :]                  # scale 3x3 output columns

    # --- zero-padded weights / params so padded lanes stay exactly 0 ---
    w1p = jnp.zeros((Cp, Cp), jnp.float32).at[:C, :C].set(w1s).astype(cdt)
    wfp = jnp.zeros((Cp, Cp), jnp.float32).at[:C, :C].set(wf).astype(cdt)
    w3p = (jnp.zeros((3, 3, Cp, Cp), jnp.float32).at[:, :, :C, :C].set(w3s)
           .reshape(9, Cp, Cp).astype(cdt))             # [tap, cin, cout]
    kdwp = jnp.zeros((9, Cp), jnp.float32).at[:, :C].set(kdws)

    def bnp(v):
        return jnp.zeros((1, Cp), jnp.float32).at[0, :C].set(v)

    b1p, b2p, b3p = bnp(b1), bnp(b2), bnp(b3)

    # --- activations: NHWC -> (B, H*W, Cp); cast in the wrapper so the HBM->VMEM
    #     DMA (and the double-buffered input tile) is already bf16 when enabled.
    # TODO(synk): in a full model keep activations in this padded layout across
    #             blocks (pad at entry, slice at exit) to avoid per-block
    #             pad/unpad HBM round trips.
    x2 = (jnp.zeros((B, H * W, Cp), jnp.float32)
          .at[:, :, :C].set(x.reshape(B, H * W, C)).astype(cdt))

    def const_spec(shape):
        n = len(shape)
        return pl.BlockSpec(shape, lambda b, _n=n: (0,) * _n)

    out = pl.pallas_call(
        _make_kernel(H, W, cdt),
        out_shape=jax.ShapeDtypeStruct((B, H * W, Cp), jnp.float32),
        grid=(B,),
        in_specs=[
            pl.BlockSpec((1, H * W, Cp), lambda b: (b, 0, 0)),      # x
            const_spec((Cp, Cp)),                                   # fused branch 1x1 (BN-scaled)
            const_spec((1, Cp)),                                    # bn1 bias
            const_spec((9, Cp)),                                    # depthwise taps (BN-scaled)
            const_spec((1, Cp)),                                    # bn2 bias
            const_spec((9, Cp, Cp)),                                # 3x3 weight (BN-scaled)
            const_spec((1, Cp)),                                    # bn3 bias
            const_spec((Cp, Cp)),                                   # final 1x1
        ],
        out_specs=pl.BlockSpec((1, H * W, Cp), lambda b: (b, 0, 0)),
        scratch_shapes=[pltpu.VMEM((H + 2, W + 2, Cp), jnp.float32)],
        compiler_params=pltpu.CompilerParams(
            dimension_semantics=("parallel",)),     # batch over megacore / v7x TCs
    )(x2, w1p, b1p, kdwp, b2p, w3p, b3p, wfp)

    return out[:, :, :C].reshape(B, H, W, C)


def fold_bn(gamma, beta, mean, var, eps=1e-5):
    scale = gamma / jnp.sqrt(var + eps)
    bias = beta - mean * scale
    return scale, bias


def ref_forward(x, w1, s1, b1, kdw, s2, b2, w3, s3, b3, wf):
    """Independent pure-JAX reference using lax.conv_general_dilated (NHWC)."""
    B, H, W, C = x.shape
    dn1 = lax.conv_dimension_numbers(x.shape, (1, 1, C, C), ('NHWC', 'HWIO', 'NHWC'))
    y1 = lax.conv_general_dilated(x, w1[None, None], (1, 1), 'VALID',
                                  dimension_numbers=dn1)
    y1 = jnp.maximum(y1 * s1 + b1, 0.0)

    wd = kdw[:, :, None, :]                          # (3,3,1,C) HWIO, depthwise
    dn2 = lax.conv_dimension_numbers(y1.shape, wd.shape, ('NHWC', 'HWIO', 'NHWC'))
    z = lax.conv_general_dilated(y1, wd, (1, 1), 'SAME',
                                 dimension_numbers=dn2, feature_group_count=C)
    y2 = jnp.maximum(z * s2 + b2, 0.0)

    dn3 = lax.conv_dimension_numbers(y2.shape, w3.shape, ('NHWC', 'HWIO', 'NHWC'))
    y3 = lax.conv_general_dilated(y2, w3, (1, 1), 'SAME', dimension_numbers=dn3)
    y3 = jnp.maximum(y3 * s3 + b3, 0.0)

    out = lax.conv_general_dilated(y3, wf[None, None], (1, 1), 'VALID',
                                   dimension_numbers=dn1)
    return out + x


if __name__ == "__main__":
    B, C, H, W = 2, 8, 16, 16          # in_channels=8 -> branch channels = 2
    Cq = C // 4

    key = jax.random.PRNGKey(0)
    ks = jax.random.split(key, 24)

    # branch 1x1 conv weights (PyTorch OIHW (Cq,C,1,1) per branch), concatenated
    w_branch = [jax.random.normal(ks[i], (Cq, C), jnp.float32) * 0.2 for i in range(4)]
    w1 = jnp.concatenate(w_branch, axis=0).T        # (in, out), out = [v|h|c|d]

    def bn_params(k0, k1, k2, k3, n):
        gamma = jax.random.uniform(k0, (n,), jnp.float32, 0.5, 1.5)
        beta = jax.random.normal(k1, (n,), jnp.float32) * 0.1
        mean = jax.random.normal(k2, (n,), jnp.float32) * 0.1
        var = jax.random.uniform(k3, (n,), jnp.float32, 0.5, 1.5)
        return fold_bn(gamma, beta, mean, var)

    s1, b1 = bn_params(ks[4], ks[5], ks[6], ks[7], C)      # four branch BNs, concatenated
    s2, b2 = bn_params(ks[8], ks[9], ks[10], ks[11], C)    # post-edge BNs, concatenated
    s3, b3 = bn_params(ks[12], ks[13], ks[14], ks[15], C)  # BN of conv3x3

    # fixed edge operators, expanded to per-channel depthwise taps (3,3,C)
    op_v = jnp.array([[-1, 0, 1], [-2, 0, 2], [-1, 0, 1]], jnp.float32)
    op_h = jnp.array([[-1, -2, -1], [0, 0, 0], [1, 2, 1]], jnp.float32)
    op_c = jnp.array([[0, -1, 0], [-1, 4, -1], [0, -1, 0]], jnp.float32)
    op_d = jnp.array([[-1, 0, 1], [0, 0, 0], [1, 0, -1]], jnp.float32)
    kdw = jnp.concatenate(
        [jnp.broadcast_to(op[:, :, None], (3, 3, Cq)) for op in (op_v, op_h, op_c, op_d)],
        axis=2)                                            # (3,3,C)

    # conv3x3 (C->C): PyTorch OIHW -> HWIO (3,3,in,out)
    w3 = jnp.transpose(jax.random.normal(ks[16], (C, C, 3, 3), jnp.float32) * 0.1,
                       (2, 3, 1, 0))

    # final 1x1 conv (C->C), (in, out)
    wf = (jax.random.normal(ks[17], (C, C), jnp.float32) * 0.2).T

    # input (NHWC)
    x = jax.random.normal(ks[18], (B, H, W, C), jnp.float32)

    args = (x, w1, s1, b1, kdw, s2, b2, w3, s3, b3, wf)

    out = jax.block_until_ready(light_edge_block(*args))
    ref = jax.block_until_ready(ref_forward(*args))
    np.testing.assert_allclose(np.asarray(out), np.asarray(ref), rtol=2e-3, atol=2e-3)

    # bf16 fast path (bf16 MXU operands + bf16 activation DMA; f32 accumulation).
    # Loose sanity bound: all four matmuls use bf16 operands and the residual add
    # uses the bf16-rounded input, so ~1e-2-level deviation from f32 is expected.
    out_bf16 = jax.block_until_ready(light_edge_block(*args, use_bf16=True))
    bf16_err = float(jnp.max(jnp.abs(out_bf16 - ref)))
    assert bf16_err < 0.25, f"bf16 fast path deviates too much: {bf16_err}"

    print("KERNEL_OK")
</pallas_src>

<mosaic_0001>
module attributes {stable_mosaic.version = 11 : i64} {
  func.func @kernel(%arg0: i32, %arg1: memref<1x256x128xf32, #tpu.memory_space<vmem>>, %arg2: memref<128x128xf32, #tpu.memory_space<vmem>>, %arg3: memref<1x128xf32, #tpu.memory_space<vmem>>, %arg4: memref<9x128xf32, #tpu.memory_space<vmem>>, %arg5: memref<1x128xf32, #tpu.memory_space<vmem>>, %arg6: memref<9x128x128xf32, #tpu.memory_space<vmem>>, %arg7: memref<1x128xf32, #tpu.memory_space<vmem>>, %arg8: memref<128x128xf32, #tpu.memory_space<vmem>>, %arg9: memref<1x256x128xf32, #tpu.memory_space<vmem>>, %arg10: memref<18x18x128xf32, #tpu.memory_space<vmem>>) attributes {dimension_semantics = [#tpu.dimension_semantics<parallel>], iteration_bounds = array<i64: 2>, scalar_prefetch = 0 : i64, scratch_operands = 1 : i64, tpu.core_type = #tpu.core_type<tc>, window_params = [{transform_indices = @transform_0, window_bounds = array<i64: 1, 256, 128>}, {pipeline_mode = #tpu.pipeline_mode<synchronous>, transform_indices = @transform_1, window_bounds = array<i64: 128, 128>}, {pipeline_mode = #tpu.pipeline_mode<synchronous>, transform_indices = @transform_2, window_bounds = array<i64: 1, 128>}, {pipeline_mode = #tpu.pipeline_mode<synchronous>, transform_indices = @transform_3, window_bounds = array<i64: 9, 128>}, {pipeline_mode = #tpu.pipeline_mode<synchronous>, transform_indices = @transform_4, window_bounds = array<i64: 1, 128>}, {pipeline_mode = #tpu.pipeline_mode<synchronous>, transform_indices = @transform_5, window_bounds = array<i64: 9, 128, 128>}, {pipeline_mode = #tpu.pipeline_mode<synchronous>, transform_indices = @transform_6, window_bounds = array<i64: 1, 128>}, {pipeline_mode = #tpu.pipeline_mode<synchronous>, transform_indices = @transform_7, window_bounds = array<i64: 128, 128>}, {transform_indices = @transform_8, window_bounds = array<i64: 1, 256, 128>}]} {
    %cst = arith.constant 0.000000e+00 : f32
    %0 = vector.broadcast %cst : f32 to vector<1x18x128xf32>
    %cst_0 = arith.constant 0.000000e+00 : f32
    %1 = vector.broadcast %cst_0 : f32 to vector<18x1x128xf32>
    %c0 = arith.constant 0 : index
    %c0_1 = arith.constant 0 : index
    %c0_2 = arith.constant 0 : index
    %2 = vector.load %arg10[%c0, %c0_1, %c0_2] : memref<18x18x128xf32, #tpu.memory_space<vmem>>, vector<1x18x128xf32>
    tpu.vector_store %arg10[%c0, %c0_1, %c0_2], %0 {strides = array<i32>} : memref<18x18x128xf32, #tpu.memory_space<vmem>>, vector<1x18x128xf32>,
    %c17 = arith.constant 17 : index
    %c0_3 = arith.constant 0 : index
    %c0_4 = arith.constant 0 : index
    %3 = vector.load %arg10[%c17, %c0_3, %c0_4] : memref<18x18x128xf32, #tpu.memory_space<vmem>>, vector<1x18x128xf32>
    tpu.vector_store %arg10[%c17, %c0_3, %c0_4], %0 {strides = array<i32>} : memref<18x18x128xf32, #tpu.memory_space<vmem>>, vector<1x18x128xf32>,
    %c0_5 = arith.constant 0 : index
    %c0_6 = arith.constant 0 : index
    %c0_7 = arith.constant 0 : index
    %4 = vector.load %arg10[%c0_5, %c0_6, %c0_7] : memref<18x18x128xf32, #tpu.memory_space<vmem>>, vector<18x1x128xf32>
    tpu.vector_store %arg10[%c0_5, %c0_6, %c0_7], %1 {strides = array<i32>} : memref<18x18x128xf32, #tpu.memory_space<vmem>>, vector<18x1x128xf32>,
    %c0_8 = arith.constant 0 : index
    %c17_9 = arith.constant 17 : index
    %c0_10 = arith.constant 0 : index
    %5 = vector.load %arg10[%c0_8, %c17_9, %c0_10] : memref<18x18x128xf32, #tpu.memory_space<vmem>>, vector<18x1x128xf32>
    tpu.vector_store %arg10[%c0_8, %c17_9, %c0_10], %1 {strides = array<i32>} : memref<18x18x128xf32, #tpu.memory_space<vmem>>, vector<18x1x128xf32>,
    %c0_11 = arith.constant 0 : index
    %c0_12 = arith.constant 0 : index
    %c0_13 = arith.constant 0 : index
    %6 = vector.load %arg1[%c0_11, %c0_12, %c0_13] : memref<1x256x128xf32, #tpu.memory_space<vmem>>, vector<1x256x128xf32>
    %7 = vector.shape_cast %6 : vector<1x256x128xf32> to vector<256x128xf32>
    %c0_14 = arith.constant 0 : index
    %c0_15 = arith.constant 0 : index
    %8 = vector.load %arg2[%c0_14, %c0_15] : memref<128x128xf32, #tpu.memory_space<vmem>>, vector<128x128xf32>
    %cst_16 = arith.constant dense<0.000000e+00> : vector<256x128xf32>
    %9 = tpu.matmul %7, %8, %cst_16 {dimension_numbers = #tpu.dot_dimension_numbers<[1], [0], [0], [1], [0, 0, 1, 1], [], []>} : vector<256x128xf32>, vector<128x128xf32>, vector<256x128xf32> -> vector<256x128xf32>
    %c0_17 = arith.constant 0 : index
    %c0_18 = arith.constant 0 : index
    %10 = vector.load %arg3[%c0_17, %c0_18] : memref<1x128xf32, #tpu.memory_space<vmem>>, vector<1x128xf32>
    %11 = vector.broadcast %10 : vector<1x128xf32> to vector<256x128xf32>
    %12 = arith.addf %9, %11 : vector<256x128xf32>
    %cst_19 = arith.constant 0.000000e+00 : f32
    %13 = vector.broadcast %cst_19 : f32 to vector<256x128xf32>
    %14 = arith.maximumf %12, %13 : vector<256x128xf32>
    %15 = vector.shape_cast %14 : vector<256x128xf32> to vector<16x16x128xf32>
    %c1 = arith.constant 1 : index
    %c1_20 = arith.constant 1 : index
    %c0_21 = arith.constant 0 : index
    %16 = vector.load %arg10[%c1, %c1_20, %c0_21] : memref<18x18x128xf32, #tpu.memory_space<vmem>>, vector<16x16x128xf32>
    tpu.vector_store %arg10[%c1, %c1_20, %c0_21], %15 {strides = array<i32>} : memref<18x18x128xf32, #tpu.memory_space<vmem>>, vector<16x16x128xf32>,
    %c0_22 = arith.constant 0 : index
    %c0_23 = arith.constant 0 : index
    %c0_24 = arith.constant 0 : index
    %17 = vector.load %arg10[%c0_22, %c0_23, %c0_24] : memref<18x18x128xf32, #tpu.memory_space<vmem>>, vector<18x16x128xf32>
    %c0_25 = arith.constant 0 : index
    %c1_26 = arith.constant 1 : index
    %c0_27 = arith.constant 0 : index
    %18 = vector.load %arg10[%c0_25, %c1_26, %c0_27] : memref<18x18x128xf32, #tpu.memory_space<vmem>>, vector<18x16x128xf32>
    %c0_28 = arith.constant 0 : index
    %c2 = arith.constant 2 : index
    %c0_29 = arith.constant 0 : index
    %19 = vector.load %arg10[%c0_28, %c2, %c0_29] : memref<18x18x128xf32, #tpu.memory_space<vmem>>, vector<18x16x128xf32>
    %cst_30 = arith.constant 0.000000e+00 : f32
    %20 = vector.broadcast %cst_30 : f32 to vector<16x16x128xf32>
    %21 = vector.extract_strided_slice %17 {offsets = [0, 0, 0], sizes = [16, 16, 128], strides = [1, 1, 1]} : vector<18x16x128xf32> to vector<16x16x128xf32>
    %c0_31 = arith.constant 0 : index
    %c0_32 = arith.constant 0 : index
    %22 = vector.load %arg4[%c0_31, %c0_32] : memref<9x128xf32, #tpu.memory_space<vmem>>, vector<1x128xf32>
    %23 = vector.shape_cast %22 : vector<1x128xf32> to vector<128xf32>
    %24 = vector.shape_cast %23 : vector<128xf32> to vector<1x1x128xf32>
    %25 = vector.broadcast %24 : vector<1x1x128xf32> to vector<16x16x128xf32>
    %26 = arith.mulf %21, %25 : vector<16x16x128xf32>
    %27 = arith.addf %20, %26 : vector<16x16x128xf32>
    %28 = vector.extract_strided_slice %18 {offsets = [0, 0, 0], sizes = [16, 16, 128], strides = [1, 1, 1]} : vector<18x16x128xf32> to vector<16x16x128xf32>
    %c1_33 = arith.constant 1 : index
    %c0_34 = arith.constant 0 : index
    %29 = vector.load %arg4[%c1_33, %c0_34] : memref<9x128xf32, #tpu.memory_space<vmem>>, vector<1x128xf32>
    %30 = vector.shape_cast %29 : vector<1x128xf32> to vector<128xf32>
    %31 = vector.shape_cast %30 : vector<128xf32> to vector<1x1x128xf32>
    %32 = vector.broadcast %31 : vector<1x1x128xf32> to vector<16x16x128xf32>
    %33 = arith.mulf %28, %32 : vector<16x16x128xf32>
    %34 = arith.addf %27, %33 : vector<16x16x128xf32>
    %35 = vector.extract_strided_slice %19 {offsets = [0, 0, 0], sizes = [16, 16, 128], strides = [1, 1, 1]} : vector<18x16x128xf32> to vector<16x16x128xf32>
    %c2_35 = arith.constant 2 : index
    %c0_36 = arith.constant 0 : index
    %36 = vector.load %arg4[%c2_35, %c0_36] : memref<9x128xf32, #tpu.memory_space<vmem>>, vector<1x128xf32>
    %37 = vector.shape_cast %36 : vector<1x128xf32> to vector<128xf32>
    %38 = vector.shape_cast %37 : vector<128xf32> to vector<1x1x128xf32>
    %39 = vector.broadcast %38 : vector<1x1x128xf32> to vector<16x16x128xf32>
    %40 = arith.mulf %35, %39 : vector<16x16x128xf32>
    %41 = arith.addf %34, %40 : vector<16x16x128xf32>
    %42 = vector.extract_strided_slice %17 {offsets = [1, 0, 0], sizes = [16, 16, 128], strides = [1, 1, 1]} : vector<18x16x128xf32> to vector<16x16x128xf32>
    %c3 = arith.constant 3 : index
    %c0_37 = arith.constant 0 : index
    %43 = vector.load %arg4[%c3, %c0_37] : memref<9x128xf32, #tpu.memory_space<vmem>>, vector<1x128xf32>
    %44 = vector.shape_cast %43 : vector<1x128xf32> to vector<128xf32>
    %45 = vector.shape_cast %44 : vector<128xf32> to vector<1x1x128xf32>
    %46 = vector.broadcast %45 : vector<1x1x128xf32> to vector<16x16x128xf32>
    %47 = arith.mulf %42, %46 : vector<16x16x128xf32>
    %48 = arith.addf %41, %47 : vector<16x16x128xf32>
    %49 = vector.extract_strided_slice %18 {offsets = [1, 0, 0], sizes = [16, 16, 128], strides = [1, 1, 1]} : vector<18x16x128xf32> to vector<16x16x128xf32>
    %c4 = arith.constant 4 : index
    %c0_38 = arith.constant 0 : index
    %50 = vector.load %arg4[%c4, %c0_38] : memref<9x128xf32, #tpu.memory_space<vmem>>, vector<1x128xf32>
    %51 = vector.shape_cast %50 : vector<1x128xf32> to vector<128xf32>
    %52 = vector.shape_cast %51 : vector<128xf32> to vector<1x1x128xf32>
    %53 = vector.broadcast %52 : vector<1x1x128xf32> to vector<16x16x128xf32>
    %54 = arith.mulf %49, %53 : vector<16x16x128xf32>
    %55 = arith.addf %48, %54 : vector<16x16x128xf32>
    %56 = vector.extract_strided_slice %19 {offsets = [1, 0, 0], sizes = [16, 16, 128], strides = [1, 1, 1]} : vector<18x16x128xf32> to vector<16x16x128xf32>
    %c5 = arith.constant 5 : index
    %c0_39 = arith.constant 0 : index
    %57 = vector.load %arg4[%c5, %c0_39] : memref<9x128xf32, #tpu.memory_space<vmem>>, vector<1x128xf32>
    %58 = vector.shape_cast %57 : vector<1x128xf32> to vector<128xf32>
    %59 = vector.shape_cast %58 : vector<128xf32> to vector<1x1x128xf32>
    %60 = vector.broadcast %59 : vector<1x1x128xf32> to vector<16x16x128xf32>
    %61 = arith.mulf %56, %60 : vector<16x16x128xf32>
    %62 = arith.addf %55, %61 : vector<16x16x128xf32>
    %63 = vector.extract_strided_slice %17 {offsets = [2, 0, 0], sizes = [16, 16, 128], strides = [1, 1, 1]} : vector<18x16x128xf32> to vector<16x16x128xf32>
    %c6 = arith.constant 6 : index
    %c0_40 = arith.constant 0 : index
    %64 = vector.load %arg4[%c6, %c0_40] : memref<9x128xf32, #tpu.memory_space<vmem>>, vector<1x128xf32>
    %65 = vector.shape_cast %64 : vector<1x128xf32> to vector<128xf32>
    %66 = vector.shape_cast %65 : vector<128xf32> to vector<1x1x128xf32>
    %67 = vector.broadcast %66 : vector<1x1x128xf32> to vector<16x16x128xf32>
    %68 = arith.mulf %63, %67 : vector<16x16x128xf32>
    %69 = arith.addf %62, %68 : vector<16x16x128xf32>
    %70 = vector.extract_strided_slice %18 {offsets = [2, 0, 0], sizes = [16, 16, 128], strides = [1, 1, 1]} : vector<18x16x128xf32> to vector<16x16x128xf32>
    %c7 = arith.constant 7 : index
    %c0_41 = arith.constant 0 : index
    %71 = vector.load %arg4[%c7, %c0_41] : memref<9x128xf32, #tpu.memory_space<vmem>>, vector<1x128xf32>
    %72 = vector.shape_cast %71 : vector<1x128xf32> to vector<128xf32>
    %73 = vector.shape_cast %72 : vector<128xf32> to vector<1x1x128xf32>
    %74 = vector.broadcast %73 : vector<1x1x128xf32> to vector<16x16x128xf32>
    %75 = arith.mulf %70, %74 : vector<16x16x128xf32>
    %76 = arith.addf %69, %75 : vector<16x16x128xf32>
    %77 = vector.extract_strided_slice %19 {offsets = [2, 0, 0], sizes = [16, 16, 128], strides = [1, 1, 1]} : vector<18x16x128xf32> to vector<16x16x128xf32>
    %c8 = arith.constant 8 : index
    %c0_42 = arith.constant 0 : index
    %78 = vector.load %arg4[%c8, %c0_42] : memref<9x128xf32, #tpu.memory_space<vmem>>, vector<1x128xf32>
    %79 = vector.shape_cast %78 : vector<1x128xf32> to vector<128xf32>
    %80 = vector.shape_cast %79 : vector<128xf32> to vector<1x1x128xf32>
    %81 = vector.broadcast %80 : vector<1x1x128xf32> to vector<16x16x128xf32>
    %82 = arith.mulf %77, %81 : vector<16x16x128xf32>
    %83 = arith.addf %76, %82 : vector<16x16x128xf32>
    %c0_43 = arith.constant 0 : index
    %c0_44 = arith.constant 0 : index
    %84 = vector.load %arg5[%c0_43, %c0_44] : memref<1x128xf32, #tpu.memory_space<vmem>>, vector<1x128xf32>
    %85 = vector.shape_cast %84 : vector<1x128xf32> to vector<1x1x128xf32>
    %86 = vector.broadcast %85 : vector<1x1x128xf32> to vector<16x16x128xf32>
    %87 = arith.addf %83, %86 : vector<16x16x128xf32>
    %cst_45 = arith.constant 0.000000e+00 : f32
    %88 = vector.broadcast %cst_45 : f32 to vector<16x16x128xf32>
    %89 = arith.maximumf %87, %88 : vector<16x16x128xf32>
    %c1_46 = arith.constant 1 : index
    %c1_47 = arith.constant 1 : index
    %c0_48 = arith.constant 0 : index
    %90 = vector.load %arg10[%c1_46, %c1_47, %c0_48] : memref<18x18x128xf32, #tpu.memory_space<vmem>>, vector<16x16x128xf32>
    tpu.vector_store %arg10[%c1_46, %c1_47, %c0_48], %89 {strides = array<i32>} : memref<18x18x128xf32, #tpu.memory_space<vmem>>, vector<16x16x128xf32>,
    %cst_49 = arith.constant 0.000000e+00 : f32
    %91 = vector.broadcast %cst_49 : f32 to vector<256x128xf32>
    %c0_50 = arith.constant 0 : index
    %c0_51 = arith.constant 0 : index
    %c0_52 = arith.constant 0 : index
    %92 = vector.load %arg10[%c0_50, %c0_51, %c0_52] : memref<18x18x128xf32, #tpu.memory_space<vmem>>, vector<18x16x128xf32>
    %93 = vector.extract_strided_slice %92 {offsets = [0, 0, 0], sizes = [16, 16, 128], strides = [1, 1, 1]} : vector<18x16x128xf32> to vector<16x16x128xf32>
    %94 = vector.shape_cast %93 : vector<16x16x128xf32> to vector<256x128xf32>
    %c0_53 = arith.constant 0 : index
    %c0_54 = arith.constant 0 : index
    %c0_55 = arith.constant 0 : index
    %95 = vector.load %arg6[%c0_53, %c0_54, %c0_55] : memref<9x128x128xf32, #tpu.memory_space<vmem>>, vector<1x128x128xf32>
    %96 = vector.shape_cast %95 : vector<1x128x128xf32> to vector<128x128xf32>
    %cst_56 = arith.constant dense<0.000000e+00> : vector<256x128xf32>
    %97 = tpu.matmul %94, %96, %cst_56 {dimension_numbers = #tpu.dot_dimension_numbers<[1], [0], [0], [1], [0, 0, 1, 1], [], []>} : vector<256x128xf32>, vector<128x128xf32>, vector<256x128xf32> -> vector<256x128xf32>
    %98 = arith.addf %91, %97 : vector<256x128xf32>
    %99 = vector.extract_strided_slice %92 {offsets = [1, 0, 0], sizes = [16, 16, 128], strides = [1, 1, 1]} : vector<18x16x128xf32> to vector<16x16x128xf32>
    %100 = vector.shape_cast %99 : vector<16x16x128xf32> to vector<256x128xf32>
    %c3_57 = arith.constant 3 : index
    %c0_58 = arith.constant 0 : index
    %c0_59 = arith.constant 0 : index
    %101 = vector.load %arg6[%c3_57, %c0_58, %c0_59] : memref<9x128x128xf32, #tpu.memory_space<vmem>>, vector<1x128x128xf32>
    %102 = vector.shape_cast %101 : vector<1x128x128xf32> to vector<128x128xf32>
    %cst_60 = arith.constant dense<0.000000e+00> : vector<256x128xf32>
    %103 = tpu.matmul %100, %102, %cst_60 {dimension_numbers = #tpu.dot_dimension_numbers<[1], [0], [0], [1], [0, 0, 1, 1], [], []>} : vector<256x128xf32>, vector<128x128xf32>, vector<256x128xf32> -> vector<256x128xf32>
    %104 = arith.addf %98, %103 : vector<256x128xf32>
    %105 = vector.extract_strided_slice %92 {offsets = [2, 0, 0], sizes = [16, 16, 128], strides = [1, 1, 1]} : vector<18x16x128xf32> to vector<16x16x128xf32>
    %106 = vector.shape_cast %105 : vector<16x16x128xf32> to vector<256x128xf32>
    %c6_61 = arith.constant 6 : index
    %c0_62 = arith.constant 0 : index
    %c0_63 = arith.constant 0 : index
    %107 = vector.load %arg6[%c6_61, %c0_62, %c0_63] : memref<9x128x128xf32, #tpu.memory_space<vmem>>, vector<1x128x128xf32>
    %108 = vector.shape_cast %107 : vector<1x128x128xf32> to vector<128x128xf32>
    %cst_64 = arith.constant dense<0.000000e+00> : vector<256x128xf32>
    %109 = tpu.matmul %106, %108, %cst_64 {dimension_numbers = #tpu.dot_dimension_numbers<[1], [0], [0], [1], [0, 0, 1, 1], [], []>} : vector<256x128xf32>, vector<128x128xf32>, vector<256x128xf32> -> vector<256x128xf32>
    %110 = arith.addf %104, %109 : vector<256x128xf32>
    %c0_65 = arith.constant 0 : index
    %c1_66 = arith.constant 1 : index
    %c0_67 = arith.constant 0 : index
    %111 = vector.load %arg10[%c0_65, %c1_66, %c0_67] : memref<18x18x128xf32, #tpu.memory_space<vmem>>, vector<18x16x128xf32>
    %112 = vector.extract_strided_slice %111 {offsets = [0, 0, 0], sizes = [16, 16, 128], strides = [1, 1, 1]} : vector<18x16x128xf32> to vector<16x16x128xf32>
    %113 = vector.shape_cast %112 : vector<16x16x128xf32> to vector<256x128xf32>
    %c1_68 = arith.constant 1 : index
    %c0_69 = arith.constant 0 : index
    %c0_70 = arith.constant 0 : index
    %114 = vector.load %arg6[%c1_68, %c0_69, %c0_70] : memref<9x128x128xf32, #tpu.memory_space<vmem>>, vector<1x128x128xf32>
    %115 = vector.shape_cast %114 : vector<1x128x128xf32> to vector<128x128xf32>
    %cst_71 = arith.constant dense<0.000000e+00> : vector<256x128xf32>
    %116 = tpu.matmul %113, %115, %cst_71 {dimension_numbers = #tpu.dot_dimension_numbers<[1], [0], [0], [1], [0, 0, 1, 1], [], []>} : vector<256x128xf32>, vector<128x128xf32>, vector<256x128xf32> -> vector<256x128xf32>
    %117 = arith.addf %110, %116 : vector<256x128xf32>
    %118 = vector.extract_strided_slice %111 {offsets = [1, 0, 0], sizes = [16, 16, 128], strides = [1, 1, 1]} : vector<18x16x128xf32> to vector<16x16x128xf32>
    %119 = vector.shape_cast %118 : vector<16x16x128xf32> to vector<256x128xf32>
    %c4_72 = arith.constant 4 : index
    %c0_73 = arith.constant 0 : index
    %c0_74 = arith.constant 0 : index
    %120 = vector.load %arg6[%c4_72, %c0_73, %c0_74] : memref<9x128x128xf32, #tpu.memory_space<vmem>>, vector<1x128x128xf32>
    %121 = vector.shape_cast %120 : vector<1x128x128xf32> to vector<128x128xf32>
    %cst_75 = arith.constant dense<0.000000e+00> : vector<256x128xf32>
    %122 = tpu.matmul %119, %121, %cst_75 {dimension_numbers = #tpu.dot_dimension_numbers<[1], [0], [0], [1], [0, 0, 1, 1], [], []>} : vector<256x128xf32>, vector<128x128xf32>, vector<256x128xf32> -> vector<256x128xf32>
    %123 = arith.addf %117, %122 : vector<256x128xf32>
    %124 = vector.extract_strided_slice %111 {offsets = [2, 0, 0], sizes = [16, 16, 128], strides = [1, 1, 1]} : vector<18x16x128xf32> to vector<16x16x128xf32>
    %125 = vector.shape_cast %124 : vector<16x16x128xf32> to vector<256x128xf32>
    %c7_76 = arith.constant 7 : index
    %c0_77 = arith.constant 0 : index
    %c0_78 = arith.constant 0 : index
    %126 = vector.load %arg6[%c7_76, %c0_77, %c0_78] : memref<9x128x128xf32, #tpu.memory_space<vmem>>, vector<1x128x128xf32>
    %127 = vector.shape_cast %126 : vector<1x128x128xf32> to vector<128x128xf32>
    %cst_79 = arith.constant dense<0.000000e+00> : vector<256x128xf32>
    %128 = tpu.matmul %125, %127, %cst_79 {dimension_numbers = #tpu.dot_dimension_numbers<[1], [0], [0], [1], [0, 0, 1, 1], [], []>} : vector<256x128xf32>, vector<128x128xf32>, vector<256x128xf32> -> vector<256x128xf32>
    %129 = arith.addf %123, %128 : vector<256x128xf32>
    %c0_80 = arith.constant 0 : index
    %c2_81 = arith.constant 2 : index
    %c0_82 = arith.constant 0 : index
    %130 = vector.load %arg10[%c0_80, %c2_81, %c0_82] : memref<18x18x128xf32, #tpu.memory_space<vmem>>, vector<18x16x128xf32>
    %131 = vector.extract_strided_slice %130 {offsets = [0, 0, 0], sizes = [16, 16, 128], strides = [1, 1, 1]} : vector<18x16x128xf32> to vector<16x16x128xf32>
    %132 = vector.shape_cast %131 : vector<16x16x128xf32> to vector<256x128xf32>
    %c2_83 = arith.constant 2 : index
    %c0_84 = arith.constant 0 : index
    %c0_85 = arith.constant 0 : index
    %133 = vector.load %arg6[%c2_83, %c0_84, %c0_85] : memref<9x128x128xf32, #tpu.memory_space<vmem>>, vector<1x128x128xf32>
    %134 = vector.shape_cast %133 : vector<1x128x128xf32> to vector<128x128xf32>
    %cst_86 = arith.constant dense<0.000000e+00> : vector<256x128xf32>
    %135 = tpu.matmul %132, %134, %cst_86 {dimension_numbers = #tpu.dot_dimension_numbers<[1], [0], [0], [1], [0, 0, 1, 1], [], []>} : vector<256x128xf32>, vector<128x128xf32>, vector<256x128xf32> -> vector<256x128xf32>
    %136 = arith.addf %129, %135 : vector<256x128xf32>
    %137 = vector.extract_strided_slice %130 {offsets = [1, 0, 0], sizes = [16, 16, 128], strides = [1, 1, 1]} : vector<18x16x128xf32> to vector<16x16x128xf32>
    %138 = vector.shape_cast %137 : vector<16x16x128xf32> to vector<256x128xf32>
    %c5_87 = arith.constant 5 : index
    %c0_88 = arith.constant 0 : index
    %c0_89 = arith.constant 0 : index
    %139 = vector.load %arg6[%c5_87, %c0_88, %c0_89] : memref<9x128x128xf32, #tpu.memory_space<vmem>>, vector<1x128x128xf32>
    %140 = vector.shape_cast %139 : vector<1x128x128xf32> to vector<128x128xf32>
    %cst_90 = arith.constant dense<0.000000e+00> : vector<256x128xf32>
    %141 = tpu.matmul %138, %140, %cst_90 {dimension_numbers = #tpu.dot_dimension_numbers<[1], [0], [0], [1], [0, 0, 1, 1], [], []>} : vector<256x128xf32>, vector<128x128xf32>, vector<256x128xf32> -> vector<256x128xf32>
    %142 = arith.addf %136, %141 : vector<256x128xf32>
    %143 = vector.extract_strided_slice %130 {offsets = [2, 0, 0], sizes = [16, 16, 128], strides = [1, 1, 1]} : vector<18x16x128xf32> to vector<16x16x128xf32>
    %144 = vector.shape_cast %143 : vector<16x16x128xf32> to vector<256x128xf32>
    %c8_91 = arith.constant 8 : index
    %c0_92 = arith.constant 0 : index
    %c0_93 = arith.constant 0 : index
    %145 = vector.load %arg6[%c8_91, %c0_92, %c0_93] : memref<9x128x128xf32, #tpu.memory_space<vmem>>, vector<1x128x128xf32>
    %146 = vector.shape_cast %145 : vector<1x128x128xf32> to vector<128x128xf32>
    %cst_94 = arith.constant dense<0.000000e+00> : vector<256x128xf32>
    %147 = tpu.matmul %144, %146, %cst_94 {dimension_numbers = #tpu.dot_dimension_numbers<[1], [0], [0], [1], [0, 0, 1, 1], [], []>} : vector<256x128xf32>, vector<128x128xf32>, vector<256x128xf32> -> vector<256x128xf32>
    %148 = arith.addf %142, %147 : vector<256x128xf32>
    %c0_95 = arith.constant 0 : index
    %c0_96 = arith.constant 0 : index
    %149 = vector.load %arg7[%c0_95, %c0_96] : memref<1x128xf32, #tpu.memory_space<vmem>>, vector<1x128xf32>
    %150 = vector.broadcast %149 : vector<1x128xf32> to vector<256x128xf32>
    %151 = arith.addf %148, %150 : vector<256x128xf32>
    %cst_97 = arith.constant 0.000000e+00 : f32
    %152 = vector.broadcast %cst_97 : f32 to vector<256x128xf32>
    %153 = arith.maximumf %151, %152 : vector<256x128xf32>
    %c0_98 = arith.constant 0 : index
    %c0_99 = arith.constant 0 : index
    %154 = vector.load %arg8[%c0_98, %c0_99] : memref<128x128xf32, #tpu.memory_space<vmem>>, vector<128x128xf32>
    %cst_100 = arith.constant dense<0.000000e+00> : vector<256x128xf32>
    %155 = tpu.matmul %153, %154, %cst_100 {dimension_numbers = #tpu.dot_dimension_numbers<[1], [0], [0], [1], [0, 0, 1, 1], [], []>} : vector<256x128xf32>, vector<128x128xf32>, vector<256x128xf32> -> vector<256x128xf32>
    %c0_101 = arith.constant 0 : index
    %c0_102 = arith.constant 0 : index
    %c0_103 = arith.constant 0 : index
    %156 = vector.load %arg1[%c0_101, %c0_102, %c0_103] : memref<1x256x128xf32, #tpu.memory_space<vmem>>, vector<1x256x128xf32>
    %157 = vector.shape_cast %156 : vector<1x256x128xf32> to vector<256x128xf32>
    %158 = arith.addf %155, %157 : vector<256x128xf32>
    %c0_104 = arith.constant 0 : index
    %c0_105 = arith.constant 0 : index
    %c0_106 = arith.constant 0 : index
    %159 = vector.load %arg9[%c0_104, %c0_105, %c0_106] : memref<1x256x128xf32, #tpu.memory_space<vmem>>, vector<1x256x128xf32>
    %160 = vector.shape_cast %159 : vector<1x256x128xf32> to vector<256x128xf32>
    %161 = vector.shape_cast %158 : vector<256x128xf32> to vector<1x256x128xf32>
    tpu.vector_store %arg9[%c0_104, %c0_105, %c0_106], %161 {strides = array<i32>} : memref<1x256x128xf32, #tpu.memory_space<vmem>>, vector<1x256x128xf32>,
    return
  }
  func.func @transform_0(%arg0: i32) -> (i32, i32, i32) {
    %c0_i32 = arith.constant 0 : i32
    %c0_i32_0 = arith.constant 0 : i32
    %c0_i32_1 = arith.constant 0 : i32
    return %arg0, %c0_i32, %c0_i32_0 : i32, i32, i32
  }
  func.func @transform_1(%arg0: i32) -> (i32, i32) {
    %c0_i32 = arith.constant 0 : i32
    %c0_i32_0 = arith.constant 0 : i32
    %c0_i32_1 = arith.constant 0 : i32
    return %c0_i32, %c0_i32_0 : i32, i32
  }
  func.func @transform_2(%arg0: i32) -> (i32, i32) {
    %c0_i32 = arith.constant 0 : i32
    %c0_i32_0 = arith.constant 0 : i32
    %c0_i32_1 = arith.constant 0 : i32
    return %c0_i32, %c0_i32_0 : i32, i32
  }
  func.func @transform_3(%arg0: i32) -> (i32, i32) {
    %c0_i32 = arith.constant 0 : i32
    %c0_i32_0 = arith.constant 0 : i32
    %c0_i32_1 = arith.constant 0 : i32
    return %c0_i32, %c0_i32_0 : i32, i32
  }
  func.func @transform_4(%arg0: i32) -> (i32, i32) {
    %c0_i32 = arith.constant 0 : i32
    %c0_i32_0 = arith.constant 0 : i32
    %c0_i32_1 = arith.constant 0 : i32
    return %c0_i32, %c0_i32_0 : i32, i32
  }
  func.func @transform_5(%arg0: i32) -> (i32, i32, i32) {
    %c0_i32 = arith.constant 0 : i32
    %c0_i32_0 = arith.constant 0 : i32
    %c0_i32_1 = arith.constant 0 : i32
    %c0_i32_2 = arith.constant 0 : i32
    return %c0_i32, %c0_i32_0, %c0_i32_1 : i32, i32, i32
  }
  func.func @transform_6(%arg0: i32) -> (i32, i32) {
    %c0_i32 = arith.constant 0 : i32
    %c0_i32_0 = arith.constant 0 : i32
    %c0_i32_1 = arith.constant 0 : i32
    return %c0_i32, %c0_i32_0 : i32, i32
  }
  func.func @transform_7(%arg0: i32) -> (i32, i32) {
    %c0_i32 = arith.constant 0 : i32
    %c0_i32_0 = arith.constant 0 : i32
    %c0_i32_1 = arith.constant 0 : i32
    return %c0_i32, %c0_i32_0 : i32, i32
  }
  func.func @transform_8(%arg0: i32) -> (i32, i32, i32) {
    %c0_i32 = arith.constant 0 : i32
    %c0_i32_0 = arith.constant 0 : i32
    %c0_i32_1 = arith.constant 0 : i32
    return %arg0, %c0_i32, %c0_i32_0 : i32, i32, i32
  }
}

</mosaic_0001>

<bundles_post_ra>
// kernel: light_edge_block.1
= control target key start
LH: loop header
LB: loop body
LE: loop exit
PB: predicated region body
PF: predicated region fallthrough
CT: control target
= control target key end

     0   :  { %s3513_s27 = smov 0   ;;  %s6340_s0 = inlined_call_operand.vmem [shape: f32[2,256,128], index: 0, kind: input, shape index: {}]   ;;  %s6341_s1 = inlined_call_operand.vmem [shape: f32[128,128], index: 1, kind: input, shape index: {}]   ;;  %s6342_s2 = inlined_call_operand.vmem [shape: f32[1,128], index: 2, kind: input, shape index: {}]   ;;  %s6343_s3 = inlined_call_operand.vmem [shape: f32[9,128], index: 3, kind: input, shape index: {}]   ;;  %s6344_s4 = inlined_call_operand.vmem [shape: f32[1,128], index: 4, kind: input, shape index: {}]   ;;  %s6345_s5 = inlined_call_operand.vmem [shape: f32[9,128,128], index: 5, kind: input, shape index: {}]   ;;  %s6346_s6 = inlined_call_operand.vmem [shape: f32[1,128], index: 6, kind: input, shape index: {}]   ;;  %s6347_s7 = inlined_call_operand.vmem [shape: f32[128,128], index: 7, kind: input, shape index: {}]   ;;  %s6348_s8 = inlined_call_operand.vmem [shape: f32[2,256,128], index: 8, kind: output, shape index: {}]  }
   0x1 LB: > { %s3198_s28 = sadd.s32 4294967295, %s3465_s27   ;;  %p3202_p0 = scmp.ge.s32.totalorder %s3465_s27, 1  ;;  %s3465_s27 = sphi %s3513_s27, %s18_s27  }
   0x2   : > { %p262_p1 = scmp.lt.s32.totalorder %s3465_s27, 3 }
   0x4   : > { %p263_p2 = pnand %p3202_p0, %p262_p1 }
   0x6   : > { %266 = sbr.rel (%p263_p2) target bundleno = 1310 (0x51e), region = 52 }
   0xb   : > { %v396_v0 = vld [vmem:[%s6341_s1 + $0x78] sm:$0xff]  ;;  %v395_v1 = vld [vmem:[%s6341_s1 + $0x70] sm:$0xff]  ;;  %v394_v2 = vld [vmem:[%s6341_s1 + $0x68] sm:$0xff]  ;;  %p296_p3 = scmp.lt.s32.totalorder %s3198_s28, 1  ;;  %v3467_v29 = vmov 0.0  }
   0xc   : > { %401 = vmatpush.msra.mxu0 %v396_v0  ;;  %3339 = vmatpush.msra.mxu3 %v396_v0  ;;  %v393_v3 = vld [vmem:[%s6341_s1 + $0x60] sm:$0xff]  ;;  %v392_v4 = vld [vmem:[%s6341_s1 + $0x58] sm:$0xff]  ;;  %v391_v5 = vld [vmem:[%s6341_s1 + $0x50] sm:$0xff]  ;;  %332 = vst [vmem:[#allocation2 + $0x29] sm:$0x1] %v3467_v29 }
   0xd   : > { %v390_v6 = vld [vmem:[%s6341_s1 + $0x48] sm:$0xff]  ;;  %v389_v7 = vld [vmem:[%s6341_s1 + $0x40] sm:$0xff]  ;;  %v388_v8 = vld [vmem:[%s6341_s1 + $0x38] sm:$0xff]  ;;  %s6671_s28 = smov (!%p296_p3, %s3198_s28), 1  ;;  %306 = vst [vmem:[#allocation2] sm:$0xff] %v3467_v29 }
   0xe   : > { %402 = vmatpush.msra.mxu0 %v395_v1  ;;  %3340 = vmatpush.msra.mxu3 %v395_v1  ;;  %v387_v9 = vld [vmem:[%s6341_s1 + $0x30] sm:$0xff]  ;;  %v386_v10 = vld [vmem:[%s6341_s1 + $0x28] sm:$0xff]  ;;  %v385_v11 = vld [vmem:[%s6341_s1 + $0x20] sm:$0xff]  ;;  %s3337_s13 = sshll.u32 %s6671_s28, 8  ;;  %307 = vst [vmem:[#allocation2 + $0x8] sm:$0xff] %v3467_v29 }
   0xf   : > { %v384_v12 = vld [vmem:[%s6341_s1 + $0x18] sm:$0xff]  ;;  %v383_v13 = vld [vmem:[%s6341_s1 + $0x10] sm:$0xff]  ;;  %v382_v14 = vld [vmem:[%s6341_s1 + $0x8] sm:$0xff]  ;;  %s3578_s20 = scalar_lea.vmem %s6340_s0, %s3337_s13  ;;  %308 = vst [vmem:[#allocation2 + $0x10] sm:$0x3] %v3467_v29  ;;  %s6204_s11 = scalar_lea.vmem %s6348_s8, %s3337_s13 }
  0x10   : > { %403 = vmatpush.msra.mxu0 %v394_v2  ;;  %3341 = vmatpush.msra.mxu3 %v394_v2  ;;  %v381_v15 = vld [vmem:[%s6341_s1] sm:$0xff]  ;;  %v350_v17 = vld [vmem:[%s3578_s20 + $0x8] sm:$0xff]  ;;  %v351_v18 = vld [vmem:[%s3578_s20 + $0x10] sm:$0xff]  ;;  %310 = vst [vmem:[#allocation2 + $0x198] sm:$0xff] %v3467_v29 }
  0x11   : > { %v349_v16 = vld [vmem:[%s3578_s20] sm:$0xff]  ;;  %v352_v19 = vld [vmem:[%s3578_s20 + $0x18] sm:$0xff]  ;;  %v354_v21 = vld [vmem:[%s3578_s20 + $0x28] sm:$0xff]  ;;  %311 = vst [vmem:[#allocation2 + $0x1a0] sm:$0xff] %v3467_v29 }
  0x12   : > { %404 = vmatpush.msra.mxu0 %v393_v3  ;;  %3342 = vmatpush.msra.mxu3 %v393_v3  ;;  %v353_v20 = vld [vmem:[%s3578_s20 + $0x20] sm:$0xff]  ;;  %v355_v22 = vld [vmem:[%s3578_s20 + $0x30] sm:$0xff]  ;;  %v356_v23 = vld [vmem:[%s3578_s20 + $0x38] sm:$0xff]  ;;  %312 = vst [vmem:[#allocation2 + $0x1a8] sm:$0x3] %v3467_v29 }
  0x13   : > { %v357_v24 = vld [vmem:[%s3578_s20 + $0x40] sm:$0xff]  ;;  %v358_v25 = vld [vmem:[%s3578_s20 + $0x48] sm:$0xff]  ;;  %v359_v26 = vld [vmem:[%s3578_s20 + $0x50] sm:$0xff]  ;;  %314 = vst [vmem:[#allocation2 + $0x18] sm:$0x1] %v3467_v29 }
  0x14   : > { %405 = vmatpush.msra.mxu0 %v392_v4  ;;  %3343 = vmatpush.msra.mxu3 %v392_v4  ;;  %v360_v27 = vld [vmem:[%s3578_s20 + $0x58] sm:$0xff]  ;;  %v361_v28 = vld [vmem:[%s3578_s20 + $0x60] sm:$0xff]  ;;  %v362_v31 = vld [vmem:[%s3578_s20 + $0x68] sm:$0xff]  ;;  %315 = vst [vmem:[#allocation2 + $0x30] sm:$0x1] %v3467_v29 }
  0x15   : > { %v3604_v30 = vld [vmem:[%s6345_s5 + $0x78] sm:$0xff]  ;;  %v3615_v32 = vld [vmem:[%s6345_s5 + $0x70] sm:$0xff]  ;;  %v373_v33 = vld [vmem:[%s3578_s20 + $0xc0] sm:$0xff]  ;;  %316 = vst [vmem:[#allocation2 + $0x48] sm:$0x1] %v3467_v29 }
  0x16   : > { %406 = vmatpush.msra.mxu0 %v391_v5  ;;  %3344 = vmatpush.msra.mxu3 %v391_v5  ;;  %317 = vst [vmem:[#allocation2 + $0x60] sm:$0x1] %v3467_v29  ;;  %v3629_v34 = vld [vmem:[%s6345_s5 + $0x68] sm:$0xff]  ;;  %v363_v35 = vld [vmem:[%s3578_s20 + $0x70] sm:$0xff]  ;;  %v3639_v37 = vld [vmem:[%s6345_s5 + $0x60] sm:$0xff] }
  0x17   : > { %1563 = vmatpush.msra.mxu2 %v3604_v30  ;;  %318 = vst [vmem:[#allocation2 + $0x78] sm:$0x1] %v3467_v29  ;;  %v374_v36 = vld [vmem:[%s3578_s20 + $0xc8] sm:$0xff]  ;;  %v3647_v38 = vld [vmem:[%s6345_s5 + $0x58] sm:$0xff]  ;;  %v3655_v39 = vld [vmem:[%s6345_s5 + $0x50] sm:$0xff] }
  0x18   : > { %407 = vmatpush.msra.mxu0 %v390_v6  ;;  %3345 = vmatpush.msra.mxu3 %v390_v6  ;;  %319 = vst [vmem:[#allocation2 + $0x90] sm:$0x1] %v3467_v29  ;;  %v3663_v40 = vld [vmem:[%s6345_s5 + $0x48] sm:$0xff]  ;;  %v364_v41 = vld [vmem:[%s3578_s20 + $0x78] sm:$0xff]  ;;  %v375_v42 = vld [vmem:[%s3578_s20 + $0xd0] sm:$0xff] }
  0x19   : > { %1564 = vmatpush.msra.mxu2 %v3615_v32  ;;  %320 = vst [vmem:[#allocation2 + $0xa8] sm:$0x1] %v3467_v29  ;;  %v3673_v43 = vld [vmem:[%s6345_s5 + $0x40] sm:$0xff]  ;;  %v3222_v44 = vld [vmem:[%s6345_s5 + $0x1f8] sm:$0xff]  ;;  %v3221_v47 = vld [vmem:[%s6345_s5 + $0x1f0] sm:$0xff] }
  0x1a   : > { %408 = vmatpush.msra.mxu0 %v389_v7  ;;  %3346 = vmatpush.msra.mxu3 %v389_v7  ;;  %321 = vst [vmem:[#allocation2 + $0xc0] sm:$0x1] %v3467_v29  ;;  %v3684_v45 = vld [vmem:[%s6345_s5 + $0x38] sm:$0xff]  ;;  %v3691_v46 = vld [vmem:[%s6342_s2] ss:$0 sm:$0xff]  ;;  %v3700_v48 = vld [vmem:[%s6345_s5 + $0x30] sm:$0xff] }
  0x1b   : > { %322 = vst [vmem:[#allocation2 + $0xd8] sm:$0x1] %v3467_v29  ;;  %1565 = vmatpush.msra.mxu2 %v3629_v34  ;;  %1450 = vmatpush.msra.mxu1 %v3222_v44  ;;  %v3220_v49 = vld [vmem:[%s6345_s5 + $0x1e8] sm:$0xff]  ;;  %v365_v52 = vld [vmem:[%s3578_s20 + $0x80] sm:$0xff]  ;;  %v376_v53 = vld [vmem:[%s3578_s20 + $0xd8] sm:$0xff] }
  0x1c   : > { %409 = vmatpush.msra.mxu0 %v388_v8  ;;  %3347 = vmatpush.msra.mxu3 %v388_v8  ;;  %323 = vst [vmem:[#allocation2 + $0xf0] sm:$0x1] %v3467_v29  ;;  %v3711_v50 = vld [vmem:[%s6345_s5 + $0x28] sm:$0xff]  ;;  %v3219_v55 = vld [vmem:[%s6345_s5 + $0x1e0] sm:$0xff]  ;;  %v3218_v58 = vld [vmem:[%s6345_s5 + $0x1d8] sm:$0xff] }
  0x1d   : > { %324 = vst [vmem:[#allocation2 + $0x108] sm:$0x1] %v3467_v29  ;;  %1566 = vmatpush.msra.mxu2 %v3639_v37  ;;  %1451 = vmatpush.msra.mxu1 %v3221_v47  ;;  %v3725_v56 = vld [vmem:[%s6345_s5 + $0x20] sm:$0xff]  ;;  %v3738_v59 = vld [vmem:[%s6345_s5 + $0x18] sm:$0xff]  ;;  %v3217_v60 = vld [vmem:[%s6345_s5 + $0x1d0] sm:$0xff] }
  0x1e   : > { %410 = vmatpush.msra.mxu0 %v387_v9  ;;  %3348 = vmatpush.msra.mxu3 %v387_v9  ;;  %325 = vst [vmem:[#allocation2 + $0x120] sm:$0x1] %v3467_v29  ;;  %v3749_v61 = vld [vmem:[%s6345_s5 + $0x10] sm:$0xff]  ;;  %v3216_v62 = vld [vmem:[%s6345_s5 + $0x1c8] sm:$0xff]  ;;  %v377_v2 = vld [vmem:[%s3578_s20 + $0xe0] sm:$0xff] }
  0x1f   : > { %326 = vst [vmem:[#allocation2 + $0x138] sm:$0x1] %v3467_v29  ;;  %1567 = vmatpush.msra.mxu2 %v3647_v38  ;;  %1452 = vmatpush.msra.mxu1 %v3220_v49  ;;  %v3760_v63 = vld [vmem:[%s6345_s5 + $0x8] sm:$0xff]  ;;  %v3215_v4 = vld [vmem:[%s6345_s5 + $0x1c0] sm:$0xff]  ;;  %v3254_v6 = vld [vmem:[%s6345_s5 + $0xf8] sm:$0xff] }
  0x20   : > { %411 = vmatpush.msra.mxu0 %v386_v10  ;;  %3349 = vmatpush.msra.mxu3 %v386_v10  ;;  %327 = vst [vmem:[#allocation2 + $0x150] sm:$0x1] %v3467_v29  ;;  %v366_v1 = vld [vmem:[%s3578_s20 + $0x88] sm:$0xff]  ;;  %v3774_v5 = vld [vmem:[%s6345_s5] sm:$0xff]  ;;  %v3791_v9 = vld [vmem:[%s6345_s5 + $0x1b8] sm:$0xff] }
  0x21   : > { %328 = vst [vmem:[#allocation2 + $0x168] sm:$0x1] %v3467_v29  ;;  %1568 = vmatpush.msra.mxu2 %v3655_v39  ;;  %1453 = vmatpush.msra.mxu1 %v3219_v55  ;;  %v3786_v8 = vld [vmem:[%s6343_s3] ss:$0 sm:$0xff]  ;;  %v3253_v10 = vld [vmem:[%s6345_s5 + $0xf0] sm:$0xff] }
  0x22   : > { %412 = vmatpush.msra.mxu0 %v385_v11  ;;  %3350 = vmatpush.msra.mxu3 %v385_v11  ;;  %329 = vst [vmem:[#allocation2 + $0x180] sm:$0x1] %v3467_v29  ;;  %v3797_v11 = vld [vmem:[#allocation2 + $0x1] sm:$0xff] }
  0x23   : > { %333 = vst [vmem:[#allocation2 + $0x41] sm:$0x1] %v3467_v29  ;;  %1569 = vmatpush.msra.mxu2 %v3663_v40  ;;  %1454 = vmatpush.msra.mxu1 %v3218_v58 }
  0x24   : > { %413 = vmatpush.msra.mxu0 %v384_v12  ;;  %3351 = vmatpush.msra.mxu3 %v384_v12  ;;  %334 = vst [vmem:[#allocation2 + $0x59] sm:$0x1] %v3467_v29  ;;  %v3802_v12 = vld [vmem:[%s6343_s3 + $0x1] ss:$0 sm:$0xff] }
  0x25   : > { %335 = vst [vmem:[#allocation2 + $0x71] sm:$0x1] %v3467_v29  ;;  %1570 = vmatpush.msra.mxu2 %v3673_v43  ;;  %1455 = vmatpush.msra.mxu1 %v3217_v60 }
  0x26   : > { %414 = vmatpush.msra.mxu0 %v383_v13  ;;  %3352 = vmatpush.msra.mxu3 %v383_v13  ;;  %336 = vst [vmem:[#allocation2 + $0x89] sm:$0x1] %v3467_v29  ;;  %v3808_v13 = vld [vmem:[%s6345_s5 + $0x1b0] sm:$0xff] }
  0x27   : > { %337 = vst [vmem:[#allocation2 + $0xa1] sm:$0x1] %v3467_v29  ;;  %1571 = vmatpush.msra.mxu2 %v3684_v45  ;;  %1456 = vmatpush.msra.mxu1 %v3216_v62 }
  0x28   : > { %415 = vmatpush.msra.mxu0 %v382_v14  ;;  %3353 = vmatpush.msra.mxu3 %v382_v14  ;;  %338 = vst [vmem:[#allocation2 + $0xb9] sm:$0x1] %v3467_v29  ;;  %v3252_v14 = vld [vmem:[%s6345_s5 + $0xe8] sm:$0xff] }
  0x29   : > { %339 = vst [vmem:[#allocation2 + $0xd1] sm:$0x1] %v3467_v29  ;;  %1572 = vmatpush.msra.mxu2 %v3700_v48  ;;  %1457 = vmatpush.msra.mxu1 %v3215_v4 }
  0x2a   : > { %416 = vmatpush.msra.mxu0 %v381_v15  ;;  %3354 = vmatpush.msra.mxu3 %v381_v15  ;;  %340 = vst [vmem:[#allocation2 + $0xe9] sm:$0x1] %v3467_v29 }
  0x2b   : > { %417 = vmatmul.f32.vlgmr.msra.gmra.mxu0 %v349_v16  ;;  %489 = vmatmul.f32.vlgmr.msra.gmra.mxu3 %v373_v33  ;;  %341 = vst [vmem:[#allocation2 + $0x101] sm:$0x1] %v3467_v29  ;;  %v3817_v16 = vld [vmem:[%s6343_s3 + $0x2] ss:$0 sm:$0xff] }
  0x2c   : > { %3355 = vmatpush.msrb.mxu3 %v3222_v44  ;;  %342 = vst [vmem:[#allocation2 + $0x119] sm:$0x1] %v3467_v29  ;;  %1573 = vmatpush.msra.mxu2 %v3711_v50  ;;  %v690_v44 = vmul.f32 0.0, %v3786_v8 }
  0x2d   : > { %343 = vst [vmem:[#allocation2 + $0x131] sm:$0x1] %v3467_v29  ;;  %1891 = vmatpush.msrb.mxu0 %v3254_v6  ;;  %1458 = vmatpush.msra.mxu1 %v3791_v9 }
  0x2e   : > { %3356 = vmatpush.msrb.mxu3 %v3221_v47  ;;  %344 = vst [vmem:[#allocation2 + $0x149] sm:$0x1] %v3467_v29  ;;  %1574 = vmatpush.msra.mxu2 %v3725_v56 }
  0x2f   : > { %345 = vst [vmem:[#allocation2 + $0x161] sm:$0x1] %v3467_v29  ;;  %1892 = vmatpush.msrb.mxu0 %v3253_v10  ;;  %1459 = vmatpush.msra.mxu1 %v3808_v13  ;;  %v3906_v10 = vld [vmem:[%s6345_s5 + $0x180] sm:$0xff] }
  0x30   : > { %3357 = vmatpush.msrb.mxu3 %v3220_v49  ;;  %346 = vst [vmem:[#allocation2 + $0x179] sm:$0x1] %v3467_v29  ;;  %1575 = vmatpush.msra.mxu2 %v3738_v59 }
  0x31   : > { %347 = vst [vmem:[#allocation2 + $0x191] sm:$0x1] %v3467_v29  ;;  %1893 = vmatpush.msrb.mxu0 %v3252_v14  ;;  %v3246_v14 = vld [vmem:[%s6345_s5 + $0xb8] sm:$0xff] }
  0x32   : > { %3358 = vmatpush.msrb.mxu3 %v3219_v55  ;;  %1576 = vmatpush.msra.mxu2 %v3749_v61  ;;  %313 = vst [vmem:[#allocation2] sm:$0x1] %v3467_v29  ;;  %v3247_v55 = vld [vmem:[%s6345_s5 + $0xc0] sm:$0xff] }
  0x33   : > { %420 = vmatmul.f32.gmra.mxu0 %v350_v17  ;;  %492 = vmatmul.f32.gmra.mxu3 %v374_v36  ;;  %330 = vst [vmem:[#allocation2 + $0x198] sm:$0x1] %v3467_v29  ;;  %v3822_v17 = vld [vmem:[%s6345_s5 + $0x1a8] sm:$0xff]  ;;  %v3249_v36 = vld [vmem:[%s6345_s5 + $0xd0] sm:$0xff] }
  0x34   : > { %3359 = vmatpush.msrb.mxu3 %v3218_v58  ;;  %1577 = vmatpush.msra.mxu2 %v3760_v63  ;;  %331 = vst [vmem:[#allocation2 + $0x11] sm:$0x1] %v3467_v29 }
  0x35   : > { %348 = vst [vmem:[#allocation2 + $0x1a9] sm:$0x1] %v3467_v29  ;;  %1460 = vmatpush.msra.mxu1 %v3822_v17 }
  0x36   : > { %1578 = vmatpush.msra.mxu2 %v3774_v5  ;;  %3360 = vmatpush.msrb.mxu3 %v3217_v60 }
  0x38   : > { %3361 = vmatpush.msrb.mxu3 %v3216_v62  ;;  %v3891_v62 = vld [vmem:[%s6343_s3 + $0x4] ss:$0 sm:$0xff] }
  0x39   : > { %v1381_v15 = vld [vmem:[#allocation2] sm:$0xff] }
  0x3a   : > { %1579 = vmatmul.f32.vlgmr.msra.gmra.mxu2 %v1381_v15  ;;  %3362 = vmatpush.msrb.mxu3 %v3215_v4 }
  0x3b   : > { %423 = vmatmul.f32.gmra.mxu0 %v351_v18  ;;  %495 = vmatmul.f32.gmra.mxu3 %v375_v42  ;;  %v3251_v18 = vld [vmem:[%s6345_s5 + $0xe0] sm:$0xff] }
  0x3c   : > { %1894 = vmatpush.msrb.mxu0 %v3251_v18  ;;  %3363 = vmatpush.msrb.mxu3 %v3791_v9  ;;  %v3915_v9 = vld [vmem:[%s6343_s3 + $0x6] ss:$0 sm:$0xff] }
  0x3e   : > { %3364 = vmatpush.msrb.mxu3 %v3808_v13 }
  0x40   : > { %3365 = vmatpush.msrb.mxu3 %v3822_v17 }
  0x42   : > { %1582 = vmatmul.f32.gmra.mxu2 %v3467_v29  ;;  %v3896_v29 = vld [vmem:[%s6343_s3 + $0x5] ss:$0 sm:$0xff] }
  0x43   : > { %426 = vmatmul.f32.gmra.mxu0 %v352_v19  ;;  %498 = vmatmul.f32.gmra.mxu3 %v376_v53  ;;  %v689_v19 = vmul.f32 %v3786_v8, %v1381_v15  ;;  %v3248_v53 = vld [vmem:[%s6345_s5 + $0xc8] sm:$0xff] }
  0x4b   : > { %429 = vmatmul.f32.gmra.mxu0 %v353_v20  ;;  %501 = vmatmul.f32.gmra.mxu3 %v377_v2  ;;  %v755_v20 = vmul.f32 %v3802_v12, %v3797_v11 }
  0x53   : > { %432 = vmatmul.f32.gmra.mxu0 %v354_v21 }
  0x5b   : > { %435 = vmatmul.f32.gmra.mxu0 %v355_v22  ;;  %v367_v22 = vld [vmem:[%s3578_s20 + $0x90] sm:$0xff] }
  0x63   : > { %438 = vmatmul.f32.gmra.mxu0 %v356_v23  ;;  %v378_v23 = vld [vmem:[%s3578_s20 + $0xe8] sm:$0xff] }
  0x64   : > { %504 = vmatmul.f32.gmra.mxu3 %v378_v23 }
  0x6b   : > { %441 = vmatmul.f32.gmra.mxu0 %v357_v24  ;;  %v651_v24 = vld [vmem:[#allocation2 + $0x2] sm:$0xff] }
  0x6c   : > { %v821_v42 = vmul.f32 %v3817_v16, %v651_v24 }
  0x73   : > { %444 = vmatmul.f32.gmra.mxu0 %v358_v25 }
  0x7b   : > { %447 = vmatmul.f32.gmra.mxu0 %v359_v26  ;;  %v3837_v26 = vld [vmem:[%s6345_s5 + $0x1a0] sm:$0xff] }
  0x7c   : > { %1461 = vmatpush.msra.mxu1 %v3837_v26  ;;  %3366 = vmatpush.msrb.mxu3 %v3837_v26  ;;  %v3243_v26 = vld [vmem:[%s6345_s5 + $0xa0] sm:$0xff] }
  0x83   : > { %450 = vmatmul.f32.gmra.mxu0 %v360_v27  ;;  %v3250_v27 = vld [vmem:[%s6345_s5 + $0xd8] sm:$0xff] }
  0x84   : > { %1895 = vmatpush.msrb.mxu0 %v3250_v27 }
  0x86   : > { %1896 = vmatpush.msrb.mxu0 %v3249_v36 }
  0x88   : > { %1897 = vmatpush.msrb.mxu0 %v3248_v53 }
  0x8a   : > { %1898 = vmatpush.msrb.mxu0 %v3247_v55 }
  0x8b   : > { %453 = vmatmul.f32.gmra.mxu0 %v361_v28  ;;  %v3842_v28 = vld [vmem:[#allocation2 + $0x9] sm:$0xff] }
  0x8c   : > { %v756_v47 = vmul.f32 %v3802_v12, %v3842_v28  ;;  %1899 = vmatpush.msrb.mxu0 %v3246_v14 }
  0x93   : > { %456 = vmatmul.f32.gmra.mxu0 %v362_v31  ;;  %v3848_v31 = vld [vmem:[%s6343_s3 + $0x3] ss:$0 sm:$0xff] }
  0x9b   : > { %459 = vmatmul.f32.gmra.mxu0 %v363_v35  ;;  %v3855_v35 = vld [vmem:[%s6345_s5 + $0x198] sm:$0xff] }
  0x9c   : > { %1462 = vmatpush.msra.mxu1 %v3855_v35  ;;  %3367 = vmatpush.msrb.mxu3 %v3855_v35 }
  0xa3   : > { %462 = vmatmul.f32.gmra.mxu0 %v364_v41  ;;  %v787_v41 = vadd.f32 %v755_v20, %v689_v19  ;;  %v379_v20 = vld [vmem:[%s3578_s20 + $0xf0] sm:$0xff] }
  0xa4   : > { %507 = vmatmul.f32.gmra.mxu3 %v379_v20 }
  0xa5   : > { %v853_v58 = vadd.f32 %v821_v42, %v787_v41  ;;  %v369_v42 = vld [vmem:[%s3578_s20 + $0xa0] sm:$0xff] }
  0xa8   : > { %v418_v51 = vpop.f32.mrf.mxu0 }
  0xa9   : > { %v419_v54 = vadd.f32 %v3691_v46, %v418_v51  ;;  %v652_v51 = vld [vmem:[#allocation2 + $0xa] sm:$0xff] }
  0xaa   : > { %v822_v2 = vmul.f32 %v3817_v16, %v652_v51  ;;  %v3942_v51 = vld [vmem:[%s6343_s3 + $0x7] ss:$0 sm:$0xff] }
  0xab   : > { %v3729_v57 = vmax.f32 %v419_v54, 0.0  ;;  %465 = vmatmul.f32.gmra.mxu0 %v365_v52  ;;  %v3871_v52 = vld [vmem:[%s6345_s5 + $0x190] sm:$0xff]  ;;  %v3881_v54 = vld [vmem:[%s6345_s5 + $0x188] sm:$0xff] }
  0xac   : > { %1463 = vmatpush.msra.mxu1 %v3871_v52  ;;  %3368 = vmatpush.msrb.mxu3 %v3871_v52 }
  0xad   : > { %547 = vst [vmem:[#allocation2 + $0x19] sm:$0xff] %v3729_v57  ;;  %v953_v23 = vmul.f32 %v3891_v62, %v3729_v57  ;;  %v757_v35 = vmul.f32 %v3802_v12, %v3729_v57 }
  0xae   : > { %1464 = vmatpush.msra.mxu1 %v3881_v54  ;;  %3369 = vmatpush.msrb.mxu3 %v3881_v54 }
  0xb0   : > { %v421_v0 = vpop.f32.mrf.mxu0  ;;  %1465 = vmatpush.msra.mxu1 %v3906_v10  ;;  %3370 = vmatpush.msrb.mxu3 %v3906_v10 }
  0xb1   : > { %v422_v3 = vadd.f32 %v3691_v46, %v421_v0 }
  0xb2   : > { %3371 = vmatpush.msra.mxu3 %v3604_v30 }
  0xb3   : > { %v3781_v7 = vmax.f32 %v422_v3, 0.0  ;;  %468 = vmatmul.f32.gmra.mxu0 %v366_v1  ;;  %v368_v1 = vld [vmem:[%s3578_s20 + $0x98] sm:$0xff]  ;;  %v788_v3 = vadd.f32 %v756_v47, %v690_v44  ;;  %v3244_v44 = vld [vmem:[%s6345_s5 + $0xa8] sm:$0xff] }
  0xb4   : > { %v3865_v49 = vld [vmem:[#allocation2 + $0x18] sm:$0xff]  ;;  %3372 = vmatpush.msra.mxu3 %v3615_v32 }
  0xb5   : > { %548 = vst [vmem:[#allocation2 + $0x21] sm:$0xff] %v3781_v7  ;;  %v887_v60 = vmul.f32 %v3848_v31, %v3865_v49  ;;  %v854_v13 = vadd.f32 %v822_v2, %v788_v3  ;;  %v954_v55 = vmul.f32 %v3891_v62, %v3781_v7  ;;  %v380_v3 = vld [vmem:[%s3578_s20 + $0xf8] sm:$0xff] }
  0xb6   : > { %510 = vmatmul.f32.gmra.mxu3 %v380_v3 }
  0xb7   : > { %v919_v19 = vadd.f32 %v887_v60, %v853_v58  ;;  %v3950_v58 = vld [vmem:[%s6343_s3 + $0x8] ss:$0 sm:$0xff]  ;;  %3373 = vmatpush.msra.mxu3 %v3629_v34 }
  0xb8   : > { %v424_v21 = vpop.f32.mrf.mxu0 }
  0xb9   : > { %v425_v25 = vadd.f32 %v3691_v46, %v424_v21  ;;  %v985_v36 = vadd.f32 %v953_v23, %v919_v19  ;;  %v691_v19 = vmul.f32 %v3786_v8, %v3865_v49  ;;  %3374 = vmatpush.msra.mxu3 %v3639_v37 }
  0xbb   : > { %v3850_v33 = vmax.f32 %v425_v25, 0.0  ;;  %471 = vmatmul.f32.gmra.mxu0 %v367_v22  ;;  %v3245_v25 = vld [vmem:[%s6345_s5 + $0xb0] sm:$0xff]  ;;  %3375 = vmatpush.msra.mxu3 %v3647_v38 }
  0xbc   : > { %v582_v4 = vld [vmem:[#allocation2 + $0x20] sm:$0xff]  ;;  %1900 = vmatpush.msrb.mxu0 %v3245_v25 }
  0xbd   : > { %549 = vst [vmem:[#allocation2 + $0x31] sm:$0xff] %v3850_v33  ;;  %v653_v15 = vld [vmem:[#allocation2 + $0x1a] sm:$0xff]  ;;  %v888_v21 = vmul.f32 %v3848_v31, %v582_v4  ;;  %v654_v60 = vld [vmem:[#allocation2 + $0x22] sm:$0xff]  ;;  %3376 = vmatpush.msra.mxu3 %v3655_v39 }
  0xbe   : > { %v1019_v24 = vmul.f32 %v3896_v29, %v653_v15  ;;  %1901 = vmatpush.msrb.mxu0 %v3244_v44  ;;  %v823_v49 = vmul.f32 %v3817_v16, %v653_v15  ;;  %v1020_v23 = vmul.f32 %v3896_v29, %v654_v60  ;;  %v789_v44 = vadd.f32 %v757_v35, %v691_v19 }
  0xbf   : > { %v920_v47 = vadd.f32 %v888_v21, %v854_v13  ;;  %v1151_v21 = vmul.f32 %v3942_v51, %v3850_v33  ;;  %v3242_v13 = vld [vmem:[%s6345_s5 + $0x98] sm:$0xff]  ;;  %3377 = vmatpush.msra.mxu3 %v3663_v40 }
  0xc0   : > { %v427_v0 = vpop.f32.mrf.mxu0  ;;  %v1051_v53 = vadd.f32 %v1019_v24, %v985_v36  ;;  %1902 = vmatpush.msrb.mxu0 %v3243_v26  ;;  %v3241_v24 = vld [vmem:[%s6345_s5 + $0x90] sm:$0xff]  ;;  %v855_v3 = vadd.f32 %v823_v49, %v789_v44  ;;  %v955_v49 = vmul.f32 %v3891_v62, %v3850_v33 }
  0xc1   : > { %v428_v6 = vadd.f32 %v3691_v46, %v427_v0  ;;  %v692_v0 = vmul.f32 %v3786_v8, %v582_v4  ;;  %v986_v20 = vadd.f32 %v954_v55, %v920_v47  ;;  %v758_v4 = vmul.f32 %v3802_v12, %v3781_v7  ;;  %3378 = vmatpush.msra.mxu3 %v3673_v43 }
  0xc2   : > { %1903 = vmatpush.msrb.mxu0 %v3242_v13 }
  0xc3   : > { %v3917_v18 = vmax.f32 %v428_v6, 0.0  ;;  %474 = vmatmul.f32.gmra.mxu0 %v368_v1  ;;  %v790_v25 = vadd.f32 %v758_v4, %v692_v0  ;;  %v1052_v47 = vadd.f32 %v1020_v23, %v986_v20  ;;  %3379 = vmatpush.msra.mxu3 %v3684_v45 }
  0xc4   : > { %v3922_v22 = vld [vmem:[#allocation2 + $0x30] sm:$0xff]  ;;  %1904 = vmatpush.msrb.mxu0 %v3241_v24 }
  0xc5   : > { %550 = vst [vmem:[#allocation2 + $0x39] sm:$0xff] %v3917_v18  ;;  %v1085_v27 = vmul.f32 %v3915_v9, %v3922_v22  ;;  %v889_v36 = vmul.f32 %v3848_v31, %v3922_v22  ;;  %v693_v32 = vmul.f32 %v3786_v8, %v3922_v22  ;;  %3380 = vmatpush.msra.mxu3 %v3700_v48 }
  0xc7   : > { %v1117_v2 = vadd.f32 %v1085_v27, %v1051_v53  ;;  %v3988_v27 = vld [vmem:[%s6344_s4] ss:$0 sm:$0xff]  ;;  %v824_v53 = vmul.f32 %v3817_v16, %v654_v60  ;;  %3381 = vmatpush.msra.mxu3 %v3711_v50 }
  0xc8   : > { %v430_v41 = vpop.f32.mrf.mxu0  ;;  %v3239_v60 = vld [vmem:[%s6345_s5 + $0x80] sm:$0xff] }
  0xc9   : > { %v431_v17 = vadd.f32 %v3691_v46, %v430_v41  ;;  %v1183_v15 = vadd.f32 %v1151_v21, %v1117_v2  ;;  %v1152_v2 = vmul.f32 %v3942_v51, %v3917_v18  ;;  %v856_v20 = vadd.f32 %v824_v53, %v790_v25  ;;  %3382 = vmatpush.msra.mxu3 %v3725_v56 }
  0xca   : > { %v921_v21 = vadd.f32 %v889_v36, %v855_v3  ;;  %v956_v25 = vmul.f32 %v3891_v62, %v3917_v18  ;;  %v371_v36 = vld [vmem:[%s3578_s20 + $0xb0] sm:$0xff] }
  0xcb   : > { %v3957_v1 = vmax.f32 %v431_v17, 0.0  ;;  %477 = vmatmul.f32.gmra.mxu0 %v369_v42  ;;  %v370_v42 = vld [vmem:[%s3578_s20 + $0xa8] sm:$0xff]  ;;  %3383 = vmatpush.msra.mxu3 %v3738_v59 }
  0xcc   : > { %v3960_v6 = vld [vmem:[#allocation2 + $0x38] sm:$0xff]  ;;  %v3240_v17 = vld [vmem:[%s6345_s5 + $0x88] sm:$0xff] }
  0xcd   : > { %v3962_v14 = vld [vmem:[#allocation2 + $0x32] sm:$0xff]  ;;  %551 = vst [vmem:[#allocation2 + $0x49] sm:$0xff] %v3957_v1  ;;  %v1086_v57 = vmul.f32 %v3915_v9, %v3960_v6  ;;  %v3998_v55 = vld [vmem:[#allocation2 + $0x3a] sm:$0xff]  ;;  %v890_v52 = vmul.f32 %v3848_v31, %v3960_v6  ;;  %1905 = vmatpush.msrb.mxu0 %v3240_v17  ;;  %v694_v34 = vmul.f32 %v3786_v8, %v3960_v6 }
  0xce   : > { %v1217_v7 = vmul.f32 %v3950_v58, %v3962_v14  ;;  %v1218_v54 = vmul.f32 %v3950_v58, %v3998_v55  ;;  %v1021_v10 = vmul.f32 %v3896_v29, %v3962_v14  ;;  %v1022_v22 = vmul.f32 %v3896_v29, %v3998_v55  ;;  %3384 = vmatpush.msra.mxu3 %v3749_v61 }
  0xcf   : > { %v1118_v19 = vadd.f32 %v1086_v57, %v1052_v47  ;;  %1906 = vmatpush.msrb.mxu0 %v3239_v60  ;;  %v922_v57 = vadd.f32 %v890_v52, %v856_v20  ;;  %v1153_v60 = vmul.f32 %v3942_v51, %v3957_v1  ;;  %v761_v50 = vmul.f32 %v3802_v12, %v3957_v1 }
  0xd0   : > { %v433_v41 = vpop.f32.mrf.mxu0  ;;  %v1249_v0 = vadd.f32 %v1217_v7, %v1183_v15  ;;  %3385 = vmatpush.msra.mxu3 %v3760_v63 }
  0xd1   : > { %v434_v26 = vadd.f32 %v3691_v46, %v433_v41  ;;  %v1184_v13 = vadd.f32 %v1152_v2, %v1118_v19  ;;  %v987_v41 = vadd.f32 %v955_v49, %v921_v21  ;;  %v988_v47 = vadd.f32 %v956_v25, %v922_v57 }
  0xd2   : > { %v4012_v4 = vadd.f32 %v3988_v27, %v1249_v0  ;;  %v825_v0 = vmul.f32 %v3817_v16, %v3962_v14  ;;  %v760_v14 = vmul.f32 %v3802_v12, %v3917_v18  ;;  %3386 = vmatpush.msra.mxu3 %v3774_v5 }
  0xd3   : > { %v4009_v35 = vmax.f32 %v434_v26, 0.0  ;;  %480 = vmatmul.f32.gmra.mxu0 %v370_v42  ;;  %v1250_v24 = vadd.f32 %v1218_v54, %v1184_v13  ;;  %v1053_v17 = vadd.f32 %v1021_v10, %v987_v41  ;;  %v759_v26 = vmul.f32 %v3802_v12, %v3850_v33 }
  0xd4   : > { %v4020_v23 = vld [vmem:[#allocation2 + $0x48] sm:$0xff]  ;;  %v1317_v7 = vmax.f32 %v4012_v4, 0.0  ;;  %v1054_v19 = vadd.f32 %v1022_v22, %v988_v47  ;;  %v792_v13 = vadd.f32 %v760_v14, %v694_v34  ;;  %v957_v47 = vmul.f32 %v3891_v62, %v3957_v1 }
  0xd5   : > { %552 = vst [vmem:[#allocation2 + $0x51] sm:$0xff] %v4009_v35  ;;  %v1087_v30 = vmul.f32 %v3915_v9, %v4020_v23  ;;  %v4035_v42 = vadd.f32 %v3988_v27, %v1250_v24  ;;  %v791_v33 = vadd.f32 %v759_v26, %v693_v32  ;;  %v891_v6 = vmul.f32 %v3848_v31, %v4020_v23  ;;  %v372_v24 = vld [vmem:[%s3578_s20 + $0xb8] sm:$0xff] }
  0xd6   : > { %1349 = vst [vmem:[#allocation2 + $0x19] sm:$0xff] %v1317_v7  ;;  %v1154_v57 = vmul.f32 %v3942_v51, %v4009_v35  ;;  %v762_v1 = vmul.f32 %v3802_v12, %v4009_v35 }
  0xd7   : > { %v1318_v53 = vmax.f32 %v4035_v42, 0.0  ;;  %v1119_v37 = vadd.f32 %v1087_v30, %v1053_v17  ;;  %v857_v54 = vadd.f32 %v825_v0, %v791_v33  ;;  %v826_v30 = vmul.f32 %v3817_v16, %v3998_v55 }
  0xd8   : > { %v436_v15 = vpop.f32.mrf.mxu0 }
  0xd9   : > { %v437_v44 = vadd.f32 %v3691_v46, %v436_v15  ;;  %1350 = vst [vmem:[#allocation2 + $0x21] sm:$0xff] %v1318_v53  ;;  %v1185_v25 = vadd.f32 %v1153_v60, %v1119_v37  ;;  %v923_v15 = vadd.f32 %v891_v6, %v857_v54  ;;  %v858_v55 = vadd.f32 %v826_v30, %v792_v13 }
  0xda   : > { %v958_v60 = vmul.f32 %v3891_v62, %v4009_v35  ;;  %v695_v13 = vmul.f32 %v3786_v8, %v4020_v23 }
  0xdb   : > { %v4047_v52 = vmax.f32 %v437_v44, 0.0  ;;  %483 = vmatmul.f32.gmra.mxu0 %v371_v36  ;;  %v989_v37 = vadd.f32 %v957_v47, %v923_v15 }
  0xdc   : > { %v4053_v2 = vld [vmem:[#allocation2 + $0x50] sm:$0xff]  ;;  %v793_v56 = vadd.f32 %v761_v50, %v695_v13 }
  0xdd   : > { %v4055_v3 = vld [vmem:[#allocation2 + $0x4a] sm:$0xff]  ;;  %553 = vst [vmem:[#allocation2 + $0x61] sm:$0xff] %v4047_v52  ;;  %v1088_v20 = vmul.f32 %v3915_v9, %v4053_v2  ;;  %v4072_v18 = vld [vmem:[#allocation2 + $0x52] sm:$0xff]  ;;  %v892_v36 = vmul.f32 %v3848_v31, %v4053_v2  ;;  %v696_v23 = vmul.f32 %v3786_v8, %v4053_v2  ;;  %v959_v61 = vmul.f32 %v3891_v62, %v4047_v52 }
  0xde   : > { %v1219_v38 = vmul.f32 %v3950_v58, %v4055_v3  ;;  %v1383_v21 = vld [vmem:[#allocation2 + $0x18] sm:$0xff]  ;;  %v1220_v32 = vmul.f32 %v3950_v58, %v4072_v18  ;;  %v1023_v26 = vmul.f32 %v3896_v29, %v4055_v3  ;;  %v1024_v48 = vmul.f32 %v3896_v29, %v4072_v18 }
  0xdf   : > { %v1120_v49 = vadd.f32 %v1088_v20, %v1054_v19  ;;  %1466 = vmatmul.f32.vlgmr.msra.gmra.mxu1 %v1383_v21  ;;  %1585 = vmatmul.f32.gmra.mxu2 %v1383_v21  ;;  %v924_v40 = vadd.f32 %v892_v36, %v858_v55  ;;  %v794_v55 = vadd.f32 %v762_v1, %v696_v23 }
  0xe0   : > { %v439_v10 = vpop.f32.mrf.mxu0  ;;  %v1251_v44 = vadd.f32 %v1219_v38, %v1185_v25  ;;  %v1384_v19 = vld [vmem:[#allocation2 + $0x20] sm:$0xff]  ;;  %v1055_v20 = vadd.f32 %v1023_v26, %v989_v37 }
  0xe1   : > { %v440_v39 = vadd.f32 %v3691_v46, %v439_v10  ;;  %v1186_v41 = vadd.f32 %v1154_v57, %v1120_v49  ;;  %v990_v21 = vadd.f32 %v958_v60, %v924_v40  ;;  %v1155_v57 = vmul.f32 %v3942_v51, %v4047_v52 }
  0xe2   : > { %v4094_v22 = vadd.f32 %v3988_v27, %v1251_v44  ;;  %v828_v40 = vmul.f32 %v3817_v16, %v4072_v18 }
  0xe3   : > { %v4087_v17 = vmax.f32 %v440_v39, 0.0  ;;  %486 = vmatmul.f32.gmra.mxu0 %v372_v24  ;;  %v1252_v0 = vadd.f32 %v1220_v32, %v1186_v41  ;;  %v1056_v25 = vadd.f32 %v1024_v48, %v990_v21 }
  0xe4   : > { %v4091_v34 = vld [vmem:[#allocation2 + $0x60] sm:$0xff]  ;;  %v1319_v6 = vmax.f32 %v4094_v22, 0.0  ;;  %v860_v21 = vadd.f32 %v828_v40, %v794_v55 }
  0xe5   : > { %554 = vst [vmem:[#allocation2 + $0x69] sm:$0xff] %v4087_v17  ;;  %v4099_v33 = vadd.f32 %v3988_v27, %v1252_v0  ;;  %v1089_v14 = vmul.f32 %v3915_v9, %v4091_v34  ;;  %v893_v2 = vmul.f32 %v3848_v31, %v4091_v34  ;;  %v1156_v32 = vmul.f32 %v3942_v51, %v4087_v17 }
  0xe6   : > { %1351 = vst [vmem:[#allocation2 + $0x31] sm:$0xff] %v1319_v6  ;;  %v697_v5 = vmul.f32 %v3786_v8, %v4091_v34 }
  0xe7   : > { %v1320_v43 = vmax.f32 %v4099_v33, 0.0  ;;  %1469 = vmatmul.f32.gmra.mxu1 %v1384_v19  ;;  %1588 = vmatmul.f32.gmra.mxu2 %v1384_v19  ;;  %v1121_v45 = vadd.f32 %v1089_v14, %v1055_v20 }
  0xe8   : > { %v442_v38 = vpop.f32.mrf.mxu0 }
  0xe9   : > { %v443_v54 = vadd.f32 %v3691_v46, %v442_v38  ;;  %1352 = vst [vmem:[#allocation2 + $0x39] sm:$0xff] %v1320_v43  ;;  %v1187_v30 = vadd.f32 %v1155_v57, %v1121_v45 }
  0xeb   : > { %v4117_v49 = vmax.f32 %v443_v54, 0.0  ;;  %1907 = vmatmul.f32.vlgmr.msrb.gmra.mxu0 %v3797_v11  ;;  %v827_v11 = vmul.f32 %v3817_v16, %v4055_v3 }
  0xec   : > { %v4124_v10 = vld [vmem:[#allocation2 + $0x68] sm:$0xff] }
  0xed   : > { %v4126_v24 = vld [vmem:[#allocation2 + $0x62] sm:$0xff]  ;;  %555 = vst [vmem:[#allocation2 + $0x79] sm:$0xff] %v4117_v49  ;;  %v1090_v15 = vmul.f32 %v3915_v9, %v4124_v10  ;;  %v4145_v3 = vld [vmem:[#allocation2 + $0x6a] sm:$0xff]  ;;  %v859_v26 = vadd.f32 %v827_v11, %v793_v56  ;;  %v894_v19 = vmul.f32 %v3848_v31, %v4124_v10  ;;  %v960_v11 = vmul.f32 %v3891_v62, %v4087_v17 }
  0xee   : > { %v1221_v39 = vmul.f32 %v3950_v58, %v4126_v24  ;;  %v1385_v36 = vld [vmem:[#allocation2 + $0x30] sm:$0xff]  ;;  %v1222_v35 = vmul.f32 %v3950_v58, %v4145_v3  ;;  %v1025_v18 = vmul.f32 %v3896_v29, %v4126_v24  ;;  %v763_v56 = vmul.f32 %v3802_v12, %v4047_v52 }
  0xef   : > { %v1122_v41 = vadd.f32 %v1090_v15, %v1056_v25  ;;  %1472 = vmatmul.f32.gmra.mxu1 %v1385_v36  ;;  %1591 = vmatmul.f32.gmra.mxu2 %v1385_v36  ;;  %v925_v14 = vadd.f32 %v893_v2, %v859_v26  ;;  %v926_v13 = vadd.f32 %v894_v19, %v860_v21 }
  0xf0   : > { %v1253_v44 = vadd.f32 %v1221_v39, %v1187_v30  ;;  %v445_v47 = vpop.f32.mrf.mxu0  ;;  %v1386_v45 = vld [vmem:[#allocation2 + $0x38] sm:$0xff]  ;;  %v698_v1 = vmul.f32 %v3786_v8, %v4124_v10  ;;  %v829_v2 = vmul.f32 %v3817_v16, %v4126_v24  ;;  %v1026_v34 = vmul.f32 %v3896_v29, %v4145_v3 }
  0xf1   : > { %v1188_v59 = vadd.f32 %v1156_v32, %v1122_v41  ;;  %v446_v37 = vadd.f32 %v3691_v46, %v445_v47  ;;  %v991_v63 = vadd.f32 %v959_v61, %v925_v14  ;;  %v992_v15 = vadd.f32 %v960_v11, %v926_v13 }
  0xf2   : > { %v4152_v0 = vadd.f32 %v3988_v27, %v1253_v44  ;;  %v1157_v4 = vmul.f32 %v3942_v51, %v4117_v49  ;;  %v795_v32 = vadd.f32 %v763_v56, %v697_v5  ;;  %v764_v52 = vmul.f32 %v3802_v12, %v4087_v17 }
  0xf3   : > { %1910 = vmatmul.f32.gmra.mxu0 %v3842_v28  ;;  %v1254_v60 = vadd.f32 %v1222_v35, %v1188_v59  ;;  %v4162_v38 = vmax.f32 %v446_v37, 0.0  ;;  %v1057_v25 = vadd.f32 %v1025_v18, %v991_v63  ;;  %v1058_v44 = vadd.f32 %v1026_v34, %v992_v15 }
  0xf4   : > { %v1321_v20 = vmax.f32 %v4152_v0, 0.0  ;;  %v4165_v54 = vld [vmem:[#allocation2 + $0x78] sm:$0xff]  ;;  %v796_v59 = vadd.f32 %v764_v52, %v698_v1  ;;  %v861_v35 = vadd.f32 %v829_v2, %v795_v32 }
  0xf5   : > { %v4172_v28 = vadd.f32 %v3988_v27, %v1254_v60  ;;  %556 = vst [vmem:[#allocation2 + $0x81] sm:$0xff] %v4162_v38  ;;  %v1091_v57 = vmul.f32 %v3915_v9, %v4165_v54  ;;  %v895_v10 = vmul.f32 %v3848_v31, %v4165_v54  ;;  %v1158_v17 = vmul.f32 %v3942_v51, %v4162_v38 }
  0xf6   : > { %1353 = vst [vmem:[#allocation2 + $0x49] sm:$0xff] %v1321_v20  ;;  %v830_v60 = vmul.f32 %v3817_v16, %v4145_v3  ;;  %v961_v3 = vmul.f32 %v3891_v62, %v4117_v49  ;;  %v962_v1 = vmul.f32 %v3891_v62, %v4162_v38  ;;  %v699_v34 = vmul.f32 %v3786_v8, %v4165_v54 }
  0xf7   : > { %v1322_v48 = vmax.f32 %v4172_v28, 0.0  ;;  %1475 = vmatmul.f32.gmra.mxu1 %v1386_v45  ;;  %1594 = vmatmul.f32.gmra.mxu2 %v1386_v45  ;;  %v1123_v39 = vadd.f32 %v1091_v57, %v1057_v25  ;;  %v927_v21 = vadd.f32 %v895_v10, %v861_v35 }
  0xf8   : > { %v448_v50 = vpop.f32.mrf.mxu0 }
  0xf9   : > { %v449_v23 = vadd.f32 %v3691_v46, %v448_v50  ;;  %1354 = vst [vmem:[#allocation2 + $0x51] sm:$0xff] %v1322_v48  ;;  %v1189_v24 = vadd.f32 %v1157_v4, %v1123_v39  ;;  %v862_v50 = vadd.f32 %v830_v60, %v796_v59 }
  0xfb   : > { %v4188_v30 = vmax.f32 %v449_v23, 0.0  ;;  %1913 = vmatmul.f32.gmra.mxu0 %v1317_v7 }
  0xfc   : > { %v590_v7 = vld [vmem:[#allocation2 + $0x80] sm:$0xff] }
  0xfd   : > { %557 = vst [vmem:[#allocation2 + $0x91] sm:$0xff] %v4188_v30  ;;  %v1387_v36 = vld [vmem:[#allocation2 + $0x48] sm:$0xff]  ;;  %v661_v41 = vld [vmem:[#allocation2 + $0x7a] sm:$0xff]  ;;  %v1092_v47 = vmul.f32 %v3915_v9, %v590_v7  ;;  %v896_v61 = vmul.f32 %v3848_v31, %v590_v7 }
  0xfe   : > { %v1223_v55 = vmul.f32 %v3950_v58, %v661_v41  ;;  %v4209_v37 = vld [vmem:[#allocation2 + $0x82] sm:$0xff]  ;;  %v1027_v23 = vmul.f32 %v3896_v29, %v661_v41 }
  0xff   : > { %1478 = vmatmul.f32.gmra.mxu1 %v1387_v36  ;;  %1597 = vmatmul.f32.gmra.mxu2 %v1387_v36  ;;  %v1124_v40 = vadd.f32 %v1092_v47, %v1058_v44  ;;  %v1224_v45 = vmul.f32 %v3950_v58, %v4209_v37  ;;  %v928_v25 = vadd.f32 %v896_v61, %v862_v50 }
 0x100   : > { %v451_v26 = vpop.f32.mrf.mxu0  ;;  %v1255_v14 = vadd.f32 %v1223_v55, %v1189_v24  ;;  %v1388_v15 = vld [vmem:[#allocation2 + $0x50] sm:$0xff]  ;;  %v765_v44 = vmul.f32 %v3802_v12, %v4117_v49  ;;  %v700_v24 = vmul.f32 %v3786_v8, %v590_v7  ;;  %v831_v47 = vmul.f32 %v3817_v16, %v661_v41 }
 0x101   : > { %v452_v19 = vadd.f32 %v3691_v46, %v451_v26  ;;  %v1190_v18 = vadd.f32 %v1158_v17, %v1124_v40  ;;  %v994_v32 = vadd.f32 %v962_v1, %v928_v25  ;;  %v1028_v54 = vmul.f32 %v3896_v29, %v4209_v37 }
 0x102   : > { %v4222_v63 = vadd.f32 %v3988_v27, %v1255_v14  ;;  %v1159_v55 = vmul.f32 %v3942_v51, %v4188_v30  ;;  %v797_v22 = vadd.f32 %v765_v44, %v699_v34  ;;  %v832_v50 = vmul.f32 %v3817_v16, %v4209_v37  ;;  %v4298_v44 = vpop.f32.mrf.mxu3 }
 0x103   : > { %1916 = vmatmul.f32.gmra.mxu0 %v1318_v53  ;;  %v4226_v57 = vmax.f32 %v452_v19, 0.0  ;;  %v1256_v11 = vadd.f32 %v1224_v45, %v1190_v18  ;;  %v993_v53 = vadd.f32 %v961_v3, %v927_v21  ;;  %v1060_v7 = vadd.f32 %v1028_v54, %v994_v32 }
 0x104   : > { %v4224_v13 = vld [vmem:[#allocation2 + $0x90] sm:$0xff]  ;;  %v1323_v42 = vmax.f32 %v4222_v63, 0.0  ;;  %v863_v19 = vadd.f32 %v831_v47, %v797_v22 }
 0x105   : > { %558 = vst [vmem:[#allocation2 + $0x99] sm:$0xff] %v4226_v57  ;;  %v1093_v5 = vmul.f32 %v3915_v9, %v4224_v13  ;;  %v4236_v39 = vadd.f32 %v3988_v27, %v1256_v11  ;;  %v1059_v2 = vadd.f32 %v1027_v23, %v993_v53  ;;  %v897_v49 = vmul.f32 %v3848_v31, %v4224_v13 }
 0x106   : > { %1355 = vst [vmem:[#allocation2 + $0x61] sm:$0xff] %v1323_v42 }
 0x107   : > { %1481 = vmatmul.f32.gmra.mxu1 %v1388_v15  ;;  %1600 = vmatmul.f32.gmra.mxu2 %v1388_v15  ;;  %v1324_v4 = vmax.f32 %v4236_v39, 0.0  ;;  %v1125_v52 = vadd.f32 %v1093_v5, %v1059_v2  ;;  %v929_v3 = vadd.f32 %v897_v49, %v863_v19 }
 0x108   : > { %v454_v56 = vpop.f32.mrf.mxu0 }
 0x109   : > { %v455_v36 = vadd.f32 %v3691_v46, %v454_v56  ;;  %1356 = vst [vmem:[#allocation2 + $0x69] sm:$0xff] %v1324_v4  ;;  %v1191_v41 = vadd.f32 %v1159_v55, %v1125_v52  ;;  %v963_v56 = vmul.f32 %v3891_v62, %v4188_v30 }
 0x10b   : > { %v4246_v10 = vmax.f32 %v455_v36, 0.0  ;;  %1919 = vmatmul.f32.gmra.mxu0 %v1319_v6  ;;  %v766_v6 = vmul.f32 %v3802_v12, %v4162_v38  ;;  %v1160_v38 = vmul.f32 %v3942_v51, %v4226_v57  ;;  %v995_v34 = vadd.f32 %v963_v56, %v929_v3  ;;  %v493_v3 = vpop.f32.mrf.mxu3 }
 0x10c   : > { %v592_v26 = vld [vmem:[#allocation2 + $0x98] sm:$0xff] }
 0x10d   : > { %v663_v59 = vld [vmem:[#allocation2 + $0x92] sm:$0xff]  ;;  %559 = vst [vmem:[#allocation2 + $0xa9] sm:$0xff] %v4246_v10  ;;  %v1094_v35 = vmul.f32 %v3915_v9, %v592_v26  ;;  %v1389_v17 = vld [vmem:[#allocation2 + $0x60] sm:$0xff]  ;;  %v798_v14 = vadd.f32 %v766_v6, %v700_v24  ;;  %v898_v23 = vmul.f32 %v3848_v31, %v592_v26  ;;  %v964_v24 = vmul.f32 %v3891_v62, %v4226_v57 }
 0x10e   : > { %v1225_v40 = vmul.f32 %v3950_v58, %v663_v59  ;;  %v4267_v60 = vld [vmem:[#allocation2 + $0x9a] sm:$0xff]  ;;  %v1029_v37 = vmul.f32 %v3896_v29, %v663_v59  ;;  %v833_v19 = vmul.f32 %v3817_v16, %v663_v59 }
 0x10f   : > { %1484 = vmatmul.f32.gmra.mxu1 %v1389_v17  ;;  %v1126_v61 = vadd.f32 %v1094_v35, %v1060_v7  ;;  %1603 = vmatmul.f32.gmra.mxu2 %v1389_v17  ;;  %v1226_v53 = vmul.f32 %v3950_v58, %v4267_v60  ;;  %v864_v15 = vadd.f32 %v832_v50, %v798_v14 }
 0x110   : > { %v457_v21 = vpop.f32.mrf.mxu0  ;;  %v1257_v18 = vadd.f32 %v1225_v40, %v1191_v41  ;;  %v1061_v47 = vadd.f32 %v1029_v37, %v995_v34  ;;  %v701_v7 = vmul.f32 %v3786_v8, %v4224_v13  ;;  %v702_v41 = vmul.f32 %v3786_v8, %v592_v26 }
 0x111   : > { %v458_v45 = vadd.f32 %v3691_v46, %v457_v21  ;;  %v1192_v11 = vadd.f32 %v1160_v38, %v1126_v61  ;;  %v930_v32 = vadd.f32 %v898_v23, %v864_v15  ;;  %v1030_v40 = vmul.f32 %v3896_v29, %v4267_v60 }
 0x112   : > { %v4278_v25 = vadd.f32 %v3988_v27, %v1257_v18  ;;  %v767_v13 = vmul.f32 %v3802_v12, %v4188_v30  ;;  %v768_v26 = vmul.f32 %v3802_v12, %v4226_v57 }
 0x113   : > { %v4280_v5 = vmax.f32 %v458_v45, 0.0  ;;  %1922 = vmatmul.f32.gmra.mxu0 %v1320_v43  ;;  %v1258_v2 = vadd.f32 %v1226_v53, %v1192_v11  ;;  %v1390_v43 = vld [vmem:[#allocation2 + $0x68] sm:$0xff]  ;;  %v996_v6 = vadd.f32 %v964_v24, %v930_v32  ;;  %v834_v53 = vmul.f32 %v3817_v16, %v4267_v60  ;;  %v4339_v32 = vld [vmem:[%s6342_s2] ss:$0 sm:$0xff] }
 0x114   : > { %v4287_v1 = vld [vmem:[#allocation2 + $0xa8] sm:$0xff]  ;;  %v1325_v36 = vmax.f32 %v4278_v25, 0.0  ;;  %v799_v18 = vadd.f32 %v767_v13, %v701_v7  ;;  %v800_v45 = vadd.f32 %v768_v26, %v702_v41 }
 0x115   : > { %560 = vst [vmem:[#allocation2 + $0xb1] sm:$0xff] %v4280_v5  ;;  %v1095_v52 = vmul.f32 %v3915_v9, %v4287_v1  ;;  %v4294_v33 = vadd.f32 %v3988_v27, %v1258_v2  ;;  %v1062_v0 = vadd.f32 %v1030_v40, %v996_v6  ;;  %v899_v30 = vmul.f32 %v3848_v31, %v4287_v1 }
 0x116   : > { %1357 = vst [vmem:[#allocation2 + $0x79] sm:$0xff] %v1325_v36  ;;  %v1162_v57 = vmul.f32 %v3942_v51, %v4280_v5  ;;  %v865_v15 = vadd.f32 %v833_v19, %v799_v18  ;;  %v965_v6 = vmul.f32 %v3891_v62, %v4246_v10 }
 0x117   : > { %1487 = vmatmul.f32.gmra.mxu1 %v1390_v43  ;;  %v1326_v55 = vmax.f32 %v4294_v33, 0.0  ;;  %1606 = vmatmul.f32.gmra.mxu2 %v1390_v43  ;;  %v1127_v49 = vadd.f32 %v1095_v52, %v1061_v47  ;;  %v866_v43 = vadd.f32 %v834_v53, %v800_v45  ;;  %v4388_v53 = vld [vmem:[%s6343_s3] ss:$0 sm:$0xff] }
 0x118   : > { %v460_v54 = vpop.f32.mrf.mxu0  ;;  %v931_v60 = vadd.f32 %v899_v30, %v865_v15  ;;  %v494_v30 = vadd.f32 %v4339_v32, %v493_v3 }
 0x119   : > { %v461_v22 = vadd.f32 %v3691_v46, %v460_v54  ;;  %1358 = vst [vmem:[#allocation2 + $0x81] sm:$0xff] %v1326_v55  ;;  %v1161_v46 = vmul.f32 %v3942_v51, %v4246_v10 }
 0x11a   : > { %v997_v13 = vadd.f32 %v965_v6, %v931_v60  ;;  %v4404_v60 = vld [vmem:[%s6343_s3 + $0x1] ss:$0 sm:$0xff] }
 0x11b   : > { %v4309_v35 = vmax.f32 %v461_v22, 0.0  ;;  %1925 = vmatmul.f32.gmra.mxu0 %v1321_v20  ;;  %v1193_v20 = vadd.f32 %v1161_v46, %v1127_v49  ;;  %v703_v22 = vmul.f32 %v3786_v8, %v4287_v1  ;;  %v770_v1 = vmul.f32 %v3802_v12, %v4280_v5 }
 0x11c   : > { %v594_v17 = vld [vmem:[#allocation2 + $0xb0] sm:$0xff] }
 0x11d   : > { %v665_v14 = vld [vmem:[#allocation2 + $0xaa] sm:$0xff]  ;;  %561 = vst [vmem:[#allocation2 + $0xc1] sm:$0xff] %v4309_v35  ;;  %v1096_v21 = vmul.f32 %v3915_v9, %v594_v17  ;;  %v1391_v38 = vld [vmem:[#allocation2 + $0x78] sm:$0xff]  ;;  %v900_v56 = vmul.f32 %v3848_v31, %v594_v17  ;;  %v704_v7 = vmul.f32 %v3786_v8, %v594_v17  ;;  %v966_v8 = vmul.f32 %v3891_v62, %v4280_v5 }
 0x11e   : > { %v1227_v61 = vmul.f32 %v3950_v58, %v665_v14  ;;  %v666_v50 = vld [vmem:[#allocation2 + $0xb2] sm:$0xff]  ;;  %v1031_v40 = vmul.f32 %v3896_v29, %v665_v14 }
 0x11f   : > { %v1128_v23 = vadd.f32 %v1096_v21, %v1062_v0  ;;  %1490 = vmatmul.f32.gmra.mxu1 %v1391_v38  ;;  %1609 = vmatmul.f32.gmra.mxu2 %v1391_v38  ;;  %v1228_v2 = vmul.f32 %v3950_v58, %v666_v50  ;;  %v932_v41 = vadd.f32 %v900_v56, %v866_v43 }
 0x120   : > { %v1259_v59 = vadd.f32 %v1227_v61, %v1193_v20  ;;  %v463_v11 = vpop.f32.mrf.mxu0  ;;  %v1392_v46 = vld [vmem:[#allocation2 + $0x80] sm:$0xff]  ;;  %v835_v0 = vmul.f32 %v3817_v16, %v665_v14  ;;  %v4369_v20 = vpop.f32.mrf.mxu3  ;;  %v802_v61 = vadd.f32 %v770_v1, %v704_v7  ;;  %v1063_v5 = vadd.f32 %v1031_v40, %v997_v13 }
 0x121   : > { %v1194_v37 = vadd.f32 %v1162_v57, %v1128_v23  ;;  %v464_v52 = vadd.f32 %v4339_v32, %v463_v11  ;;  %v998_v38 = vadd.f32 %v966_v8, %v932_v41  ;;  %v491_v14 = vadd.f32 %v4339_v32, %v4298_v44  ;;  %v4417_v1 = vld [vmem:[%s6343_s3 + $0x2] ss:$0 sm:$0xff] }
 0x122   : > { %v4334_v34 = vadd.f32 %v3988_v27, %v1259_v59  ;;  %v836_v23 = vmul.f32 %v3817_v16, %v666_v50  ;;  %v1032_v57 = vmul.f32 %v3896_v29, %v666_v50  ;;  %v771_v59 = vmul.f32 %v3802_v12, %v4309_v35 }
 0x123   : > { %1928 = vmatmul.f32.gmra.mxu0 %v1322_v48  ;;  %v1260_v24 = vadd.f32 %v1228_v2, %v1194_v37  ;;  %v4345_v54 = vmax.f32 %v464_v52, 0.0  ;;  %v769_v48 = vmul.f32 %v3802_v12, %v4246_v10  ;;  %v967_v44 = vmul.f32 %v3891_v62, %v4309_v35 }
 0x124   : > { %v1327_v47 = vmax.f32 %v4334_v34, 0.0  ;;  %v595_v49 = vld [vmem:[#allocation2 + $0xc0] sm:$0xff]  ;;  %v4394_v3 = vmax.f32 %v491_v14, 0.0  ;;  %v868_v50 = vadd.f32 %v836_v23, %v802_v61  ;;  %v1064_v15 = vadd.f32 %v1032_v57, %v998_v38 }
 0x125   : > { %v4354_v28 = vadd.f32 %v3988_v27, %v1260_v24  ;;  %562 = vst [vmem:[#allocation2 + $0xc9] sm:$0xff] %v4345_v54  ;;  %v1097_v26 = vmul.f32 %v3915_v9, %v595_v49  ;;  %v801_v21 = vadd.f32 %v769_v48, %v703_v22  ;;  %v901_v18 = vmul.f32 %v3848_v31, %v595_v49 }
 0x126   : > { %1359 = vst [vmem:[#allocation2 + $0x91] sm:$0xff] %v1327_v47  ;;  %v705_v63 = vmul.f32 %v4388_v53, %v595_v49  ;;  %v1163_v12 = vmul.f32 %v3942_v51, %v4309_v35  ;;  %v4398_v2 = vmax.f32 %v494_v30, 0.0  ;;  %v772_v24 = vmul.f32 %v4404_v60, %v4345_v54 }
 0x127   : > { %v6353_v17 = vmax.f32 %v4354_v28, 0.0  ;;  %1493 = vmatmul.f32.gmra.mxu1 %v1392_v46  ;;  %1612 = vmatmul.f32.gmra.mxu2 %v1392_v46  ;;  %v1129_v11 = vadd.f32 %v1097_v26, %v1063_v5  ;;  %571 = vst [vmem:[#allocation2 + $0x139] sm:$0xff] %v4394_v3  ;;  %v968_v6 = vmul.f32 %v3891_v62, %v4345_v54 }
 0x128   : > { %v466_v19 = vpop.f32.mrf.mxu0  ;;  %v803_v40 = vadd.f32 %v771_v59, %v705_v63  ;;  %v1164_v13 = vmul.f32 %v3942_v51, %v4345_v54  ;;  %572 = vst [vmem:[#allocation2 + $0x141] sm:$0xff] %v4398_v2  ;;  %v499_v54 = vpop.f32.mrf.mxu3 }
 0x129   : > { %v467_v10 = vadd.f32 %v4339_v32, %v466_v19  ;;  %1360 = vst [vmem:[#allocation2 + $0x99] sm:$0xff] %v6353_v17  ;;  %v1195_v35 = vadd.f32 %v1163_v12, %v1129_v11  ;;  %v4439_v11 = vld [vmem:[%s6343_s3 + $0x3] ss:$0 sm:$0xff] }
 0x12b   : > { %v4374_v45 = vmax.f32 %v467_v10, 0.0  ;;  %1931 = vmatmul.f32.gmra.mxu0 %v1323_v42  ;;  %v867_v42 = vadd.f32 %v835_v0, %v801_v21 }
 0x12c   : > { %v596_v56 = vld [vmem:[#allocation2 + $0xc8] sm:$0xff] }
 0x12d   : > { %563 = vst [vmem:[#allocation2 + $0xd9] sm:$0xff] %v4374_v45  ;;  %v1393_v16 = vld [vmem:[#allocation2 + $0x90] sm:$0xff]  ;;  %v667_v37 = vld [vmem:[#allocation2 + $0xc2] sm:$0xff]  ;;  %v933_v52 = vadd.f32 %v901_v18, %v867_v42  ;;  %v706_v43 = vmul.f32 %v4388_v53, %v596_v56  ;;  %v902_v22 = vmul.f32 %v3848_v31, %v596_v56  ;;  %v1098_v49 = vmul.f32 %v3915_v9, %v596_v56 }
 0x12e   : > { %v1229_v7 = vmul.f32 %v3950_v58, %v667_v37  ;;  %v668_v48 = vld [vmem:[#allocation2 + $0xca] sm:$0xff]  ;;  %v837_v31 = vmul.f32 %v4417_v1, %v667_v37  ;;  %v1033_v8 = vmul.f32 %v3896_v29, %v667_v37  ;;  %v773_v61 = vmul.f32 %v4404_v60, %v4374_v45 }
 0x12f   : > { %1496 = vmatmul.f32.gmra.mxu1 %v1393_v16  ;;  %v934_v46 = vadd.f32 %v902_v22, %v868_v50  ;;  %1615 = vmatmul.f32.gmra.mxu2 %v1393_v16  ;;  %v1130_v26 = vadd.f32 %v1098_v49, %v1064_v15  ;;  %v999_v10 = vadd.f32 %v967_v44, %v933_v52  ;;  %v4460_v22 = vld [vmem:[#allocation2 + $0x13a] sm:$0xff] }
 0x130   : > { %v469_v41 = vpop.f32.mrf.mxu0  ;;  %v1261_v19 = vadd.f32 %v1229_v7, %v1195_v35  ;;  %v804_v21 = vadd.f32 %v772_v24, %v706_v43  ;;  %v969_v38 = vmul.f32 %v3891_v62, %v4374_v45  ;;  %v1230_v18 = vmul.f32 %v3950_v58, %v668_v48  ;;  %v1394_v12 = vld [vmem:[#allocation2 + $0x98] sm:$0xff]  ;;  %v4462_v35 = vld [vmem:[#allocation2 + $0x142] sm:$0xff] }
 0x131   : > { %v470_v0 = vadd.f32 %v4339_v32, %v469_v41  ;;  %v1196_v5 = vadd.f32 %v1164_v13, %v1130_v26  ;;  %v838_v57 = vmul.f32 %v4417_v1, %v668_v48  ;;  %v1000_v59 = vadd.f32 %v968_v6, %v934_v46  ;;  %v4471_v41 = vld [vmem:[%s6343_s3 + $0x4] ss:$0 sm:$0xff] }
 0x132   : > { %v4433_v14 = vadd.f32 %v3988_v27, %v1261_v19  ;;  %v869_v63 = vadd.f32 %v837_v31, %v803_v40  ;;  %v1065_v42 = vadd.f32 %v1033_v8, %v999_v10  ;;  %v1034_v16 = vmul.f32 %v3896_v29, %v668_v48 }
 0x133   : > { %1934 = vmatmul.f32.gmra.mxu0 %v1324_v4  ;;  %v531_v23 = vmax.f32 %v470_v0, 0.0  ;;  %v1262_v4 = vadd.f32 %v1230_v18, %v1196_v5  ;;  %v870_v44 = vadd.f32 %v838_v57, %v804_v21  ;;  %v1165_v15 = vmul.f32 %v3942_v51, %v4374_v45  ;;  %v4458_v45 = vld [vmem:[#allocation2 + $0x140] sm:$0xff] }
 0x134   : > { %v597_v30 = vld [vmem:[#allocation2 + $0xd8] sm:$0xff]  ;;  %v6352_v58 = vmax.f32 %v4433_v14, 0.0  ;;  %v1066_v43 = vadd.f32 %v1034_v16, %v1000_v59  ;;  %v4455_v29 = vmul.f32 %v4404_v60, %v4394_v3  ;;  %v782_v6 = vmul.f32 %v4404_v60, %v4398_v2  ;;  %v4502_v59 = vld [vmem:[%s6343_s3 + $0x5] ss:$0 sm:$0xff] }
 0x135   : > { %v903_v62 = vmul.f32 %v4439_v11, %v597_v30  ;;  %v1099_v39 = vmul.f32 %v3915_v9, %v597_v30  ;;  %564 = vst [vmem:[#allocation2 + $0xe1] sm:$0xff] %v531_v23  ;;  %v707_v50 = vmul.f32 %v4388_v53, %v597_v30  ;;  %v4449_v56 = vadd.f32 %v3988_v27, %v1262_v4  ;;  %v4514_v4 = vld [vmem:[%s6343_s3 + $0x8] ss:$0 sm:$0xff] }
 0x136   : > { %1361 = vst [vmem:[#allocation2 + $0xa9] sm:$0xff] %v6352_v58  ;;  %v774_v7 = vmul.f32 %v4404_v60, %v531_v23  ;;  %v970_v40 = vmul.f32 %v4471_v41, %v531_v23  ;;  %v716_v48 = vmul.f32 %v4388_v53, %v4458_v45  ;;  %v1166_v46 = vmul.f32 %v3942_v51, %v531_v23 }
 0x137   : > { %v935_v9 = vadd.f32 %v903_v62, %v869_v63  ;;  %v1131_v37 = vadd.f32 %v1099_v39, %v1065_v42  ;;  %1499 = vmatmul.f32.gmra.mxu1 %v1394_v12  ;;  %1618 = vmatmul.f32.gmra.mxu2 %v1394_v12  ;;  %v6349_v49 = vmax.f32 %v4449_v56, 0.0  ;;  %v805_v31 = vadd.f32 %v773_v61, %v707_v50  ;;  %v4520_v42 = vld [vmem:[%s6343_s3 + $0x7] ss:$0 sm:$0xff] }
 0x138   : > { %v472_v52 = vpop.f32.mrf.mxu0  ;;  %v497_v8 = vadd.f32 %v4339_v32, %v4369_v20  ;;  %v4485_v0 = vmul.f32 %v4417_v1, %v4460_v22  ;;  %v848_v10 = vmul.f32 %v4417_v1, %v4462_v35  ;;  %v500_v5 = vadd.f32 %v4339_v32, %v499_v54  ;;  %v4508_v54 = vld [vmem:[%s6343_s3 + $0x6] ss:$0 sm:$0xff] }
 0x139   : > { %v473_v24 = vadd.f32 %v4339_v32, %v472_v52  ;;  %1362 = vst [vmem:[#allocation2 + $0xb1] sm:$0xff] %v6349_v49  ;;  %v1001_v26 = vadd.f32 %v969_v38, %v935_v9  ;;  %v1197_v19 = vadd.f32 %v1165_v15, %v1131_v37  ;;  %v502_v38 = vpop.f32.mrf.mxu3 }
 0x13a   : > { %v540_v20 = vmax.f32 %v497_v8, 0.0 }
 0x13b   : > { %v532_v13 = vmax.f32 %v473_v24, 0.0  ;;  %1937 = vmatmul.f32.gmra.mxu0 %v1325_v36  ;;  %v814_v36 = vadd.f32 %v782_v6, %v716_v48 }
 0x13c   : > { %v598_v51 = vld [vmem:[#allocation2 + $0xe0] sm:$0xff]  ;;  %573 = vst [vmem:[#allocation2 + $0x151] sm:$0xff] %v540_v20 }
 0x13d   : > { %v669_v21 = vld [vmem:[#allocation2 + $0xda] sm:$0xff]  ;;  %v670_v61 = vld [vmem:[#allocation2 + $0xe2] sm:$0xff]  ;;  %565 = vst [vmem:[#allocation2 + $0xf1] sm:$0xff] %v532_v13  ;;  %v4490_v25 = vmul.f32 %v4404_v60, %v532_v13  ;;  %v708_v18 = vmul.f32 %v4388_v53, %v598_v51  ;;  %v904_v23 = vmul.f32 %v4439_v11, %v598_v51  ;;  %v4497_v57 = vmul.f32 %v4471_v41, %v532_v13 }
 0x13e   : > { %v839_v30 = vmul.f32 %v4417_v1, %v669_v21  ;;  %v1035_v62 = vmul.f32 %v4502_v59, %v669_v21  ;;  %v1100_v39 = vmul.f32 %v4508_v54, %v598_v51  ;;  %v1231_v63 = vmul.f32 %v4514_v4, %v669_v21  ;;  %v1395_v50 = vld [vmem:[#allocation2 + $0xa8] sm:$0xff] }
 0x13f   : > { %v4523_v16 = vmul.f32 %v4520_v42, %v532_v13  ;;  %v806_v15 = vadd.f32 %v774_v7, %v708_v18  ;;  %v840_v12 = vmul.f32 %v4417_v1, %v670_v61  ;;  %v936_v9 = vadd.f32 %v904_v23, %v870_v44  ;;  %1502 = vmatmul.f32.gmra.mxu1 %v1395_v50 }
 0x140   : > { %v1036_v37 = vmul.f32 %v4502_v59, %v670_v61  ;;  %v475_v52 = vpop.f32.mrf.mxu0  ;;  %v1132_v24 = vadd.f32 %v1100_v39, %v1066_v43  ;;  %v1232_v6 = vmul.f32 %v4514_v4, %v670_v61  ;;  %v1263_v48 = vadd.f32 %v1231_v63, %v1197_v19  ;;  %1621 = vmatmul.f32.gmra.mxu2 %v1395_v50 }
 0x141   : > { %v871_v8 = vadd.f32 %v839_v30, %v805_v31  ;;  %v1002_v51 = vadd.f32 %v970_v40, %v936_v9  ;;  %v1067_v21 = vadd.f32 %v1035_v62, %v1001_v26  ;;  %v4528_v13 = vadd.f32 %v848_v10, %v814_v36  ;;  %v505_v50 = vpop.f32.mrf.mxu3 }
 0x142   : > { %v476_v49 = vadd.f32 %v4339_v32, %v475_v52  ;;  %v4531_v7 = vadd.f32 %v840_v12, %v806_v15  ;;  %v1198_v18 = vadd.f32 %v1166_v46, %v1132_v24  ;;  %v4534_v44 = vadd.f32 %v3988_v27, %v1263_v48  ;;  %v4575_v15 = vld [vmem:[#allocation2 + $0x138] sm:$0xff] }
 0x143   : > { %1940 = vmatmul.f32.gmra.mxu0 %v1326_v55  ;;  %v4539_v43 = vmul.f32 %v4404_v60, %v540_v20  ;;  %v4542_v40 = vmul.f32 %v4471_v41, %v540_v20  ;;  %v4544_v26 = vmax.f32 %v500_v5, 0.0  ;;  %v503_v10 = vadd.f32 %v4339_v32, %v502_v38  ;;  %v607_v30 = vld [vmem:[#allocation2 + $0x150] sm:$0xff]  ;;  %v4562_v38 = vld [vmem:[%s6344_s4] ss:$0 sm:$0xff] }
 0x144   : > { %v599_v31 = vld [vmem:[#allocation2 + $0xf0] sm:$0xff]  ;;  %v533_v19 = vmax.f32 %v476_v49, 0.0  ;;  %v1264_v61 = vadd.f32 %v1232_v6, %v1198_v18  ;;  %v6351_v46 = vmax.f32 %v4534_v44, 0.0  ;;  %v4550_v55 = vadd.f32 %v1036_v37, %v1002_v51  ;;  %v3270_v18 = vld [vmem:[%s6345_s5 + $0x278] sm:$0xff] }
 0x145   : > { %6367 = vst [vmem:[#allocation3_spill] sm:$0xff] %v4539_v43  ;;  %v709_v27 = vmul.f32 %v4388_v53, %v599_v31  ;;  %v905_v33 = vmul.f32 %v4439_v11, %v599_v31  ;;  %v1101_v36 = vmul.f32 %v4508_v54, %v599_v31  ;;  %v4557_v5 = vmul.f32 %v4520_v42, %v540_v20  ;;  %v1396_v20 = vld [vmem:[#allocation2 + $0xb0] sm:$0xff] }
 0x146   : > { %566 = vst [vmem:[#allocation2 + $0xf9] sm:$0xff] %v533_v19  ;;  %v4554_v49 = vmul.f32 %v4404_v60, %v533_v19  ;;  %v4565_v23 = vadd.f32 %v4562_v38, %v1264_v61  ;;  %v4570_v39 = vmul.f32 %v4471_v41, %v533_v19  ;;  %v4573_v63 = vmul.f32 %v4520_v42, %v533_v19  ;;  %v3269_v19 = vld [vmem:[%s6345_s5 + $0x270] sm:$0xff] }
 0x147   : > { %6368 = vst [vmem:[#allocation4_spill] sm:$0xff] %v4557_v5  ;;  %v937_v62 = vadd.f32 %v905_v33, %v871_v8  ;;  %v4578_v12 = vadd.f32 %v4490_v25, %v709_v27  ;;  %v1133_v9 = vadd.f32 %v1101_v36, %v1067_v21  ;;  %v4581_v37 = vmul.f32 %v4388_v53, %v607_v30 }
 0x148   : > { %6369 = vst [vmem:[#allocation5_spill] sm:$0xff] %v4565_v23  ;;  %1505 = vmatmul.f32.gmra.mxu1 %v1396_v20  ;;  %v478_v52 = vpop.f32.mrf.mxu0  ;;  %v4584_v24 = vmax.f32 %v503_v10, 0.0  ;;  %v6350_v6 = vmax.f32 %v4565_v23, 0.0  ;;  %v4588_v48 = vmul.f32 %v4439_v11, %v607_v30  ;;  %v4591_v8 = vmul.f32 %v4508_v54, %v607_v30  ;;  %1624 = vmatmul.f32.gmra.mxu2 %v1396_v20 }
 0x149   : > { %1363 = vst [vmem:[#allocation2 + $0xc1] sm:$0xff] %v6351_v46  ;;  %v479_v25 = vadd.f32 %v4339_v32, %v478_v52  ;;  %v1003_v51 = vadd.f32 %v4497_v57, %v937_v62  ;;  %v980_v21 = vmul.f32 %v4471_v41, %v4544_v26  ;;  %v506_v31 = vadd.f32 %v4339_v32, %v505_v50 }
 0x14a   : > { %6370 = vst [vmem:[#allocation6_spill] sm:$0xff] %v4581_v37  ;;  %v715_v10 = vmul.f32 %v4388_v53, %v4575_v15  ;;  %v1199_v57 = vadd.f32 %v4523_v16, %v1133_v9  ;;  %2053 = vmatpush.msrb.mxu1 %v3270_v18  ;;  %v4614_v27 = vmul.f32 %v4520_v42, %v4584_v24 }
 0x14b   : > { %574 = vst [vmem:[#allocation2 + $0x159] sm:$0xff] %v4544_v26  ;;  %v534_v61 = vmax.f32 %v479_v25, 0.0  ;;  %1943 = vmatmul.f32.gmra.mxu0 %v1327_v47  ;;  %v4616_v33 = vmax.f32 %v506_v31, 0.0  ;;  %v4623_v30 = vmul.f32 %v4439_v11, %v4575_v15  ;;  %v4627_v16 = vmul.f32 %v4439_v11, %v4458_v45 }
 0x14c   : > { %6371 = vst [vmem:[#allocation7_spill] sm:$0xff] %v4584_v24  ;;  %v4619_v36 = vadd.f32 %v4455_v29, %v715_v10  ;;  %2054 = vmatpush.msrb.mxu1 %v3269_v19  ;;  %v4634_v29 = vmul.f32 %v4471_v41, %v4394_v3  ;;  %v4638_v50 = vmul.f32 %v4471_v41, %v4398_v2 }
 0x14d   : > { %6372 = vst [vmem:[#allocation8_spill] sm:$0xff] %v4591_v8  ;;  %v600_v34 = vld [vmem:[#allocation2 + $0xf8] sm:$0xff]  ;;  %v4630_v20 = vmul.f32 %v4404_v60, %v534_v61  ;;  %v4643_v25 = vmul.f32 %v4471_v41, %v534_v61  ;;  %v4646_v18 = vmul.f32 %v4520_v42, %v534_v61 }
 0x14e   : > { %575 = vst [vmem:[#allocation2 + $0x169] sm:$0xff] %v4584_v24  ;;  %v671_v47 = vld [vmem:[#allocation2 + $0xf2] sm:$0xff]  ;;  %v672_v62 = vld [vmem:[#allocation2 + $0xfa] sm:$0xff]  ;;  %v906_v9 = vmul.f32 %v4439_v11, %v600_v34 }
 0x14f   : > { %1364 = vst [vmem:[#allocation2 + $0xc9] sm:$0xff] %v6350_v6  ;;  %v1037_v52 = vmul.f32 %v4502_v59, %v671_v47  ;;  %v841_v19 = vmul.f32 %v4417_v1, %v671_v47  ;;  %v1038_v10 = vmul.f32 %v4502_v59, %v672_v62  ;;  %v1102_v6 = vmul.f32 %v4508_v54, %v600_v34 }
 0x150   : > { %6373 = vst [vmem:[#allocation9_spill] sm:$0xff] %v4616_v33  ;;  %v1397_v31 = vld [vmem:[#allocation2 + $0xc0] sm:$0xff]  ;;  %v1233_v46 = vmul.f32 %v4514_v4, %v671_v47  ;;  %v1234_v8 = vmul.f32 %v4514_v4, %v672_v62  ;;  %v481_v23 = vpop.f32.mrf.mxu0 }
 0x151   : > { %6374 = vst [vmem:[#allocation10_spill] sm:$0xff] %v4623_v30  ;;  %1508 = vmatmul.f32.gmra.mxu1 %v1397_v31  ;;  %v1134_v47 = vadd.f32 %v1102_v6, %v4550_v55  ;;  %v1069_v30 = vadd.f32 %v1037_v52, %v1003_v51  ;;  %1627 = vmatmul.f32.gmra.mxu2 %v1397_v31  ;;  %v6380_v51 = vmax.f32 %v4354_v28, 0.0 }
 0x152   : > { %6375 = vst [vmem:[#allocation11_spill] sm:$0xff] %v4627_v16  ;;  %v4653_v58 = vld [vmem:[#allocation2 + $0x158] sm:$0xff]  ;;  %v1265_v16 = vadd.f32 %v1233_v46, %v1199_v57 }
 0x153   : > { %567 = vst [vmem:[#allocation2 + $0x109] sm:$0xff] %v534_v61  ;;  %v4655_v17 = vld [vmem:[#allocation2 + $0x152] sm:$0xff]  ;;  %v4657_v5 = vld [vmem:[#allocation2 + $0x15a] sm:$0xff]  ;;  %v938_v61 = vadd.f32 %v906_v9, %v4531_v7  ;;  %v1200_v55 = vadd.f32 %v4573_v63, %v1134_v47  ;;  %1946 = vmatmul.f32.gmra.mxu0 %v6380_v51 }
 0x154   : > { %6376 = vst [vmem:[#allocation12_spill] sm:$0xff] %v4634_v29  ;;  %v1178_v29 = vmul.f32 %v4520_v42, %v4616_v33  ;;  %v4668_v43 = vmul.f32 %v4502_v59, %v4655_v17  ;;  %v1046_v24 = vmul.f32 %v4502_v59, %v4657_v5  ;;  %v4679_v46 = vadd.f32 %v4562_v38, %v1265_v16 }
 0x155   : > { %6377 = vst [vmem:[#allocation13_spill] sm:$0xff] %v4638_v50  ;;  %v914_v50 = vmul.f32 %v4439_v11, %v4653_v58  ;;  %v4670_v7 = vld [vmem:[#allocation2 + $0x168] sm:$0xff]  ;;  %v1004_v9 = vadd.f32 %v4570_v39, %v938_v61  ;;  %v4683_v6 = vmul.f32 %v4514_v4, %v4655_v17  ;;  %v710_v39 = vmul.f32 %v4388_v53, %v600_v34 }
 0x156   : > { %576 = vst [vmem:[#allocation2 + $0x171] sm:$0xff] %v4616_v33  ;;  %v482_v33 = vadd.f32 %v4339_v32, %v481_v23  ;;  %v4694_v63 = vmul.f32 %v4508_v54, %v4670_v7  ;;  %v1266_v52 = vadd.f32 %v1234_v8, %v1200_v55  ;;  %v6360_v31 = vmax.f32 %v4679_v46, 0.0  ;;  %v1398_v55 = vld [vmem:[#allocation2 + $0xc8] sm:$0xff] }
 0x157   : > { %v946_v37 = vadd.f32 %v914_v50, %v4528_v13  ;;  %6378 = vst [vmem:[#allocation14_spill] sm:$0xff] %v4679_v46  ;;  %v4690_v50 = vmul.f32 %v4514_v4, %v4657_v5  ;;  %v1070_v16 = vadd.f32 %v1038_v10, %v1004_v9  ;;  %v4712_v9 = vpop.f32.mrf.mxu2  ;;  %v808_v51 = vadd.f32 %v4554_v49, %v710_v39 }
 0x158   : > { %6379 = vst [vmem:[#allocation15_spill] sm:$0xff] %v4683_v6  ;;  %v535_v23 = vmax.f32 %v482_v33, 0.0  ;;  %v4707_v10 = vadd.f32 %v4562_v38, %v1266_v52  ;;  %v873_v46 = vadd.f32 %v841_v19, %v4578_v12  ;;  %v879_v49 = vadd.f32 %v4485_v0, %v4619_v36 }
 0x159   : > { %v1012_v57 = vadd.f32 %v980_v21, %v946_v37  ;;  %6381 = vst [vmem:[#allocation16_spill] sm:$0xff] %v4690_v50  ;;  %1511 = vmatmul.f32.gmra.mxu1 %v1398_v55  ;;  %1630 = vmatmul.f32.gmra.mxu2 %v1398_v55  ;;  %v6385_v19 = vmax.f32 %v4433_v14, 0.0  ;;  %v4739_v36 = vmul.f32 %v4502_v59, %v4460_v22 }
 0x15a   : > { %v601_v13 = vld [vmem:[#allocation2 + $0x108] sm:$0xff]  ;;  %568 = vst [vmem:[#allocation2 + $0x111] sm:$0xff] %v535_v23  ;;  %v1170_v8 = vmul.f32 %v4520_v42, %v535_v23  ;;  %v778_v6 = vmul.f32 %v4404_v60, %v535_v23  ;;  %v974_v55 = vmul.f32 %v4471_v41, %v535_v23  ;;  %v4747_v14 = vmul.f32 %v4508_v54, %v4575_v15 }
 0x15b   : > { %v711_v28 = vmul.f32 %v4388_v53, %v601_v13  ;;  %v907_v37 = vmul.f32 %v4439_v11, %v601_v13  ;;  %v1103_v21 = vmul.f32 %v4508_v54, %v601_v13  ;;  %v1078_v47 = vadd.f32 %v1046_v24, %v1012_v57  ;;  %6382 = vst [vmem:[#allocation17_spill] sm:$0xff] %v4707_v10  ;;  %v484_v57 = vpop.f32.mrf.mxu0 }
 0x15c   : > { %1365 = vst [vmem:[#allocation2 + $0xd9] sm:$0xff] %v6360_v31  ;;  %v842_v13 = vmul.f32 %v4417_v1, %v672_v62  ;;  %v6361_v31 = vmax.f32 %v4707_v10, 0.0  ;;  %1949 = vmatmul.f32.gmra.mxu0 %v6385_v19  ;;  %v4761_v15 = vmul.f32 %v4508_v54, %v4653_v58 }
 0x15d   : > { %v4698_v61 = vld [vmem:[#allocation2 + $0x170] sm:$0xff]  ;;  %6383 = vst [vmem:[#allocation18_spill] sm:$0xff] %v4712_v9  ;;  %v1135_v24 = vadd.f32 %v1103_v21, %v1069_v30  ;;  %v485_v9 = vadd.f32 %v4339_v32, %v484_v57  ;;  %v809_v62 = vadd.f32 %v4630_v20, %v711_v28  ;;  %v939_v21 = vadd.f32 %v907_v37, %v873_v46 }
 0x15e   : > { %v4700_v34 = vld [vmem:[#allocation2 + $0x16a] sm:$0xff]  ;;  %v1112_v33 = vmul.f32 %v4508_v54, %v4698_v61  ;;  %v874_v39 = vadd.f32 %v842_v13, %v808_v51  ;;  %1366 = vst [vmem:[#allocation2 + $0xe1] sm:$0xff] %v6361_v31  ;;  %v4743_v20 = vmul.f32 %v4502_v59, %v4462_v35  ;;  %v4757_v28 = vmul.f32 %v4508_v54, %v4458_v45 }
 0x15f   : > { %v4718_v52 = vmul.f32 %v4514_v4, %v4700_v34  ;;  %v1201_v30 = vadd.f32 %v4646_v18, %v1135_v24  ;;  %v536_v12 = vmax.f32 %v485_v9, 0.0  ;;  %v1005_v0 = vadd.f32 %v4643_v25, %v939_v21  ;;  %6387 = vst [vmem:[#allocation21_spill] sm:$0xff] %v4739_v36 }
 0x160   : > { %v1144_v50 = vadd.f32 %v1112_v33, %v1078_v47  ;;  %v945_v33 = vadd.f32 %v4588_v48, %v879_v49  ;;  %6388 = vst [vmem:[#allocation22_spill] sm:$0xff] %v4743_v20 }
 0x161   : > { %6384 = vst [vmem:[#allocation19_spill] sm:$0xff] %v4718_v52  ;;  %v602_v18 = vld [vmem:[#allocation2 + $0x110] sm:$0xff]  ;;  %v779_v25 = vmul.f32 %v4404_v60, %v536_v12  ;;  %v4766_v13 = vmul.f32 %v4471_v41, %v536_v12  ;;  %v4769_v24 = vmul.f32 %v4520_v42, %v536_v12  ;;  %v1583_v52 = vpop.f32.mrf.mxu2 }
 0x162   : > { %v4732_v47 = vadd.f32 %v1178_v29, %v1144_v50  ;;  %v4749_v29 = vpop.f32.mrf.mxu3  ;;  %v673_v48 = vld [vmem:[#allocation2 + $0x10a] sm:$0xff]  ;;  %v674_v46 = vld [vmem:[#allocation2 + $0x112] sm:$0xff]  ;;  %569 = vst [vmem:[#allocation2 + $0x121] sm:$0xff] %v536_v12  ;;  %v4751_v50 = vpop.f32.mrf.mxu1  ;;  %v1011_v23 = vadd.f32 %v4542_v40, %v945_v33  ;;  %v1104_v37 = vmul.f32 %v4508_v54, %v602_v18  ;;  %v712_v45 = vmul.f32 %v4388_v53, %v602_v18 }
 0x163   : > { %6389 = vst [vmem:[#allocation23_spill] sm:$0xff] %v4751_v50  ;;  %v1235_v9 = vmul.f32 %v4514_v4, %v673_v48  ;;  %v1399_v51 = vld [vmem:[#allocation2 + $0xd8] sm:$0xff]  ;;  %v1236_v40 = vmul.f32 %v4514_v4, %v674_v46  ;;  %v843_v57 = vmul.f32 %v4417_v1, %v673_v48  ;;  %v908_v49 = vmul.f32 %v4439_v11, %v602_v18  ;;  %v487_v33 = vpop.f32.mrf.mxu0 }
 0x164   : > { %6386 = vst [vmem:[#allocation20_spill] sm:$0xff] %v4732_v47  ;;  %v1136_v21 = vadd.f32 %v1104_v37, %v1070_v16  ;;  %1514 = vmatmul.f32.gmra.mxu1 %v1399_v51  ;;  %v844_v31 = vmul.f32 %v4417_v1, %v674_v46  ;;  %v1039_v50 = vmul.f32 %v4502_v59, %v673_v48  ;;  %v6392_v48 = vmax.f32 %v4449_v56, 0.0 }
 0x165   : > { %6390 = vst [vmem:[#allocation24_spill] sm:$0xff] %v4757_v28  ;;  %v1267_v19 = vadd.f32 %v1235_v9, %v1201_v30  ;;  %1633 = vmatmul.f32.gmra.mxu2 %v1399_v51  ;;  %v488_v12 = vadd.f32 %v4339_v32, %v487_v33  ;;  %v810_v47 = vadd.f32 %v778_v6, %v712_v45  ;;  %v3268_v6 = vld [vmem:[%s6345_s5 + $0x268] sm:$0xff] }
 0x166   : > { %6391 = vst [vmem:[#allocation25_spill] sm:$0xff] %v4761_v15  ;;  %v940_v10 = vadd.f32 %v908_v49, %v874_v39  ;;  %v1040_v15 = vmul.f32 %v4502_v59, %v674_v46  ;;  %v1202_v20 = vadd.f32 %v1170_v8, %v1136_v21  ;;  %v875_v18 = vadd.f32 %v843_v57, %v809_v62 }
 0x167   : > { %v1303_v28 = vadd.f32 %v4562_v38, %v1267_v19  ;;  %v1077_v16 = vadd.f32 %v4668_v43, %v1011_v23  ;;  %v537_v30 = vmax.f32 %v488_v12, 0.0  ;;  %v4781_v37 = vadd.f32 %v844_v31, %v810_v47  ;;  %1952 = vmatmul.f32.gmra.mxu0 %v6392_v48  ;;  %2055 = vmatpush.msrb.mxu1 %v3268_v6  ;;  %v6396_v48 = vld [vmem:[#allocation7_spill] sm:$0xff] }
 0x168   : > { %v1006_v9 = vadd.f32 %v974_v55, %v940_v10  ;;  %v1071_v36 = vadd.f32 %v1039_v50, %v1005_v0  ;;  %v1268_v39 = vadd.f32 %v1236_v40, %v1202_v20  ;;  %v4793_v43 = vmul.f32 %v4520_v42, %v4394_v3  ;;  %v1400_v40 = vld [vmem:[#allocation2 + $0xe0] sm:$0xff] }
 0x169   : > { %v4788_v46 = vmax.f32 %v1303_v28, 0.0  ;;  %v603_v8 = vld [vmem:[#allocation2 + $0x120] sm:$0xff]  ;;  %v1143_v62 = vadd.f32 %v4694_v63, %v1077_v16  ;;  %570 = vst [vmem:[#allocation2 + $0x129] sm:$0xff] %v537_v30  ;;  %v780_v56 = vmul.f32 %v4404_v60, %v537_v30  ;;  %v4800_v47 = vmul.f32 %v4520_v42, %v4398_v2 }
 0x16a   : > { %v713_v31 = vmul.f32 %v4388_v53, %v603_v8  ;;  %v909_v10 = vmul.f32 %v4439_v11, %v603_v8  ;;  %v1470_v55 = vpop.f32.mrf.mxu1  ;;  %v1304_v0 = vadd.f32 %v4562_v38, %v1268_v39  ;;  %v4805_v3 = vmul.f32 %v4471_v41, %v537_v30  ;;  %v511_v50 = vpop.f32.mrf.mxu3 }
 0x16b   : > { %1367 = vst [vmem:[#allocation2 + $0xf1] sm:$0xff] %v4788_v46  ;;  %v1072_v63 = vadd.f32 %v1040_v15, %v1006_v9  ;;  %v1105_v20 = vmul.f32 %v4508_v54, %v603_v8  ;;  %v4809_v51 = vmul.f32 %v4520_v42, %v537_v30  ;;  %v4813_v2 = vmul.f32 %v4520_v42, %v4544_v26  ;;  %v6398_v8 = vld [vmem:[#allocation6_spill] sm:$0xff] }
 0x16c   : > { %v811_v23 = vadd.f32 %v779_v25, %v713_v31  ;;  %v941_v28 = vadd.f32 %v909_v10, %v875_v18  ;;  %v4815_v45 = vmax.f32 %v1304_v0, 0.0  ;;  %v4818_v49 = vadd.f32 %v4614_v27, %v1143_v62  ;;  %1517 = vmatmul.f32.gmra.mxu1 %v1400_v40  ;;  %v4824_v25 = vpop.f32.mrf.mxu0  ;;  %v6399_v62 = vld [vmem:[#allocation3_spill] sm:$0xff] }
 0x16d   : > { %v1137_v57 = vadd.f32 %v1105_v20, %v1071_v36  ;;  %v4822_v15 = vmul.f32 %v4514_v4, %v4460_v22  ;;  %6393 = vst [vmem:[#allocation26_spill] sm:$0xff] %v4824_v25  ;;  %v4828_v21 = vmul.f32 %v4514_v4, %v4462_v35  ;;  %v4830_v19 = vadd.f32 %v1583_v52, %v1470_v55  ;;  %v4842_v52 = vpop.f32.mrf.mxu2 }
 0x16e   : > { %v509_v33 = vadd.f32 %v4339_v32, %v4749_v29  ;;  %1636 = vmatmul.f32.gmra.mxu2 %v1400_v40  ;;  %v512_v27 = vadd.f32 %v4339_v32, %v511_v50  ;;  %1368 = vst [vmem:[#allocation2 + $0xf9] sm:$0xff] %v4815_v45  ;;  %v1007_v22 = vadd.f32 %v4766_v13, %v941_v28  ;;  %v6395_v29 = vmax.f32 %v4534_v44, 0.0  ;;  %v6397_v44 = vld [vmem:[#allocation9_spill] sm:$0xff]  ;;  %v3285_v28 = vld [vmem:[%s6345_s5 + $0x3f0] sm:$0xff] }
 0x16f   : > { %v1203_v36 = vadd.f32 %v4769_v24, %v1137_v57  ;;  %v718_v12 = vmul.f32 %v4388_v53, %v4653_v58  ;;  %v719_v35 = vmul.f32 %v4388_v53, %v4670_v7  ;;  %6394 = vst [vmem:[#allocation27_spill] sm:$0xff] %v4842_v52  ;;  %v720_v13 = vmul.f32 %v4388_v53, %v4698_v61  ;;  %v3286_v58 = vld [vmem:[%s6345_s5 + $0x3f8] sm:$0xff] }
 0x170   : > { %v4844_v18 = vmax.f32 %v509_v33, 0.0  ;;  %1955 = vmatmul.f32.gmra.mxu0 %v6395_v29  ;;  %v4848_v32 = vmax.f32 %v512_v27, 0.0  ;;  %v784_v24 = vmul.f32 %v4404_v60, %v4544_v26  ;;  %v604_v16 = vld [vmem:[#allocation2 + $0x128] sm:$0xff]  ;;  %v785_v6 = vmul.f32 %v4404_v60, %v6396_v48  ;;  %2215 = vmatpush.msrb.mxu2 %v3286_v58 }
 0x171   : > { %v675_v30 = vld [vmem:[#allocation2 + $0x122] sm:$0xff]  ;;  %v676_v9 = vld [vmem:[#allocation2 + $0x12a] sm:$0xff]  ;;  %v786_v39 = vmul.f32 %v4404_v60, %v6397_v44  ;;  %v815_v31 = vadd.f32 %v6399_v62, %v6398_v8  ;;  %v849_v10 = vmul.f32 %v4417_v1, %v4655_v17  ;;  %v714_v26 = vmul.f32 %v4388_v53, %v604_v16 }
 0x172   : > { %v845_v55 = vmul.f32 %v4417_v1, %v675_v30  ;;  %v910_v0 = vmul.f32 %v4439_v11, %v604_v16  ;;  %577 = vst [vmem:[#allocation2 + $0x181] sm:$0xff] %v4844_v18  ;;  %v4869_v20 = vpop.f32.mrf.mxu1  ;;  %v850_v60 = vmul.f32 %v4417_v1, %v4657_v5  ;;  %v1401_v50 = vld [vmem:[#allocation2 + $0xf0] sm:$0xff]  ;;  %v846_v17 = vmul.f32 %v4417_v1, %v676_v9  ;;  %v3284_v58 = vld [vmem:[%s6345_s5 + $0x3e8] sm:$0xff] }
 0x173   : > { %v1041_v53 = vmul.f32 %v4502_v59, %v675_v30  ;;  %v1106_v40 = vmul.f32 %v4508_v54, %v604_v16  ;;  %v1237_v57 = vmul.f32 %v4514_v4, %v675_v30  ;;  %578 = vst [vmem:[#allocation2 + $0x189] sm:$0xff] %v4848_v32  ;;  %v812_v33 = vadd.f32 %v780_v56, %v714_v26  ;;  %v6401_v56 = vld [vmem:[#allocation10_spill] sm:$0xff] }
 0x174   : > { %v877_v27 = vadd.f32 %v845_v55, %v811_v23  ;;  %v942_v29 = vadd.f32 %v910_v0, %v4781_v37  ;;  %v1042_v5 = vmul.f32 %v4502_v59, %v676_v9  ;;  %2216 = vmatpush.msrb.mxu2 %v3285_v28  ;;  %v1238_v25 = vmul.f32 %v4514_v4, %v676_v9  ;;  %v4887_v30 = vpop.f32.mrf.mxu0  ;;  %v3283_v55 = vld [vmem:[%s6345_s5 + $0x3e0] sm:$0xff]  ;;  %v6402_v28 = vld [vmem:[#allocation11_spill] sm:$0xff] }
 0x175   : > { %v1073_v8 = vadd.f32 %v1041_v53, %v1007_v22  ;;  %v1138_v62 = vadd.f32 %v1106_v40, %v1072_v63  ;;  %v1269_v16 = vadd.f32 %v1237_v57, %v1203_v36  ;;  %1520 = vmatmul.f32.gmra.mxu1 %v1401_v50  ;;  %6400 = vst [vmem:[#allocation7_spill] sm:$0xff] %v4887_v30  ;;  %v3267_v0 = vld [vmem:[%s6345_s5 + $0x260] sm:$0xff] }
 0x176   : > { %v878_v52 = vadd.f32 %v846_v17, %v812_v33  ;;  %v943_v23 = vadd.f32 %v6401_v56, %v877_v27  ;;  %v1008_v37 = vadd.f32 %v4805_v3, %v942_v29  ;;  %v816_v26 = vadd.f32 %v784_v24, %v718_v12  ;;  %1639 = vmatmul.f32.gmra.mxu2 %v1401_v50  ;;  %v6403_v12 = vld [vmem:[#allocation12_spill] sm:$0xff]  ;;  %v6404_v53 = vld [vmem:[#allocation5_spill] sm:$0xff] }
 0x177   : > { %v1139_v22 = vadd.f32 %v4747_v14, %v1073_v8  ;;  %v1204_v63 = vadd.f32 %v4809_v51, %v1138_v62  ;;  %v1305_v36 = vadd.f32 %v4562_v38, %v1269_v16  ;;  %v817_v9 = vadd.f32 %v785_v6, %v719_v35  ;;  %2217 = vmatpush.msrb.mxu2 %v3284_v58  ;;  %v4907_v35 = vld [vmem:[#allocation2 + $0x172] sm:$0xff]  ;;  %v6407_v33 = vld [vmem:[#allocation21_spill] sm:$0xff] }
 0x178   : > { %v944_v3 = vadd.f32 %v6402_v28, %v878_v52  ;;  %v1009_v24 = vadd.f32 %v6403_v12, %v943_v23  ;;  %v1074_v50 = vadd.f32 %v1042_v5, %v1008_v37  ;;  %v818_v17 = vadd.f32 %v786_v39, %v720_v13  ;;  %v3282_v52 = vld [vmem:[%s6345_s5 + $0x3d8] sm:$0xff]  ;;  %2056 = vmatpush.msrb.mxu1 %v3267_v0  ;;  %v6406_v13 = vld [vmem:[#allocation13_spill] sm:$0xff]  ;;  %v6409_v23 = vld [vmem:[#allocation22_spill] sm:$0xff] }
 0x179   : > { %v6405_v40 = vmax.f32 %v6404_v53, 0.0  ;;  %v1205_v14 = vadd.f32 %v4793_v43, %v1139_v22  ;;  %v1270_v51 = vadd.f32 %v1238_v25, %v1204_v63  ;;  %v4905_v57 = vmax.f32 %v1305_v36, 0.0  ;;  %2218 = vmatpush.msrb.mxu2 %v3283_v55  ;;  %v6408_v29 = vld [vmem:[#allocation24_spill] sm:$0xff]  ;;  %v4917_v25 = vpop.f32.mrf.mxu2 }
 0x17a   : > { %v851_v6 = vmul.f32 %v4417_v1, %v4700_v34  ;;  %v1010_v39 = vadd.f32 %v6406_v13, %v944_v3  ;;  %v1075_v27 = vadd.f32 %v6407_v33, %v1009_v24  ;;  %v1140_v43 = vadd.f32 %v6408_v29, %v1074_v50  ;;  %v4921_v58 = vpop.f32.mrf.mxu1  ;;  %v6410_v55 = vld [vmem:[#allocation8_spill] sm:$0xff]  ;;  %v611_v24 = vld [vmem:[#allocation2 + $0x180] sm:$0xff]  ;;  %v612_v50 = vld [vmem:[#allocation2 + $0x188] sm:$0xff] }
 0x17b   : > { %1958 = vmatmul.f32.gmra.mxu0 %v6405_v40  ;;  %v852_v5 = vmul.f32 %v4417_v1, %v4907_v35  ;;  %v1271_v8 = vadd.f32 %v4822_v15, %v1205_v14  ;;  %v1306_v62 = vadd.f32 %v4562_v38, %v1270_v51  ;;  %1369 = vst [vmem:[#allocation2 + $0x109] sm:$0xff] %v4905_v57  ;;  %v1402_v0 = vld [vmem:[#allocation2 + $0xf8] sm:$0xff]  ;;  %v3281_v1 = vld [vmem:[%s6345_s5 + $0x3d0] sm:$0xff]  ;;  %v6415_v33 = vld [vmem:[#allocation14_spill] sm:$0xff] }
 0x17c   : > { %v881_v16 = vadd.f32 %v849_v10, %v815_v31  ;;  %v882_v56 = vadd.f32 %v850_v60, %v816_v26  ;;  %v1076_v37 = vadd.f32 %v6409_v23, %v1010_v39  ;;  %v1141_v22 = vadd.f32 %v6410_v55, %v1075_v27  ;;  %2219 = vmatpush.msrb.mxu2 %v3282_v52  ;;  %v4937_v10 = vpop.f32.mrf.mxu0  ;;  %v6412_v60 = vld [vmem:[#allocation25_spill] sm:$0xff]  ;;  %v6413_v26 = vld [vmem:[#allocation4_spill] sm:$0xff] }
 0x17d   : > { %v1206_v63 = vadd.f32 %v4800_v47, %v1140_v43  ;;  %v883_v36 = vadd.f32 %v851_v6, %v817_v9  ;;  %v1307_v15 = vadd.f32 %v4562_v38, %v1271_v8  ;;  %v4933_v28 = vmax.f32 %v1306_v62, 0.0  ;;  %1523 = vmatmul.f32.gmra.mxu1 %v1402_v0  ;;  %6411 = vst [vmem:[#allocation9_spill] sm:$0xff] %v4937_v10  ;;  %v3266_v51 = vld [vmem:[%s6345_s5 + $0x258] sm:$0xff]  ;;  %v6414_v6 = vld [vmem:[#allocation15_spill] sm:$0xff] }
 0x17e   : > { %v884_v3 = vadd.f32 %v852_v5, %v818_v17  ;;  %v915_v31 = vmul.f32 %v4439_v11, %v4670_v7  ;;  %v1142_v47 = vadd.f32 %v6412_v60, %v1076_v37  ;;  %v1207_v9 = vadd.f32 %v6413_v26, %v1141_v22  ;;  %1642 = vmatmul.f32.gmra.mxu2 %v1402_v0  ;;  %v6417_v8 = vld [vmem:[#allocation16_spill] sm:$0xff] }
 0x17f   : > { %v1272_v12 = vadd.f32 %v4828_v21, %v1206_v63  ;;  %v916_v53 = vmul.f32 %v4439_v11, %v4698_v61  ;;  %v4944_v40 = vmax.f32 %v1307_v15, 0.0  ;;  %1370 = vst [vmem:[#allocation2 + $0x111] sm:$0xff] %v4933_v28  ;;  %v917_v7 = vmul.f32 %v4439_v11, %v611_v24  ;;  %2220 = vmatpush.msrb.mxu2 %v3281_v1  ;;  %v3280_v21 = vld [vmem:[%s6345_s5 + $0x3c8] sm:$0xff]  ;;  %v613_v55 = vld [vmem:[#allocation2 + $0x198] sm:$0xff] }
 0x180   : > { %v918_v17 = vmul.f32 %v4439_v11, %v612_v50  ;;  %v947_v14 = vadd.f32 %v915_v31, %v881_v16  ;;  %v1208_v61 = vadd.f32 %v4813_v2, %v1142_v47  ;;  %v1273_v52 = vadd.f32 %v6414_v6, %v1207_v9  ;;  %v3279_v2 = vld [vmem:[%s6345_s5 + $0x3c0] sm:$0xff]  ;;  %2057 = vmatpush.msrb.mxu1 %v3266_v51 }
 0x181   : > { %v1308_v13 = vadd.f32 %v4562_v38, %v1272_v12  ;;  %v948_v39 = vadd.f32 %v916_v53, %v882_v56  ;;  %v6416_v27 = vmax.f32 %v6415_v33, 0.0  ;;  %1371 = vst [vmem:[#allocation2 + $0x121] sm:$0xff] %v4944_v40  ;;  %v949_v11 = vadd.f32 %v917_v7, %v883_v36  ;;  %2221 = vmatpush.msrb.mxu2 %v3280_v21  ;;  %v683_v15 = vld [vmem:[#allocation2 + $0x182] sm:$0xff]  ;;  %v1592_v47 = vpop.f32.mrf.mxu2 }
 0x182   : > { %v950_v29 = vadd.f32 %v918_v17, %v884_v3  ;;  %v981_v43 = vmul.f32 %v4471_v41, %v6396_v48  ;;  %v982_v5 = vmul.f32 %v4471_v41, %v6397_v44  ;;  %v1274_v62 = vadd.f32 %v6417_v8, %v1208_v61  ;;  %v4974_v37 = vpop.f32.mrf.mxu1  ;;  %v1403_v48 = vld [vmem:[#allocation2 + $0x108] sm:$0xff]  ;;  %v649_v17 = vld [vmem:[#allocation2 + $0x199] sm:$0xff] }
 0x183   : > { %1961 = vmatmul.f32.gmra.mxu0 %v6416_v27  ;;  %v1309_v16 = vadd.f32 %v4562_v38, %v1273_v52  ;;  %v4970_v56 = vmax.f32 %v1308_v13, 0.0  ;;  %v983_v23 = vmul.f32 %v4471_v41, %v4844_v18  ;;  %v984_v44 = vmul.f32 %v4471_v41, %v4848_v32  ;;  %v684_v3 = vld [vmem:[#allocation2 + $0x18a] sm:$0xff]  ;;  %2222 = vmatpush.msrb.mxu2 %v3279_v2  ;;  %v3278_v41 = vld [vmem:[%s6345_s5 + $0x3b8] sm:$0xff] }
 0x184   : > { %v1013_v22 = vadd.f32 %v981_v43, %v947_v14  ;;  %v1014_v63 = vadd.f32 %v982_v5, %v948_v39  ;;  %v1047_v36 = vmul.f32 %v4502_v59, %v4700_v34  ;;  %v1310_v0 = vadd.f32 %v4562_v38, %v1274_v62  ;;  %v4991_v53 = vpop.f32.mrf.mxu0  ;;  %v650_v14 = vld [vmem:[#allocation2 + $0x1a1] sm:$0xff] }
 0x185   : > { %v4981_v1 = vmax.f32 %v1309_v16, 0.0  ;;  %1372 = vst [vmem:[#allocation2 + $0x129] sm:$0xff] %v4970_v56  ;;  %v1015_v31 = vadd.f32 %v983_v23, %v949_v11  ;;  %v1048_v60 = vmul.f32 %v4502_v59, %v4907_v35  ;;  %v1016_v26 = vadd.f32 %v984_v44, %v950_v29  ;;  %1526 = vmatmul.f32.gmra.mxu1 %v1403_v48  ;;  %v3419_v39 = vld [vmem:[#allocation2 + $0x8] sm:$0xff]  ;;  %v685_v27 = vld [vmem:[#allocation2 + $0x19a] sm:$0xff]  ;;  %v3265_v16 = vld [vmem:[%s6345_s5 + $0x250] sm:$0xff] }
 0x186   : > { %v1049_v34 = vmul.f32 %v4502_v59, %v683_v15  ;;  %v1050_v9 = vmul.f32 %v4502_v59, %v684_v3  ;;  %v1079_v12 = vadd.f32 %v1047_v36, %v1013_v22  ;;  %6418 = vst [vmem:[#allocation6_spill] sm:$0xff] %v4991_v53  ;;  %v4993_v7 = vmax.f32 %v1310_v0, 0.0  ;;  %1645 = vmatmul.f32.gmra.mxu2 %v1403_v48  ;;  %v3277_v59 = vld [vmem:[%s6345_s5 + $0x3b0] sm:$0xff]  ;;  %v3276_v43 = vld [vmem:[%s6345_s5 + $0x3a8] sm:$0xff]  ;;  %v6419_v44 = vld [vmem:[#allocation17_spill] sm:$0xff] }
 0x187   : > { %1373 = vst [vmem:[#allocation2 + $0x139] sm:$0xff] %v4981_v1  ;;  %v1080_v21 = vadd.f32 %v1048_v60, %v1014_v63  ;;  %v1113_v51 = vmul.f32 %v4508_v54, %v611_v24  ;;  %v1114_v61 = vmul.f32 %v4508_v54, %v612_v50  ;;  %v1115_v13 = vmul.f32 %v4508_v54, %v613_v55  ;;  %v686_v5 = vld [vmem:[#allocation2 + $0x1a2] sm:$0xff]  ;;  %v6421_v60 = vld [vmem:[#allocation20_spill] sm:$0xff] }
 0x188   : > { %v1081_v6 = vadd.f32 %v1049_v34, %v1015_v31  ;;  %v1082_v52 = vadd.f32 %v1050_v9, %v1016_v26  ;;  %v1116_v33 = vmul.f32 %v3419_v39, %v4508_v54  ;;  %2223 = vmatpush.msrb.mxu2 %v3278_v41  ;;  %1374 = vst [vmem:[#allocation2 + $0x141] sm:$0xff] %v4993_v7  ;;  %v6420_v22 = vmax.f32 %v6419_v44, 0.0  ;;  %v3274_v34 = vld [vmem:[%s6345_s5 + $0x398] sm:$0xff] }
 0x189   : > { %v1145_v11 = vadd.f32 %v1113_v51, %v1079_v12  ;;  %v1146_v24 = vadd.f32 %v1114_v61, %v1080_v21  ;;  %v1179_v50 = vmul.f32 %v4520_v42, %v4844_v18  ;;  %v1180_v29 = vmul.f32 %v4520_v42, %v4848_v32  ;;  %2058 = vmatpush.msrb.mxu1 %v3265_v16  ;;  %v5051_v61 = vpop.f32.mrf.mxu2  ;;  %v3420_v16 = vld [vmem:[#allocation2 + $0x31] sm:$0xff] }
 0x18a   : > { %v1147_v2 = vadd.f32 %v1115_v13, %v1081_v6  ;;  %v1148_v8 = vadd.f32 %v1116_v33, %v1082_v52  ;;  %v1181_v54 = vmul.f32 %v4520_v42, %v649_v17  ;;  %v1182_v62 = vmul.f32 %v4520_v42, %v650_v14  ;;  %2224 = vmatpush.msrb.mxu2 %v3277_v59  ;;  %v5019_v55 = vpop.f32.mrf.mxu1  ;;  %v3275_v42 = vld [vmem:[%s6345_s5 + $0x3a0] sm:$0xff]  ;;  %v5040_v17 = vld [vmem:[#allocation2 + $0x110] sm:$0xff]  ;;  %v3302_v53 = vld [vmem:[%s6345_s5 + $0x178] sm:$0xff] }
 0x18b   : > { %v1211_v18 = vadd.f32 %v1179_v50, %v1145_v11  ;;  %v1212_v23 = vadd.f32 %v1180_v29, %v1146_v24  ;;  %v1244_v32 = vmul.f32 %v4514_v4, %v4907_v35  ;;  %v1245_v48 = vmul.f32 %v4514_v4, %v683_v15  ;;  %1964 = vmatmul.f32.gmra.mxu0 %v6420_v22  ;;  %v3263_v6 = vld [vmem:[%s6345_s5 + $0x240] sm:$0xff]  ;;  %v6423_v52 = vld [vmem:[#allocation19_spill] sm:$0xff]  ;;  %v3262_v50 = vld [vmem:[%s6345_s5 + $0x238] sm:$0xff] }
 0x18c   : > { %v1213_v63 = vadd.f32 %v1181_v54, %v1147_v2  ;;  %v1214_v36 = vadd.f32 %v1182_v62, %v1148_v8  ;;  %v1246_v0 = vmul.f32 %v4514_v4, %v684_v3  ;;  %v1247_v31 = vmul.f32 %v4514_v4, %v685_v27  ;;  %2225 = vmatpush.msrb.mxu2 %v3276_v43  ;;  %v3272_v27 = vld [vmem:[%s6345_s5 + $0x388] sm:$0xff]  ;;  %v3271_v2 = vld [vmem:[%s6345_s5 + $0x380] sm:$0xff]  ;;  %v3258_v22 = vld [vmem:[%s6345_s5 + $0x218] sm:$0xff] }
 0x18d   : > { %v1248_v35 = vmul.f32 %v4514_v4, %v686_v5  ;;  %v1276_v15 = vadd.f32 %v1244_v32, %v6421_v60  ;;  %v1277_v41 = vadd.f32 %v1245_v48, %v1211_v18  ;;  %v5032_v26 = vadd.f32 %v4917_v25, %v4921_v58  ;;  %v5042_v4 = vpop.f32.mrf.mxu0  ;;  %v3264_v25 = vld [vmem:[%s6345_s5 + $0x248] sm:$0xff]  ;;  %1529 = vmatmul.f32.gmra.mxu1 %v5040_v17  ;;  %v5099_v54 = vld [vmem:[#allocation2 + $0x120] sm:$0xff] }
 0x18e   : > { %v1278_v9 = vadd.f32 %v1246_v0, %v1212_v23  ;;  %v1279_v12 = vadd.f32 %v1247_v31, %v1213_v63  ;;  %v5038_v3 = vadd.f32 %v1592_v47, %v4974_v37  ;;  %2226 = vmatpush.msrb.mxu2 %v3275_v42  ;;  %6422 = vst [vmem:[#allocation3_spill] sm:$0xff] %v5042_v4  ;;  %v5044_v14 = vld [vmem:[#allocation2 + $0x138] sm:$0xff]  ;;  %v3273_v37 = vld [vmem:[%s6345_s5 + $0x390] sm:$0xff]  ;;  %v3260_v23 = vld [vmem:[%s6345_s5 + $0x228] sm:$0xff] }
 0x18f   : > { %v1280_v58 = vadd.f32 %v1248_v35, %v1214_v36  ;;  %v1312_v21 = vadd.f32 %v4562_v38, %v1276_v15  ;;  %v1313_v51 = vadd.f32 %v4562_v38, %v1277_v41  ;;  %1648 = vmatmul.f32.gmra.mxu2 %v5040_v17  ;;  %1538 = vmatmul.f32.vlgmr.msrb.gmra.mxu3 %v5044_v14  ;;  %v5105_v18 = vld [vmem:[#allocation2 + $0x140] sm:$0xff]  ;;  %v3257_v42 = vld [vmem:[%s6345_s5 + $0x210] sm:$0xff]  ;;  %v5126_v63 = vld [vmem:[#allocation2 + $0x128] sm:$0xff] }
 0x190   : > { %v1314_v47 = vadd.f32 %v4562_v38, %v1278_v9  ;;  %v1315_v59 = vadd.f32 %v4562_v38, %v1279_v12  ;;  %2227 = vmatpush.msrb.mxu2 %v3274_v34  ;;  %v1275_v13 = vadd.f32 %v6423_v52, %v4818_v49  ;;  %2059 = vmatpush.msrb.mxu1 %v3264_v25  ;;  %v3259_v48 = vld [vmem:[%s6345_s5 + $0x220] sm:$0xff]  ;;  %v3256_v31 = vld [vmem:[%s6345_s5 + $0x208] sm:$0xff] }
 0x191   : > { %v1316_v39 = vadd.f32 %v4562_v38, %v1280_v58  ;;  %v5067_v33 = vmax.f32 %v1312_v21, 0.0  ;;  %v5072_v11 = vmax.f32 %v1313_v51, 0.0  ;;  %v5112_v32 = vpop.f32.mrf.mxu2  ;;  %v3421_v36 = vld [vmem:[#allocation2 + $0x39] sm:$0xff]  ;;  %v3423_v9 = vld [vmem:[#allocation2 + $0x49] sm:$0xff]  ;;  %v3424_v51 = vld [vmem:[#allocation2 + $0x21] sm:$0xff] }
 0x192   : > { %v5074_v24 = vmax.f32 %v1315_v59, 0.0  ;;  %2228 = vmatpush.msrb.mxu2 %v3273_v37  ;;  %v1311_v49 = vadd.f32 %v4562_v38, %v1275_v13  ;;  %v5080_v29 = vmax.f32 %v1314_v47, 0.0  ;;  %v5085_v5 = vpop.f32.mrf.mxu1  ;;  %2060 = vmatpush.msrb.mxu1 %v3263_v6  ;;  %v3261_v38 = vld [vmem:[%s6345_s5 + $0x230] sm:$0xff]  ;;  %v3255_v60 = vld [vmem:[%s6345_s5 + $0x200] sm:$0xff]  ;;  %v3238_v59 = vld [vmem:[%s6345_s5 + $0x378] sm:$0xff] }
 0x193   : > { %v5082_v43 = vmax.f32 %v1316_v39, 0.0  ;;  %1376 = vst [vmem:[#allocation2 + $0x159] sm:$0xff] %v5067_v33  ;;  %1967 = vmatmul.f32.gmra.mxu0 %v4788_v46  ;;  %v3422_v34 = vld [vmem:[#allocation2 + $0x19] sm:$0xff]  ;;  %v5155_v37 = vld [vmem:[#allocation2 + $0x51] sm:$0xff]  ;;  %1693 = vmatpush.msrb.mxu3 %v3238_v59 }
 0x194   : > { %1379 = vst [vmem:[#allocation2 + $0x181] sm:$0xff] %v5074_v24  ;;  %2229 = vmatpush.msrb.mxu2 %v3272_v27  ;;  %v5092_v8 = vmax.f32 %v1311_v49, 0.0  ;;  %2061 = vmatpush.msrb.mxu1 %v3262_v50  ;;  %v3318_v13 = vld [vmem:[%s6345_s5 + $0x2f8] sm:$0xff]  ;;  %v3237_v39 = vld [vmem:[%s6345_s5 + $0x370] sm:$0xff]  ;;  %v5177_v50 = vld [vmem:[#allocation2 + $0x61] sm:$0xff] }
 0x195   : > { %1380 = vst [vmem:[#allocation2 + $0x189] sm:$0xff] %v5082_v43  ;;  %v5101_v62 = vpop.f32.mrf.mxu0  ;;  %1532 = vmatmul.f32.gmra.mxu1 %v5099_v54  ;;  %2575 = vmatpush.msra.mxu0 %v3318_v13  ;;  %v3234_v13 = vld [vmem:[%s6345_s5 + $0x358] sm:$0xff] }
 0x196   : > { %1377 = vst [vmem:[#allocation2 + $0x169] sm:$0xff] %v5072_v11  ;;  %2230 = vmatpush.msrb.mxu2 %v3271_v2  ;;  %2062 = vmatpush.msrb.mxu1 %v3261_v38  ;;  %v3317_v2 = vld [vmem:[%s6345_s5 + $0x2f0] sm:$0xff]  ;;  %v3316_v38 = vld [vmem:[%s6345_s5 + $0x2e8] sm:$0xff] }
 0x197   : > { %6424 = vst [vmem:[#allocation10_spill] sm:$0xff] %v5101_v62  ;;  %2231 = vmatmul.f32.vlgmr.msrb.gmra.mxu2 %v3420_v16  ;;  %1541 = vmatmul.f32.gmra.mxu3 %v5105_v18  ;;  %v3224_v62 = vld [vmem:[%s6345_s5 + $0x308] sm:$0xff] }
 0x198   : > { %1378 = vst [vmem:[#allocation2 + $0x171] sm:$0xff] %v5080_v29  ;;  %2063 = vmatpush.msrb.mxu1 %v3260_v23  ;;  %1694 = vmatpush.msrb.mxu3 %v3237_v39 }
 0x199   : > { %1375 = vst [vmem:[#allocation2 + $0x151] sm:$0xff] %v5092_v8  ;;  %v5140_v15 = vpop.f32.mrf.mxu2  ;;  %2576 = vmatpush.msra.mxu0 %v3317_v2  ;;  %v3311_v2 = vld [vmem:[%s6345_s5 + $0x2c0] sm:$0xff] }
 0x19a   : > { %v5117_v44 = vpop.f32.mrf.mxu1  ;;  %2064 = vmatpush.msrb.mxu1 %v3259_v48  ;;  %v3315_v48 = vld [vmem:[%s6345_s5 + $0x2e0] sm:$0xff] }
 0x19b   : > { %1970 = vmatmul.f32.gmra.mxu0 %v4815_v45 }
 0x19c   : > { %2065 = vmatpush.msrb.mxu1 %v3258_v22  ;;  %2577 = vmatpush.msra.mxu0 %v3316_v38  ;;  %v3235_v22 = vld [vmem:[%s6345_s5 + $0x360] sm:$0xff]  ;;  %v3233_v38 = vld [vmem:[%s6345_s5 + $0x350] sm:$0xff] }
 0x19d   : > { %1535 = vmatmul.f32.gmra.mxu1 %v5126_v63  ;;  %v5134_v35 = vpop.f32.mrf.mxu0  ;;  %v5158_v47 = vld [vmem:[#allocation2 + $0x168] sm:$0xff] }
 0x19e   : > { %6425 = vst [vmem:[#allocation11_spill] sm:$0xff] %v5134_v35  ;;  %2066 = vmatpush.msrb.mxu1 %v3257_v42  ;;  %v3314_v42 = vld [vmem:[%s6345_s5 + $0x2d8] sm:$0xff]  ;;  %2578 = vmatpush.msra.mxu0 %v3315_v48 }
 0x19f   : > { %2234 = vmatmul.f32.gmra.mxu2 %v3421_v36  ;;  %v5180_v49 = vld [vmem:[#allocation2 + $0x170] sm:$0xff]  ;;  %v3428_v48 = vld [vmem:[#allocation2 + $0x79] sm:$0xff] }
 0x1a0   : > { %v5129_v0 = vld [vmem:[#allocation2 + $0x150] sm:$0xff]  ;;  %2067 = vmatpush.msrb.mxu1 %v3256_v31  ;;  %v5145_v12 = vld [vmem:[#allocation2 + $0x158] sm:$0xff]  ;;  %2579 = vmatpush.msra.mxu0 %v3314_v42 }
 0x1a1   : > { %1544 = vmatmul.f32.gmra.mxu3 %v5129_v0  ;;  %v5153_v21 = vpop.f32.mrf.mxu2  ;;  %v3309_v42 = vld [vmem:[%s6345_s5 + $0x2b0] sm:$0xff] }
 0x1a2   : > { %v5142_v41 = vpop.f32.mrf.mxu1  ;;  %2068 = vmatpush.msrb.mxu1 %v3255_v60  ;;  %v5206_v60 = vld [vmem:[#allocation2 + $0x69] sm:$0xff] }
 0x1a3   : > { %1973 = vmatmul.f32.gmra.mxu0 %v4905_v57 }
 0x1a5   : > { %2069 = vmatmul.f32.vlgmr.msrb.gmra.mxu1 %v3422_v34  ;;  %v5148_v25 = vpop.f32.mrf.mxu0  ;;  %v5209_v34 = vld [vmem:[#allocation2 + $0x180] sm:$0xff] }
 0x1a6   : > { %6426 = vst [vmem:[#allocation12_spill] sm:$0xff] %v5148_v25  ;;  %v3226_v25 = vld [vmem:[%s6345_s5 + $0x318] sm:$0xff] }
 0x1a7   : > { %2237 = vmatmul.f32.gmra.mxu2 %v3423_v9  ;;  %6429 = vst [vmem:[#allocation21_spill] sm:$0xff] %v5209_v34 }
 0x1a9   : > { %1547 = vmatmul.f32.gmra.mxu3 %v5145_v12  ;;  %v5175_v27 = vpop.f32.mrf.mxu2 }
 0x1aa   : > { %v5150_v58 = vpop.f32.mrf.mxu1 }
 0x1ab   : > { %1976 = vmatmul.f32.gmra.mxu0 %v4933_v28 }
 0x1ad   : > { %2072 = vmatmul.f32.gmra.mxu1 %v3424_v51  ;;  %v5167_v52 = vpop.f32.mrf.mxu0  ;;  %v3313_v51 = vld [vmem:[%s6345_s5 + $0x2d0] sm:$0xff] }
 0x1ae   : > { %6427 = vst [vmem:[#allocation5_spill] sm:$0xff] %v5167_v52  ;;  %2580 = vmatpush.msra.mxu0 %v3313_v51 }
 0x1af   : > { %2240 = vmatmul.f32.gmra.mxu2 %v5155_v37 }
 0x1b1   : > { %1550 = vmatmul.f32.gmra.mxu3 %v5158_v47  ;;  %v5215_v59 = vpop.f32.mrf.mxu2 }
 0x1b2   : > { %v5164_v6 = vpop.f32.mrf.mxu1 }
 0x1b3   : > { %1979 = vmatmul.f32.gmra.mxu0 %v4944_v40 }
 0x1b5   : > { %2075 = vmatmul.f32.gmra.mxu1 %v3420_v16  ;;  %v3236_v16 = vld [vmem:[%s6345_s5 + $0x368] sm:$0xff]  ;;  %v5204_v31 = vpop.f32.mrf.mxu0 }
 0x1b6   : > { %1695 = vmatpush.msrb.mxu3 %v3236_v16  ;;  %6428 = vst [vmem:[#allocation13_spill] sm:$0xff] %v5204_v31  ;;  %v3310_v16 = vld [vmem:[%s6345_s5 + $0x2b8] sm:$0xff]  ;;  %v3304_v31 = vld [vmem:[%s6345_s5 + $0x288] sm:$0xff] }
 0x1b7   : > { %2243 = vmatmul.f32.gmra.mxu2 %v5177_v50 }
 0x1b8   : > { %1696 = vmatpush.msrb.mxu3 %v3235_v22  ;;  %v5235_v22 = vld [vmem:[#allocation2 + $0x188] sm:$0xff] }
 0x1b9   : > { %1553 = vmatmul.f32.gmra.mxu3 %v5180_v49  ;;  %6431 = vst [vmem:[#allocation22_spill] sm:$0xff] %v5235_v22 }
 0x1ba   : > { %v5192_v23 = vpop.f32.mrf.mxu1  ;;  %1697 = vmatpush.msrb.mxu3 %v3234_v13  ;;  %v5249_v13 = vpop.f32.mrf.mxu2 }
 0x1bb   : > { %1982 = vmatmul.f32.gmra.mxu0 %v4970_v56 }
 0x1bc   : > { %1698 = vmatpush.msrb.mxu3 %v3233_v38  ;;  %v3307_v38 = vld [vmem:[%s6345_s5 + $0x2a0] sm:$0xff] }
 0x1bd   : > { %2078 = vmatmul.f32.gmra.mxu1 %v3421_v36  ;;  %v3312_v36 = vld [vmem:[%s6345_s5 + $0x2c8] sm:$0xff]  ;;  %v5240_v51 = vpop.f32.mrf.mxu0 }
 0x1be   : > { %2581 = vmatpush.msra.mxu0 %v3312_v36  ;;  %6432 = vst [vmem:[#allocation8_spill] sm:$0xff] %v5240_v51  ;;  %v3308_v36 = vld [vmem:[%s6345_s5 + $0x2a8] sm:$0xff] }
 0x1bf   : > { %2246 = vmatmul.f32.gmra.mxu2 %v5206_v60  ;;  %v3429_v51 = vld [vmem:[#allocation2 + $0x81] sm:$0xff] }
 0x1c0   : > { %2582 = vmatpush.msra.mxu0 %v3311_v2 }
 0x1c1   : > { %1556 = vmatmul.f32.gmra.mxu3 %v5209_v34  ;;  %v5511_v34 = vld [vmem:[#allocation2 + $0xb2] sm:$0xff] }
 0x1c2   : > { %v5223_v39 = vpop.f32.mrf.mxu1  ;;  %2583 = vmatpush.msra.mxu0 %v3310_v16  ;;  %v3231_v16 = vld [vmem:[%s6345_s5 + $0x340] sm:$0xff] }
 0x1c3   : > { %6430 = vst [vmem:[#allocation24_spill] sm:$0xff] %v5223_v39  ;;  %1985 = vmatmul.f32.gmra.mxu0 %v4981_v1 }
 0x1c4   : > { %2584 = vmatpush.msra.mxu0 %v3309_v42  ;;  %v3306_v42 = vld [vmem:[%s6345_s5 + $0x298] sm:$0xff] }
 0x1c5   : > { %2081 = vmatmul.f32.gmra.mxu1 %v3423_v9  ;;  %v3232_v9 = vld [vmem:[%s6345_s5 + $0x348] sm:$0xff] }
 0x1c6   : > { %1699 = vmatpush.msrb.mxu3 %v3232_v9  ;;  %2585 = vmatpush.msra.mxu0 %v3308_v36  ;;  %v3305_v36 = vld [vmem:[%s6345_s5 + $0x290] sm:$0xff]  ;;  %v5268_v9 = vpop.f32.mrf.mxu0 }
 0x1c7   : > { %2249 = vmatmul.f32.gmra.mxu2 %v3428_v48  ;;  %6434 = vst [vmem:[#allocation4_spill] sm:$0xff] %v5268_v9  ;;  %v3430_v9 = vld [vmem:[#allocation2 + $0x91] sm:$0xff] }
 0x1c8   : > { %1700 = vmatpush.msrb.mxu3 %v3231_v16  ;;  %2586 = vmatpush.msra.mxu0 %v3307_v38  ;;  %v3303_v16 = vld [vmem:[%s6345_s5 + $0x280] sm:$0xff] }
 0x1c9   : > { %1559 = vmatmul.f32.gmra.mxu3 %v5235_v22 }
 0x1ca   : > { %v5251_v2 = vpop.f32.mrf.mxu1  ;;  %2587 = vmatpush.msra.mxu0 %v3306_v42  ;;  %v3229_v42 = vld [vmem:[%s6345_s5 + $0x330] sm:$0xff] }
 0x1cb   : > { %6433 = vst [vmem:[#allocation25_spill] sm:$0xff] %v5251_v2  ;;  %1988 = vmatmul.f32.gmra.mxu0 %v4993_v7 }
 0x1cc   : > { %2588 = vmatpush.msra.mxu0 %v3305_v36  ;;  %v5285_v36 = vpop.f32.mrf.mxu2 }
 0x1cd   : > { %2084 = vmatmul.f32.gmra.mxu1 %v5155_v37  ;;  %v3230_v37 = vld [vmem:[%s6345_s5 + $0x338] sm:$0xff]  ;;  %6436 = vst [vmem:[#allocation14_spill] sm:$0xff] %v5285_v36 }
 0x1ce   : > { %1701 = vmatpush.msrb.mxu3 %v3230_v37  ;;  %2589 = vmatpush.msra.mxu0 %v3304_v31  ;;  %v3228_v31 = vld [vmem:[%s6345_s5 + $0x328] sm:$0xff]  ;;  %v5295_v52 = vpop.f32.mrf.mxu0 }
 0x1cf   : > { %2252 = vmatmul.f32.gmra.mxu2 %v3429_v51  ;;  %6438 = vst [vmem:[#allocation17_spill] sm:$0xff] %v5295_v52 }
 0x1d0   : > { %1702 = vmatpush.msrb.mxu3 %v3229_v42  ;;  %2590 = vmatpush.msra.mxu0 %v3303_v16  ;;  %v3227_v16 = vld [vmem:[%s6345_s5 + $0x320] sm:$0xff] }
 0x1d1   : > { %1651 = vmatmul.f32.vlgmr.msra.gmra.mxu3 %v5099_v54  ;;  %v3431_v42 = vld [vmem:[#allocation2 + $0x99] sm:$0xff] }
 0x1d2   : > { %v5276_v38 = vpop.f32.mrf.mxu1  ;;  %1703 = vmatpush.msrb.mxu3 %v3228_v31 }
 0x1d3   : > { %6435 = vst [vmem:[#allocation15_spill] sm:$0xff] %v5276_v38  ;;  %1991 = vmatmul.f32.gmra.mxu0 %v5092_v8 }
 0x1d4   : > { %1704 = vmatpush.msrb.mxu3 %v3227_v16  ;;  %v3225_v16 = vld [vmem:[%s6345_s5 + $0x310] sm:$0xff] }
 0x1d5   : > { %2087 = vmatmul.f32.gmra.mxu1 %v5177_v50  ;;  %v5300_v50 = vpop.f32.mrf.mxu2 }
 0x1d6   : > { %6439 = vst [vmem:[#allocation20_spill] sm:$0xff] %v5300_v50  ;;  %1705 = vmatpush.msrb.mxu3 %v3226_v25  ;;  %v5313_v52 = vpop.f32.mrf.mxu0  ;;  %v3223_v25 = vld [vmem:[%s6345_s5 + $0x300] sm:$0xff] }
 0x1d7   : > { %2255 = vmatmul.f32.gmra.mxu2 %v3430_v9  ;;  %6441 = vst [vmem:[#allocation28_spill] sm:$0xff] %v5313_v52  ;;  %v5330_v52 = vld [vmem:[#allocation2 + $0x1a] sm:$0xff]  ;;  %v5450_v50 = vld [vmem:[#allocation2 + $0x82] sm:$0xff] }
 0x1d8   : > { %1706 = vmatpush.msrb.mxu3 %v3225_v16  ;;  %6445 = vst [vmem:[#allocation32_spill] sm:$0xff] %v5330_v52 }
 0x1d9   : > { %1654 = vmatmul.f32.gmra.mxu3 %v5126_v63 }
 0x1da   : > { %v5292_v37 = vpop.f32.mrf.mxu1  ;;  %1707 = vmatpush.msrb.mxu3 %v3224_v62 }
 0x1db   : > { %6437 = vst [vmem:[#allocation16_spill] sm:$0xff] %v5292_v37  ;;  %1994 = vmatmul.f32.gmra.mxu0 %v5067_v33 }
 0x1dc   : > { %1708 = vmatpush.msrb.mxu3 %v3223_v25 }
 0x1dd   : > { %2090 = vmatmul.f32.gmra.mxu1 %v5206_v60  ;;  %v3432_v60 = vld [vmem:[#allocation2 + $0xa9] sm:$0xff]  ;;  %v5316_v35 = vpop.f32.mrf.mxu2 }
 0x1de   : > { %6442 = vst [vmem:[#allocation29_spill] sm:$0xff] %v5316_v35  ;;  %v5327_v16 = vpop.f32.mrf.mxu0  ;;  %2413 = vmatpush.msra.mxu3 %v3302_v53  ;;  %v3435_v53 = vld [vmem:[#allocation2 + $0xc9] sm:$0xff] }
 0x1df   : > { %2258 = vmatmul.f32.gmra.mxu2 %v3431_v42  ;;  %6444 = vst [vmem:[#allocation31_spill] sm:$0xff] %v5327_v16  ;;  %v5343_v16 = vld [vmem:[#allocation2 + $0x22] sm:$0xff] }
 0x1e0   : > { %6449 = vst [vmem:[#allocation36_spill] sm:$0xff] %v5343_v16 }
 0x1e1   : > { %1657 = vmatmul.f32.gmra.mxu3 %v5044_v14 }
 0x1e2   : > { %v5307_v31 = vpop.f32.mrf.mxu1 }
 0x1e3   : > { %6440 = vst [vmem:[#allocation19_spill] sm:$0xff] %v5307_v31  ;;  %1997 = vmatmul.f32.gmra.mxu0 %v5072_v11  ;;  %v5379_v31 = vld [vmem:[#allocation2 + $0x4a] sm:$0xff] }
 0x1e5   : > { %2093 = vmatmul.f32.gmra.mxu1 %v3428_v48  ;;  %v3433_v48 = vld [vmem:[#allocation2 + $0xb1] sm:$0xff]  ;;  %v5335_v10 = vpop.f32.mrf.mxu2 }
 0x1e6   : > { %6446 = vst [vmem:[#allocation33_spill] sm:$0xff] %v5335_v10  ;;  %v5341_v25 = vpop.f32.mrf.mxu0 }
 0x1e7   : > { %2261 = vmatmul.f32.gmra.mxu2 %v3432_v60  ;;  %6448 = vst [vmem:[#allocation35_spill] sm:$0xff] %v5341_v25  ;;  %v3301_v25 = vld [vmem:[%s6345_s5 + $0x170] sm:$0xff] }
 0x1e8   : > { %2414 = vmatpush.msra.mxu3 %v3301_v25 }
 0x1e9   : > { %1660 = vmatmul.f32.gmra.mxu3 %v5105_v18 }
 0x1ea   : > { %v5321_v4 = vpop.f32.mrf.mxu1 }
 0x1eb   : > { %6443 = vst [vmem:[#allocation30_spill] sm:$0xff] %v5321_v4  ;;  %2000 = vmatmul.f32.gmra.mxu0 %v5080_v29 }
 0x1ed   : > { %2096 = vmatmul.f32.gmra.mxu1 %v3429_v51  ;;  %v3434_v51 = vld [vmem:[#allocation2 + $0xc1] sm:$0xff]  ;;  %v5348_v4 = vpop.f32.mrf.mxu2 }
 0x1ee   : > { %6451 = vst [vmem:[#allocation38_spill] sm:$0xff] %v5348_v4 }
 0x1ef   : > { %2264 = vmatmul.f32.gmra.mxu2 %v3433_v48 }
 0x1f1   : > { %1663 = vmatmul.f32.gmra.mxu3 %v5129_v0 }
 0x1f2   : > { %v5337_v62 = vpop.f32.mrf.mxu1 }
 0x1f3   : > { %6447 = vst [vmem:[#allocation34_spill] sm:$0xff] %v5337_v62  ;;  %2591 = vmatmul.f32.vlgmr.msra.gmra.mxu0 %v5330_v52  ;;  %v3334_v62 = vld [vmem:[%s6345_s5 + $0x478] sm:$0xff] }
 0x1f4   : > { %2737 = vmatpush.msra.mxu1 %v3334_v62  ;;  %v5367_v62 = vld [vmem:[#allocation2 + $0x3a] sm:$0xff] }
 0x1f5   : > { %2099 = vmatmul.f32.gmra.mxu1 %v3430_v9  ;;  %v5354_v9 = vld [vmem:[#allocation2 + $0x32] sm:$0xff]  ;;  %v5364_v52 = vpop.f32.mrf.mxu2 }
 0x1f6   : > { %6454 = vst [vmem:[#allocation41_spill] sm:$0xff] %v5364_v52 }
 0x1f7   : > { %2267 = vmatmul.f32.gmra.mxu2 %v3434_v51 }
 0x1f9   : > { %1666 = vmatmul.f32.gmra.mxu3 %v5145_v12 }
 0x1fa   : > { %v5345_v30 = vpop.f32.mrf.mxu1 }
 0x1fb   : > { %6450 = vst [vmem:[#allocation37_spill] sm:$0xff] %v5345_v30  ;;  %2594 = vmatmul.f32.gmra.mxu0 %v5343_v16  ;;  %v5362_v16 = vpop.f32.mrf.mxu0 }
 0x1fc   : > { %6453 = vst [vmem:[#allocation40_spill] sm:$0xff] %v5362_v16  ;;  %v3437_v16 = vld [vmem:[#allocation2 + $0xe1] sm:$0xff] }
 0x1fd   : > { %2102 = vmatmul.f32.gmra.mxu1 %v3431_v42  ;;  %v3436_v42 = vld [vmem:[#allocation2 + $0xd9] sm:$0xff]  ;;  %v5377_v52 = vpop.f32.mrf.mxu2 }
 0x1fe   : > { %6457 = vst [vmem:[#allocation44_spill] sm:$0xff] %v5377_v52 }
 0x1ff   : > { %2270 = vmatmul.f32.gmra.mxu2 %v3435_v53 }
 0x201   : > { %1669 = vmatmul.f32.gmra.mxu3 %v5158_v47 }
 0x202   : > { %v5359_v30 = vpop.f32.mrf.mxu1 }
 0x203   : > { %6452 = vst [vmem:[#allocation39_spill] sm:$0xff] %v5359_v30  ;;  %2597 = vmatmul.f32.gmra.mxu0 %v5354_v9  ;;  %v3333_v30 = vld [vmem:[%s6345_s5 + $0x470] sm:$0xff]  ;;  %v5375_v25 = vpop.f32.mrf.mxu0 }
 0x204   : > { %2738 = vmatpush.msra.mxu1 %v3333_v30  ;;  %6456 = vst [vmem:[#allocation43_spill] sm:$0xff] %v5375_v25  ;;  %v5392_v25 = vld [vmem:[#allocation2 + $0x52] sm:$0xff] }
 0x205   : > { %2105 = vmatmul.f32.gmra.mxu1 %v3432_v60  ;;  %v3438_v60 = vld [vmem:[#allocation2 + $0x30] sm:$0xff]  ;;  %v5394_v52 = vpop.f32.mrf.mxu2 }
 0x206   : > { %6460 = vst [vmem:[#allocation47_spill] sm:$0xff] %v5394_v52 }
 0x207   : > { %2273 = vmatmul.f32.gmra.mxu2 %v3436_v42 }
 0x209   : > { %1672 = vmatmul.f32.gmra.mxu3 %v5180_v49 }
 0x20a   : > { %v5370_v4 = vpop.f32.mrf.mxu1 }
 0x20b   : > { %2600 = vmatmul.f32.gmra.mxu0 %v5367_v62  ;;  %6455 = vst [vmem:[#allocation42_spill] sm:$0xff] %v5370_v4  ;;  %v3300_v4 = vld [vmem:[%s6345_s5 + $0x168] sm:$0xff] }
 0x20c   : > { %2415 = vmatpush.msra.mxu3 %v3300_v4  ;;  %v3332_v4 = vld [vmem:[%s6345_s5 + $0x468] sm:$0xff] }
 0x20d   : > { %2108 = vmatmul.f32.gmra.mxu1 %v3433_v48  ;;  %v5390_v48 = vpop.f32.mrf.mxu0 }
 0x20e   : > { %6459 = vst [vmem:[#allocation46_spill] sm:$0xff] %v5390_v48  ;;  %2739 = vmatpush.msra.mxu1 %v3332_v4  ;;  %v3299_v48 = vld [vmem:[%s6345_s5 + $0x160] sm:$0xff]  ;;  %v3441_v4 = vld [vmem:[#allocation2 + $0x50] sm:$0xff] }
 0x20f   : > { %2276 = vmatmul.f32.gmra.mxu2 %v3437_v16  ;;  %2416 = vmatpush.msra.mxu3 %v3299_v48  ;;  %v3331_v48 = vld [vmem:[%s6345_s5 + $0x460] sm:$0xff] }
 0x210   : > { %2740 = vmatpush.msra.mxu1 %v3331_v48 }
 0x211   : > { %1709 = vmatmul.f32.vlgmr.msrb.gmra.mxu3 %v3438_v60  ;;  %v3439_v60 = vld [vmem:[#allocation2 + $0x38] sm:$0xff] }
 0x212   : > { %v5385_v10 = vpop.f32.mrf.mxu3  ;;  %v5387_v30 = vpop.f32.mrf.mxu1 }
 0x213   : > { %2603 = vmatmul.f32.gmra.mxu0 %v5379_v31  ;;  %6458 = vst [vmem:[#allocation45_spill] sm:$0xff] %v5387_v30 }
 0x215   : > { %2111 = vmatmul.f32.gmra.mxu1 %v3434_v51  ;;  %v5405_v51 = vpop.f32.mrf.mxu0 }
 0x216   : > { %6462 = vst [vmem:[#allocation49_spill] sm:$0xff] %v5405_v51 }
 0x217   : > { %2279 = vmatmul.f32.gmra.mxu2 %v4788_v46  ;;  %v3440_v46 = vld [vmem:[#allocation2 + $0x48] sm:$0xff] }
 0x219   : > { %1712 = vmatmul.f32.gmra.mxu3 %v3439_v60  ;;  %v5407_v60 = vld [vmem:[#allocation2 + $0x62] sm:$0xff] }
 0x21a   : > { %v5397_v37 = vpop.f32.mrf.mxu3  ;;  %v5399_v35 = vpop.f32.mrf.mxu1 }
 0x21b   : > { %2606 = vmatmul.f32.gmra.mxu0 %v5392_v25  ;;  %6461 = vst [vmem:[#allocation48_spill] sm:$0xff] %v5399_v35 }
 0x21d   : > { %2114 = vmatmul.f32.gmra.mxu1 %v3435_v53  ;;  %v5417_v53 = vpop.f32.mrf.mxu2  ;;  %v5425_v52 = vpop.f32.mrf.mxu0 }
 0x21e   : > { %6464 = vst [vmem:[#allocation51_spill] sm:$0xff] %v5417_v53 }
 0x21f   : > { %2282 = vmatmul.f32.gmra.mxu2 %v4815_v45  ;;  %6465 = vst [vmem:[#allocation52_spill] sm:$0xff] %v5425_v52  ;;  %v3298_v52 = vld [vmem:[%s6345_s5 + $0x158] sm:$0xff] }
 0x220   : > { %2417 = vmatpush.msra.mxu3 %v3298_v52  ;;  %v3330_v52 = vld [vmem:[%s6345_s5 + $0x458] sm:$0xff] }
 0x221   : > { %1715 = vmatmul.f32.gmra.mxu3 %v3440_v46  ;;  %v5420_v46 = vld [vmem:[#allocation2 + $0x6a] sm:$0xff]  ;;  %2741 = vmatpush.msra.mxu1 %v3330_v52  ;;  %v3446_v52 = vld [vmem:[#allocation2 + $0x80] sm:$0xff] }
 0x222   : > { %v5415_v30 = vpop.f32.mrf.mxu1 }
 0x223   : > { %2609 = vmatmul.f32.gmra.mxu0 %v5407_v60  ;;  %6463 = vst [vmem:[#allocation50_spill] sm:$0xff] %v5415_v30  ;;  %v5435_v30 = vld [vmem:[#allocation2 + $0x7a] sm:$0xff] }
 0x224   : > { %v5413_v35 = vpop.f32.mrf.mxu3 }
 0x225   : > { %2117 = vmatmul.f32.gmra.mxu1 %v3436_v42  ;;  %v5432_v42 = vpop.f32.mrf.mxu2  ;;  %v5445_v48 = vpop.f32.mrf.mxu0 }
 0x226   : > { %6467 = vst [vmem:[#allocation54_spill] sm:$0xff] %v5432_v42 }
 0x227   : > { %2285 = vmatmul.f32.gmra.mxu2 %v4905_v57  ;;  %6469 = vst [vmem:[#allocation56_spill] sm:$0xff] %v5445_v48  ;;  %v5464_v48 = vld [vmem:[#allocation2 + $0x92] sm:$0xff] }
 0x229   : > { %1718 = vmatmul.f32.gmra.mxu3 %v3441_v4  ;;  %v3442_v4 = vld [vmem:[#allocation2 + $0x60] sm:$0xff] }
 0x22a   : > { %v5427_v38 = vpop.f32.mrf.mxu1 }
 0x22b   : > { %2612 = vmatmul.f32.gmra.mxu0 %v5420_v46  ;;  %6466 = vst [vmem:[#allocation53_spill] sm:$0xff] %v5427_v38 }
 0x22c   : > { %v5423_v51 = vpop.f32.mrf.mxu3 }
 0x22d   : > { %2120 = vmatmul.f32.gmra.mxu1 %v3437_v16  ;;  %v3443_v16 = vld [vmem:[#allocation2 + $0xf1] sm:$0xff]  ;;  %v5448_v42 = vpop.f32.mrf.mxu2 }
 0x22e   : > { %6470 = vst [vmem:[#allocation57_spill] sm:$0xff] %v5448_v42 }
 0x22f   : > { %2288 = vmatmul.f32.gmra.mxu2 %v4933_v28 }
 0x231   : > { %1721 = vmatmul.f32.gmra.mxu3 %v3442_v4  ;;  %v3444_v4 = vld [vmem:[#allocation2 + $0x68] sm:$0xff] }
 0x232   : > { %v5443_v53 = vpop.f32.mrf.mxu1 }
 0x233   : > { %2615 = vmatmul.f32.gmra.mxu0 %v5435_v30  ;;  %6468 = vst [vmem:[#allocation55_spill] sm:$0xff] %v5443_v53  ;;  %v3297_v53 = vld [vmem:[%s6345_s5 + $0x150] sm:$0xff] }
 0x234   : > { %v5441_v38 = vpop.f32.mrf.mxu3  ;;  %2418 = vmatpush.msra.mxu3 %v3297_v53  ;;  %v3329_v53 = vld [vmem:[%s6345_s5 + $0x450] sm:$0xff] }
 0x235   : > { %2123 = vmatmul.f32.gmra.mxu1 %v3443_v16  ;;  %v5462_v16 = vpop.f32.mrf.mxu0 }
 0x236   : > { %6472 = vst [vmem:[#allocation59_spill] sm:$0xff] %v5462_v16  ;;  %v5480_v16 = vld [vmem:[#allocation2 + $0x9a] sm:$0xff]  ;;  %2742 = vmatpush.msra.mxu1 %v3329_v53 }
 0x237   : > { %2291 = vmatmul.f32.gmra.mxu2 %v4944_v40 }
 0x239   : > { %1724 = vmatmul.f32.gmra.mxu3 %v3444_v4  ;;  %v3445_v4 = vld [vmem:[#allocation2 + $0x78] sm:$0xff] }
 0x23a   : > { %v5455_v22 = vpop.f32.mrf.mxu1 }
 0x23b   : > { %2618 = vmatmul.f32.gmra.mxu0 %v5450_v50  ;;  %6471 = vst [vmem:[#allocation58_spill] sm:$0xff] %v5455_v22  ;;  %v5469_v22 = vpop.f32.mrf.mxu2 }
 0x23c   : > { %v5453_v2 = vpop.f32.mrf.mxu3  ;;  %6473 = vst [vmem:[#allocation60_spill] sm:$0xff] %v5469_v22 }
 0x23d   : > { %2126 = vmatmul.f32.gmra.mxu1 %v4815_v45 }
 0x23f   : > { %2294 = vmatmul.f32.gmra.mxu2 %v4970_v56 }
 0x241   : > { %1727 = vmatmul.f32.gmra.mxu3 %v3445_v4  ;;  %v5478_v4 = vpop.f32.mrf.mxu0 }
 0x242   : > { %v5474_v45 = vpop.f32.mrf.mxu1  ;;  %6475 = vst [vmem:[#allocation62_spill] sm:$0xff] %v5478_v4  ;;  %v3296_v4 = vld [vmem:[%s6345_s5 + $0x148] sm:$0xff] }
 0x243   : > { %2621 = vmatmul.f32.gmra.mxu0 %v5464_v48  ;;  %6474 = vst [vmem:[#allocation61_spill] sm:$0xff] %v5474_v45  ;;  %v5490_v45 = vpop.f32.mrf.mxu2  ;;  %2419 = vmatpush.msra.mxu3 %v3296_v4 }
 0x244   : > { %v5472_v42 = vpop.f32.mrf.mxu3  ;;  %6477 = vst [vmem:[#allocation64_spill] sm:$0xff] %v5490_v45 }
 0x245   : > { %2129 = vmatmul.f32.gmra.mxu1 %v4905_v57  ;;  %v3447_v57 = vld [vmem:[#allocation2 + $0x90] sm:$0xff] }
 0x247   : > { %2297 = vmatmul.f32.gmra.mxu2 %v4981_v1 }
 0x249   : > { %1730 = vmatmul.f32.gmra.mxu3 %v3446_v52  ;;  %v5494_v52 = vld [vmem:[#allocation2 + $0xaa] sm:$0xff]  ;;  %v5500_v39 = vpop.f32.mrf.mxu0 }
 0x24a   : > { %v5485_v36 = vpop.f32.mrf.mxu1  ;;  %6478 = vst [vmem:[#allocation65_spill] sm:$0xff] %v5500_v39 }
 0x24b   : > { %2624 = vmatmul.f32.gmra.mxu0 %v5480_v16  ;;  %6476 = vst [vmem:[#allocation63_spill] sm:$0xff] %v5485_v36  ;;  %v5507_v45 = vpop.f32.mrf.mxu2 }
 0x24c   : > { %v5483_v22 = vpop.f32.mrf.mxu3  ;;  %6480 = vst [vmem:[#allocation67_spill] sm:$0xff] %v5507_v45  ;;  %v5528_v45 = vld [vmem:[#allocation2 + $0xc2] sm:$0xff] }
 0x24d   : > { %2132 = vmatmul.f32.gmra.mxu1 %v4933_v28 }
 0x24f   : > { %2300 = vmatmul.f32.gmra.mxu2 %v4993_v7 }
 0x251   : > { %1733 = vmatmul.f32.gmra.mxu3 %v3447_v57  ;;  %v3448_v57 = vld [vmem:[#allocation2 + $0x98] sm:$0xff] }
 0x252   : > { %v5505_v28 = vpop.f32.mrf.mxu1 }
 0x253   : > { %2627 = vmatmul.f32.gmra.mxu0 %v5494_v52  ;;  %6479 = vst [vmem:[#allocation66_spill] sm:$0xff] %v5505_v28  ;;  %v5526_v28 = vpop.f32.mrf.mxu2 }
 0x254   : > { %v1652_v36 = vpop.f32.mrf.mxu3  ;;  %6483 = vst [vmem:[#allocation70_spill] sm:$0xff] %v5526_v28 }
 0x255   : > { %v5503_v53 = vadd.f32 %v1652_v36, %v5385_v10  ;;  %2135 = vmatmul.f32.gmra.mxu1 %v4944_v40  ;;  %v3328_v10 = vld [vmem:[%s6345_s5 + $0x448] sm:$0xff]  ;;  %v5520_v36 = vpop.f32.mrf.mxu0 }
 0x256   : > { %2743 = vmatpush.msra.mxu1 %v3328_v10  ;;  %6481 = vst [vmem:[#allocation68_spill] sm:$0xff] %v5520_v36 }
 0x257   : > { %2303 = vmatmul.f32.gmra.mxu2 %v5092_v8 }
 0x259   : > { %1736 = vmatmul.f32.gmra.mxu3 %v3448_v57  ;;  %v3449_v57 = vld [vmem:[#allocation2 + $0xa8] sm:$0xff] }
 0x25a   : > { %v5522_v40 = vpop.f32.mrf.mxu1 }
 0x25b   : > { %2630 = vmatmul.f32.gmra.mxu0 %v5511_v34  ;;  %6482 = vst [vmem:[#allocation69_spill] sm:$0xff] %v5522_v40  ;;  %v5543_v40 = vld [vmem:[#allocation2 + $0xca] sm:$0xff]  ;;  %v5545_v28 = vpop.f32.mrf.mxu2 }
 0x25c   : > { %v1655_v4 = vpop.f32.mrf.mxu3  ;;  %6486 = vst [vmem:[#allocation73_spill] sm:$0xff] %v5545_v28 }
 0x25d   : > { %v5515_v39 = vadd.f32 %v1655_v4, %v5397_v37  ;;  %2138 = vmatmul.f32.gmra.mxu1 %v4970_v56  ;;  %v3295_v37 = vld [vmem:[%s6345_s5 + $0x140] sm:$0xff]  ;;  %v5539_v56 = vpop.f32.mrf.mxu0 }
 0x25e   : > { %2420 = vmatpush.msra.mxu3 %v3295_v37  ;;  %6484 = vst [vmem:[#allocation71_spill] sm:$0xff] %v5539_v56  ;;  %v5558_v56 = vld [vmem:[#allocation2 + $0xda] sm:$0xff] }
 0x25f   : > { %2306 = vmatmul.f32.gmra.mxu2 %v5067_v33 }
 0x261   : > { %1739 = vmatmul.f32.gmra.mxu3 %v3449_v57  ;;  %v3450_v57 = vld [vmem:[#allocation2 + $0xb0] sm:$0xff] }
 0x262   : > { %v5541_v36 = vpop.f32.mrf.mxu1 }
 0x263   : > { %2633 = vmatmul.f32.gmra.mxu0 %v5528_v45  ;;  %6485 = vst [vmem:[#allocation72_spill] sm:$0xff] %v5541_v36 }
 0x264   : > { %v1658_v4 = vpop.f32.mrf.mxu3 }
 0x265   : > { %v5535_v10 = vadd.f32 %v1658_v4, %v5413_v35  ;;  %2141 = vmatmul.f32.gmra.mxu1 %v4981_v1  ;;  %v3327_v1 = vld [vmem:[%s6345_s5 + $0x440] sm:$0xff] }
 0x266   : > { %2744 = vmatpush.msra.mxu1 %v3327_v1  ;;  %v3451_v4 = vld [vmem:[#allocation2 + $0xc0] sm:$0xff]  ;;  %v5569_v1 = vpop.f32.mrf.mxu2 }
 0x267   : > { %2309 = vmatmul.f32.gmra.mxu2 %v5072_v11  ;;  %6489 = vst [vmem:[#allocation76_spill] sm:$0xff] %v5569_v1  ;;  %v3323_v1 = vld [vmem:[%s6345_s5 + $0x420] sm:$0xff] }
 0x269   : > { %1742 = vmatmul.f32.gmra.mxu3 %v3450_v57  ;;  %v5556_v57 = vpop.f32.mrf.mxu0 }
 0x26a   : > { %6487 = vst [vmem:[#allocation74_spill] sm:$0xff] %v5556_v57  ;;  %v3452_v57 = vld [vmem:[#allocation2 + $0xc8] sm:$0xff] }
 0x26b   : > { %2636 = vmatmul.f32.gmra.mxu0 %v5543_v40 }
 0x26c   : > { %v1661_v37 = vpop.f32.mrf.mxu3 }
 0x26d   : > { %v5549_v35 = vadd.f32 %v1661_v37, %v5423_v51  ;;  %2144 = vmatmul.f32.gmra.mxu1 %v4993_v7  ;;  %v3294_v51 = vld [vmem:[%s6345_s5 + $0x138] sm:$0xff]  ;;  %v5563_v37 = vpop.f32.mrf.mxu1 }
 0x26e   : > { %6488 = vst [vmem:[#allocation75_spill] sm:$0xff] %v5563_v37  ;;  %2421 = vmatpush.msra.mxu3 %v3294_v51  ;;  %v5576_v37 = vld [vmem:[#allocation2 + $0xe2] sm:$0xff]  ;;  %v5595_v28 = vpop.f32.mrf.mxu2 }
 0x26f   : > { %2312 = vmatmul.f32.gmra.mxu2 %v5080_v29  ;;  %6492 = vst [vmem:[#allocation79_spill] sm:$0xff] %v5595_v28 }
 0x271   : > { %1745 = vmatmul.f32.gmra.mxu3 %v3451_v4  ;;  %v3326_v4 = vld [vmem:[%s6345_s5 + $0x438] sm:$0xff] }
 0x272   : > { %2745 = vmatpush.msra.mxu1 %v3326_v4 }
 0x273   : > { %2639 = vmatmul.f32.gmra.mxu0 %v5558_v56 }
 0x274   : > { %v1664_v36 = vpop.f32.mrf.mxu3 }
 0x275   : > { %v5567_v7 = vadd.f32 %v1664_v36, %v5441_v38  ;;  %2147 = vmatmul.f32.gmra.mxu1 %v5092_v8  ;;  %v3325_v38 = vld [vmem:[%s6345_s5 + $0x430] sm:$0xff]  ;;  %v5582_v8 = vpop.f32.mrf.mxu0  ;;  %v5590_v4 = vpop.f32.mrf.mxu1 }
 0x276   : > { %2746 = vmatpush.msra.mxu1 %v3325_v38  ;;  %6490 = vst [vmem:[#allocation77_spill] sm:$0xff] %v5582_v8  ;;  %v2965_v38 = vld [vmem:[%s6347_s7 + $0x78] sm:$0xff]  ;;  %v3293_v8 = vld [vmem:[%s6345_s5 + $0x130] sm:$0xff] }
 0x277   : > { %2315 = vmatmul.f32.gmra.mxu2 %v5074_v24  ;;  %6491 = vst [vmem:[#allocation78_spill] sm:$0xff] %v5590_v4  ;;  %2422 = vmatpush.msra.mxu3 %v3293_v8  ;;  %v3454_v8 = vld [vmem:[#allocation2 + $0xe0] sm:$0xff] }
 0x278   : > { %2998 = vmatpush.msra.mxu2 %v2965_v38  ;;  %v3319_v38 = vld [vmem:[%s6345_s5 + $0x400] sm:$0xff] }
 0x279   : > { %1748 = vmatmul.f32.gmra.mxu3 %v3452_v57  ;;  %v3324_v57 = vld [vmem:[%s6345_s5 + $0x428] sm:$0xff] }
 0x27a   : > { %2747 = vmatpush.msra.mxu1 %v3324_v57  ;;  %v5605_v57 = vld [vmem:[#allocation2 + $0xf2] sm:$0xff] }
 0x27b   : > { %2642 = vmatmul.f32.gmra.mxu0 %v5576_v37 }
 0x27c   : > { %v1667_v36 = vpop.f32.mrf.mxu3  ;;  %2748 = vmatpush.msra.mxu1 %v3323_v1  ;;  %v3320_v1 = vld [vmem:[%s6345_s5 + $0x408] sm:$0xff] }
 0x27d   : > { %v5585_v51 = vadd.f32 %v1667_v36, %v5453_v2  ;;  %2150 = vmatmul.f32.gmra.mxu1 %v5067_v33  ;;  %v3322_v2 = vld [vmem:[%s6345_s5 + $0x418] sm:$0xff]  ;;  %v3321_v33 = vld [vmem:[%s6345_s5 + $0x410] sm:$0xff] }
 0x27e   : > { %v3453_v36 = vld [vmem:[#allocation2 + $0xd8] sm:$0xff]  ;;  %2749 = vmatpush.msra.mxu1 %v3322_v2  ;;  %v5620_v2 = vpop.f32.mrf.mxu0 }
 0x27f   : > { %2318 = vmatmul.f32.gmra.mxu2 %v5082_v43  ;;  %6493 = vst [vmem:[#allocation80_spill] sm:$0xff] %v5620_v2 }
 0x280   : > { %2750 = vmatpush.msra.mxu1 %v3321_v33 }
 0x281   : > { %1751 = vmatmul.f32.gmra.mxu3 %v3453_v36  ;;  %v5625_v36 = vpop.f32.mrf.mxu1 }
 0x282   : > { %2751 = vmatpush.msra.mxu1 %v3320_v1  ;;  %6494 = vst [vmem:[#allocation81_spill] sm:$0xff] %v5625_v36  ;;  %v2964_v1 = vld [vmem:[%s6347_s7 + $0x70] sm:$0xff] }
 0x283   : > { %2645 = vmatmul.f32.gmra.mxu0 %v5605_v57  ;;  %2999 = vmatpush.msra.mxu2 %v2964_v1  ;;  %v5653_v1 = vld [vmem:[#allocation2 + $0x112] sm:$0xff] }
 0x284   : > { %v1670_v4 = vpop.f32.mrf.mxu3  ;;  %2752 = vmatpush.msra.mxu1 %v3319_v38 }
 0x285   : > { %v5615_v28 = vadd.f32 %v1670_v4, %v5472_v42  ;;  %2153 = vmatmul.f32.gmra.mxu1 %v5072_v11  ;;  %v5628_v42 = vld [vmem:[#allocation2 + $0xfa] sm:$0xff]  ;;  %v3455_v11 = vld [vmem:[#allocation2 + $0xf0] sm:$0xff] }
 0x286   : > { %v5638_v2 = vpop.f32.mrf.mxu0 }
 0x287   : > { %6496 = vst [vmem:[#allocation83_spill] sm:$0xff] %v5638_v2 }
 0x289   : > { %1754 = vmatmul.f32.gmra.mxu3 %v3454_v8  ;;  %v5640_v38 = vpop.f32.mrf.mxu1  ;;  %v5642_v8 = vld [vmem:[#allocation2 + $0x10a] sm:$0xff] }
 0x28a   : > { %6497 = vst [vmem:[#allocation84_spill] sm:$0xff] %v5640_v38 }
 0x28b   : > { %2648 = vmatmul.f32.gmra.mxu0 %v5628_v42 }
 0x28c   : > { %v1673_v4 = vpop.f32.mrf.mxu3 }
 0x28d   : > { %v5632_v33 = vadd.f32 %v1673_v4, %v5483_v22  ;;  %2156 = vmatmul.f32.gmra.mxu1 %v5080_v29  ;;  %v3292_v22 = vld [vmem:[%s6345_s5 + $0x128] sm:$0xff]  ;;  %v3456_v4 = vld [vmem:[#allocation2 + $0xf8] sm:$0xff] }
 0x28e   : > { %2423 = vmatpush.msra.mxu3 %v3292_v22  ;;  %v5651_v2 = vpop.f32.mrf.mxu0  ;;  %v3457_v22 = vld [vmem:[#allocation2 + $0x108] sm:$0xff] }
 0x28f   : > { %6495 = vst [vmem:[#allocation82_spill] sm:$0xff] %v5632_v33  ;;  %v5667_v33 = vld [vmem:[#allocation2 + $0x122] sm:$0xff] }
 0x290   : > { %6498 = vst [vmem:[#allocation85_spill] sm:$0xff] %v5651_v2 }
 0x291   : > { %1757 = vmatmul.f32.gmra.mxu3 %v3455_v11  ;;  %v5655_v11 = vpop.f32.mrf.mxu1 }
 0x292   : > { %6499 = vst [vmem:[#allocation86_spill] sm:$0xff] %v5655_v11  ;;  %v3291_v11 = vld [vmem:[%s6345_s5 + $0x120] sm:$0xff] }
 0x293   : > { %2651 = vmatmul.f32.gmra.mxu0 %v5642_v8  ;;  %2424 = vmatpush.msra.mxu3 %v3291_v11 }
 0x294   : > { %v5648_v29 = vpop.f32.mrf.mxu3 }
 0x295   : > { %2159 = vmatmul.f32.gmra.mxu1 %v5074_v24  ;;  %v2963_v24 = vld [vmem:[%s6347_s7 + $0x68] sm:$0xff] }
 0x296   : > { %3000 = vmatpush.msra.mxu2 %v2963_v24 }
 0x299   : > { %1760 = vmatmul.f32.gmra.mxu3 %v3456_v4  ;;  %v6501_v4 = vld [vmem:[#allocation27_spill] sm:$0xff] }
 0x29a   : > { %v1587_v2 = vadd.f32 %v6501_v4, %v4869_v20  ;;  %v5681_v20 = vld [vmem:[#allocation2 + $0x12a] sm:$0xff] }
 0x29b   : > { %2654 = vmatmul.f32.gmra.mxu0 %v5653_v1 }
 0x29c   : > { %v1713_v38 = vpop.f32.mrf.mxu3 }
 0x29d   : > { %v5659_v36 = vadd.f32 %v1713_v38, %v4830_v19  ;;  %2162 = vmatmul.f32.gmra.mxu1 %v5082_v43  ;;  %v5673_v43 = vpop.f32.mrf.mxu0 }
 0x29f   : > { %6500 = vst [vmem:[#allocation87_spill] sm:$0xff] %v5659_v36  ;;  %v5677_v36 = vpop.f32.mrf.mxu1 }
 0x2a0   : > { %6502 = vst [vmem:[#allocation27_spill] sm:$0xff] %v5677_v36  ;;  %v5713_v36 = vld [vmem:[#allocation2 + $0x142] sm:$0xff] }
 0x2a1   : > { %1763 = vmatmul.f32.gmra.mxu3 %v3457_v22 }
 0x2a3   : > { %2657 = vmatmul.f32.gmra.mxu0 %v5667_v33 }
 0x2a4   : > { %v1716_v19 = vpop.f32.mrf.mxu3 }
 0x2a5   : > { %v5675_v38 = vadd.f32 %v1716_v19, %v1587_v2  ;;  %2753 = vmatmul.f32.vlgmr.msra.gmra.mxu1 %v5354_v9  ;;  %v5687_v4 = vpop.f32.mrf.mxu0  ;;  %v2962_v2 = vld [vmem:[%s6347_s7 + $0x60] sm:$0xff] }
 0x2a6   : > { %3001 = vmatpush.msra.mxu2 %v2962_v2  ;;  %v1596_v2 = vadd.f32 %v5051_v61, %v5019_v55  ;;  %v5727_v61 = vld [vmem:[#allocation2 + $0x152] sm:$0xff] }
 0x2a7   : > { %v5689_v11 = vpop.f32.mrf.mxu1 }
 0x2a8   : > { %6504 = vst [vmem:[#allocation89_spill] sm:$0xff] %v5689_v11 }
 0x2a9   : > { %1766 = vmatmul.f32.gmra.mxu3 %v5040_v17  ;;  %v5696_v17 = vld [vmem:[#allocation2 + $0x13a] sm:$0xff] }
 0x2ab   : > { %2660 = vmatmul.f32.gmra.mxu0 %v5681_v20 }
 0x2ac   : > { %v1719_v24 = vpop.f32.mrf.mxu3 }
 0x2ad   : > { %v5685_v22 = vadd.f32 %v1719_v24, %v5032_v26  ;;  %2756 = vmatmul.f32.gmra.mxu1 %v5367_v62  ;;  %v3290_v26 = vld [vmem:[%s6345_s5 + $0x118] sm:$0xff]  ;;  %v5706_v11 = vpop.f32.mrf.mxu0 }
 0x2ae   : > { %2425 = vmatpush.msra.mxu3 %v3290_v26 }
 0x2af   : > { %6503 = vst [vmem:[#allocation88_spill] sm:$0xff] %v5685_v22 }
 0x2b1   : > { %1769 = vmatmul.f32.gmra.mxu3 %v5099_v54  ;;  %v5709_v54 = vpop.f32.mrf.mxu1 }
 0x2b2   : > { %6505 = vst [vmem:[#allocation90_spill] sm:$0xff] %v5709_v54 }
 0x2b3   : > { %2663 = vmatmul.f32.gmra.mxu0 %v5696_v17 }
 0x2b4   : > { %v1722_v19 = vpop.f32.mrf.mxu3 }
 0x2b5   : > { %v5703_v24 = vadd.f32 %v1722_v19, %v5038_v3  ;;  %2759 = vmatmul.f32.gmra.mxu1 %v5379_v31  ;;  %v2961_v3 = vld [vmem:[%s6347_s7 + $0x58] sm:$0xff]  ;;  %v5725_v55 = vpop.f32.mrf.mxu0 }
 0x2b6   : > { %3002 = vmatpush.msra.mxu2 %v2961_v3 }
 0x2b9   : > { %1772 = vmatmul.f32.gmra.mxu3 %v5126_v63  ;;  %v1599_v63 = vadd.f32 %v5112_v32, %v5085_v5  ;;  %v5732_v19 = vpop.f32.mrf.mxu1  ;;  %v5741_v5 = vld [vmem:[#allocation2 + $0x15a] sm:$0xff] }
 0x2ba   : > { %6507 = vst [vmem:[#allocation92_spill] sm:$0xff] %v5732_v19 }
 0x2bb   : > { %2666 = vmatmul.f32.gmra.mxu0 %v5713_v36 }
 0x2bc   : > { %v1725_v22 = vpop.f32.mrf.mxu3 }
 0x2bd   : > { %v5716_v26 = vadd.f32 %v1725_v22, %v1596_v2  ;;  %2762 = vmatmul.f32.gmra.mxu1 %v5392_v25  ;;  %v3289_v22 = vld [vmem:[%s6345_s5 + $0x110] sm:$0xff]  ;;  %v5744_v3 = vpop.f32.mrf.mxu0 }
 0x2be   : > { %2426 = vmatpush.msra.mxu3 %v3289_v22 }
 0x2bf   : > { %6506 = vst [vmem:[#allocation91_spill] sm:$0xff] %v5716_v26 }
 0x2c1   : > { %1775 = vmatmul.f32.gmra.mxu3 %v5044_v14  ;;  %v1602_v14 = vadd.f32 %v5140_v15, %v5117_v44  ;;  %v5748_v26 = vpop.f32.mrf.mxu1  ;;  %v1605_v44 = vadd.f32 %v5153_v21, %v5142_v41  ;;  %v5757_v15 = vld [vmem:[#allocation2 + $0x16a] sm:$0xff]  ;;  %v5773_v41 = vld [vmem:[#allocation2 + $0x172] sm:$0xff] }
 0x2c2   : > { %6508 = vst [vmem:[#allocation93_spill] sm:$0xff] %v5748_v26 }
 0x2c3   : > { %2669 = vmatmul.f32.gmra.mxu0 %v5727_v61 }
 0x2c4   : > { %v1728_v2 = vpop.f32.mrf.mxu3 }
 0x2c5   : > { %v5735_v54 = vadd.f32 %v1728_v2, %v1599_v63  ;;  %2765 = vmatmul.f32.gmra.mxu1 %v5407_v60  ;;  %v3288_v63 = vld [vmem:[%s6345_s5 + $0x108] sm:$0xff] }
 0x2c6   : > { %2427 = vmatpush.msra.mxu3 %v3288_v63 }
 0x2c9   : > { %1778 = vmatmul.f32.gmra.mxu3 %v5105_v18  ;;  %v2960_v18 = vld [vmem:[%s6347_s7 + $0x50] sm:$0xff] }
 0x2ca   : > { %3003 = vmatpush.msra.mxu2 %v2960_v18 }
 0x2cb   : > { %2672 = vmatmul.f32.gmra.mxu0 %v5741_v5 }
 0x2cc   : > { %v1731_v32 = vpop.f32.mrf.mxu3 }
 0x2cd   : > { %v5746_v19 = vadd.f32 %v1731_v32, %v1602_v14  ;;  %2768 = vmatmul.f32.gmra.mxu1 %v5420_v46  ;;  %v5765_v14 = vpop.f32.mrf.mxu0  ;;  %v5767_v32 = vpop.f32.mrf.mxu1 }
 0x2ce   : > { %6510 = vst [vmem:[#allocation95_spill] sm:$0xff] %v5767_v32  ;;  %v5797_v32 = vpop.f32.mrf.mxu2 }
 0x2d1   : > { %1781 = vmatmul.f32.gmra.mxu3 %v5129_v0  ;;  %v1608_v0 = vadd.f32 %v5175_v27, %v5150_v58  ;;  %v1611_v58 = vadd.f32 %v5215_v59, %v5164_v6  ;;  %v5789_v27 = vld [vmem:[#allocation2 + $0x182] sm:$0xff]  ;;  %v1614_v6 = vadd.f32 %v5249_v13, %v5192_v23  ;;  %v6520_v13 = vld [vmem:[#allocation24_spill] sm:$0xff] }
 0x2d2   : > { %v6519_v23 = vld [vmem:[#allocation21_spill] sm:$0xff] }
 0x2d3   : > { %2675 = vmatmul.f32.gmra.mxu0 %v5757_v15 }
 0x2d4   : > { %v1734_v22 = vpop.f32.mrf.mxu3 }
 0x2d5   : > { %v5763_v2 = vadd.f32 %v1734_v22, %v1605_v44  ;;  %2771 = vmatmul.f32.gmra.mxu1 %v5435_v30  ;;  %v2959_v44 = vld [vmem:[%s6347_s7 + $0x48] sm:$0xff]  ;;  %v5782_v63 = vpop.f32.mrf.mxu0  ;;  %v3287_v22 = vld [vmem:[%s6345_s5 + $0x100] sm:$0xff] }
 0x2d6   : > { %6512 = vst [vmem:[#allocation97_spill] sm:$0xff] %v5782_v63  ;;  %3004 = vmatpush.msra.mxu2 %v2959_v44  ;;  %2428 = vmatpush.msra.mxu3 %v3287_v22  ;;  %v5805_v44 = vld [vmem:[#allocation2 + $0x18a] sm:$0xff] }
 0x2d7   : > { %6509 = vst [vmem:[#allocation94_spill] sm:$0xff] %v5763_v2 }
 0x2d9   : > { %1784 = vmatmul.f32.gmra.mxu3 %v5145_v12  ;;  %v5785_v12 = vpop.f32.mrf.mxu1 }
 0x2da   : > { %6513 = vst [vmem:[#allocation98_spill] sm:$0xff] %v5785_v12 }
 0x2db   : > { %2678 = vmatmul.f32.gmra.mxu0 %v5773_v41 }
 0x2dc   : > { %v1737_v21 = vpop.f32.mrf.mxu3 }
 0x2dd   : > { %v5776_v18 = vadd.f32 %v1737_v21, %v1608_v0  ;;  %2774 = vmatmul.f32.gmra.mxu1 %v5450_v50  ;;  %v5803_v59 = vpop.f32.mrf.mxu0 }
 0x2de   : > { %6515 = vst [vmem:[#allocation100_spill] sm:$0xff] %v5803_v59  ;;  %v6525_v59 = vld [vmem:[#allocation20_spill] sm:$0xff] }
 0x2df   : > { %6511 = vst [vmem:[#allocation96_spill] sm:$0xff] %v5776_v18 }
 0x2e1   : > { %1787 = vmatmul.f32.gmra.mxu3 %v5158_v47  ;;  %v1872_v47 = vld [vmem:[#allocation2 + $0x199] sm:$0xff]  ;;  %v5807_v12 = vpop.f32.mrf.mxu1 }
 0x2e2   : > { %2321 = vmatmul.f32.gmra.mxu2 %v1872_v47  ;;  %6516 = vst [vmem:[#allocation101_spill] sm:$0xff] %v5807_v12  ;;  %v5816_v47 = vpop.f32.mrf.mxu2  ;;  %v6521_v12 = vld [vmem:[#allocation14_spill] sm:$0xff] }
 0x2e3   : > { %2681 = vmatmul.f32.gmra.mxu0 %v5789_v27  ;;  %6518 = vst [vmem:[#allocation103_spill] sm:$0xff] %v5816_v47  ;;  %v1617_v26 = vadd.f32 %v6521_v12, %v6520_v13  ;;  %v6528_v12 = vld [vmem:[#allocation15_spill] sm:$0xff] }
 0x2e4   : > { %v1740_v0 = vpop.f32.mrf.mxu3 }
 0x2e5   : > { %v5795_v21 = vadd.f32 %v1740_v0, %v1611_v58  ;;  %2777 = vmatmul.f32.gmra.mxu1 %v5464_v48  ;;  %v1873_v0 = vld [vmem:[#allocation2 + $0x1a1] sm:$0xff] }
 0x2e7   : > { %6514 = vst [vmem:[#allocation99_spill] sm:$0xff] %v5795_v21 }
 0x2e9   : > { %1790 = vmatmul.f32.gmra.mxu3 %v5180_v49  ;;  %v2958_v49 = vld [vmem:[%s6347_s7 + $0x40] sm:$0xff] }
 0x2ea   : > { %2324 = vmatmul.f32.gmra.mxu2 %v1873_v0  ;;  %v1415_v0 = vld [vmem:[#allocation2 + $0x198] sm:$0xff] }
 0x2eb   : > { %2684 = vmatmul.f32.gmra.mxu0 %v5805_v44  ;;  %3005 = vmatpush.msra.mxu2 %v2958_v49 }
 0x2ec   : > { %v1743_v58 = vpop.f32.mrf.mxu3 }
 0x2ed   : > { %v5810_v22 = vadd.f32 %v1743_v58, %v1614_v6  ;;  %2780 = vmatmul.f32.gmra.mxu1 %v5480_v16  ;;  %v5823_v6 = vpop.f32.mrf.mxu1  ;;  %v6523_v58 = vld [vmem:[#allocation22_spill] sm:$0xff] }
 0x2ee   : > { %6522 = vst [vmem:[#allocation21_spill] sm:$0xff] %v5823_v6 }
 0x2ef   : > { %6517 = vst [vmem:[#allocation102_spill] sm:$0xff] %v5810_v22  ;;  %v6524_v22 = vld [vmem:[#allocation25_spill] sm:$0xff] }
 0x2f0   : > { %v1620_v2 = vadd.f32 %v6525_v59, %v6524_v22  ;;  %v6532_v22 = vld [vmem:[#allocation16_spill] sm:$0xff] }
 0x2f1   : > { %1793 = vmatmul.f32.gmra.mxu3 %v6519_v23 }
 0x2f4   : > { %v1746_v21 = vpop.f32.mrf.mxu3 }
 0x2f5   : > { %v5821_v18 = vadd.f32 %v1746_v21, %v1617_v26  ;;  %2783 = vmatmul.f32.gmra.mxu1 %v5494_v52  ;;  %v5831_v49 = vpop.f32.mrf.mxu1  ;;  %v2957_v26 = vld [vmem:[%s6347_s7 + $0x38] sm:$0xff]  ;;  %v6529_v21 = vld [vmem:[#allocation29_spill] sm:$0xff] }
 0x2f6   : > { %6527 = vst [vmem:[#allocation14_spill] sm:$0xff] %v5831_v49  ;;  %3006 = vmatpush.msra.mxu2 %v2957_v26  ;;  %v1623_v23 = vadd.f32 %v6529_v21, %v6528_v12  ;;  %v2956_v26 = vld [vmem:[%s6347_s7 + $0x30] sm:$0xff]  ;;  %v6536_v21 = vld [vmem:[#allocation38_spill] sm:$0xff] }
 0x2f7   : > { %v6535_v12 = vld [vmem:[#allocation19_spill] sm:$0xff] }
 0x2f8   : > { %3007 = vmatpush.msra.mxu2 %v2956_v26  ;;  %v2955_v26 = vld [vmem:[%s6347_s7 + $0x28] sm:$0xff] }
 0x2f9   : > { %1796 = vmatmul.f32.gmra.mxu3 %v6523_v58 }
 0x2fa   : > { %3008 = vmatpush.msra.mxu2 %v2955_v26  ;;  %v2954_v26 = vld [vmem:[%s6347_s7 + $0x20] sm:$0xff] }
 0x2fc   : > { %v1749_v47 = vpop.f32.mrf.mxu3  ;;  %3009 = vmatpush.msra.mxu2 %v2954_v26 }
 0x2fd   : > { %v5829_v63 = vadd.f32 %v1749_v47, %v1620_v2  ;;  %2786 = vmatmul.f32.gmra.mxu1 %v5511_v34  ;;  %v3458_v2 = vld [vmem:[#allocation2 + $0x8] sm:$0xff]  ;;  %v5842_v59 = vpop.f32.mrf.mxu1  ;;  %v6533_v47 = vld [vmem:[#allocation33_spill] sm:$0xff] }
 0x2fe   : > { %6531 = vst [vmem:[#allocation25_spill] sm:$0xff] %v5842_v59  ;;  %v1626_v49 = vadd.f32 %v6533_v47, %v6532_v22  ;;  %v2361_v22 = vld [vmem:[#allocation2 + $0xa] sm:$0xff] }
 0x2ff   : > { %6526 = vst [vmem:[#allocation24_spill] sm:$0xff] %v5829_v63 }
 0x301   : > { %1799 = vmatmul.f32.gmra.mxu3 %v1415_v0  ;;  %v2360_v0 = vld [vmem:[#allocation2 + $0x2] sm:$0xff] }
 0x304   : > { %v1752_v13 = vpop.f32.mrf.mxu3 }
 0x305   : > { %v5839_v58 = vadd.f32 %v1752_v13, %v1623_v23  ;;  %2789 = vmatmul.f32.gmra.mxu1 %v5528_v45  ;;  %v1629_v23 = vadd.f32 %v6536_v21, %v6535_v12  ;;  %v5854_v13 = vpop.f32.mrf.mxu1  ;;  %v6543_v12 = vld [vmem:[#allocation32_spill] sm:$0xff]  ;;  %v6544_v21 = vld [vmem:[#allocation34_spill] sm:$0xff] }
 0x306   : > { %6537 = vst [vmem:[#allocation15_spill] sm:$0xff] %v5854_v13 }
 0x307   : > { %6530 = vst [vmem:[#allocation22_spill] sm:$0xff] %v5839_v58 }
 0x309   : > { %1802 = vmatmul.f32.gmra.mxu3 %v3458_v2 }
 0x30c   : > { %v1755_v6 = vpop.f32.mrf.mxu3 }
 0x30d   : > { %v5846_v63 = vadd.f32 %v1755_v6, %v1626_v49  ;;  %2792 = vmatmul.f32.gmra.mxu1 %v5543_v40  ;;  %v6539_v6 = vld [vmem:[#allocation30_spill] sm:$0xff]  ;;  %v6540_v49 = vld [vmem:[#allocation41_spill] sm:$0xff] }
 0x30e   : > { %v1632_v47 = vadd.f32 %v6540_v49, %v6539_v6  ;;  %v6548_v49 = vld [vmem:[#allocation37_spill] sm:$0xff] }
 0x30f   : > { %6534 = vst [vmem:[#allocation20_spill] sm:$0xff] %v5846_v63 }
 0x311   : > { %2429 = vmatmul.f32.vlgmr.msra.gmra.mxu3 %v2360_v0  ;;  %v5863_v0 = vpop.f32.mrf.mxu1 }
 0x312   : > { %6542 = vst [vmem:[#allocation33_spill] sm:$0xff] %v5863_v0 }
 0x314   : > { %v1758_v2 = vpop.f32.mrf.mxu3 }
 0x315   : > { %v5856_v59 = vadd.f32 %v1758_v2, %v1629_v23  ;;  %2795 = vmatmul.f32.gmra.mxu1 %v5558_v56  ;;  %v6545_v23 = vld [vmem:[#allocation44_spill] sm:$0xff] }
 0x316   : > { %v1635_v2 = vadd.f32 %v6545_v23, %v6544_v21  ;;  %v6551_v21 = vld [vmem:[#allocation39_spill] sm:$0xff] }
 0x317   : > { %6538 = vst [vmem:[#allocation29_spill] sm:$0xff] %v5856_v59  ;;  %v6552_v23 = vld [vmem:[#allocation51_spill] sm:$0xff] }
 0x319   : > { %2432 = vmatmul.f32.gmra.mxu3 %v2361_v22  ;;  %v5874_v6 = vpop.f32.mrf.mxu1 }
 0x31a   : > { %6546 = vst [vmem:[#allocation19_spill] sm:$0xff] %v5874_v6 }
 0x31c   : > { %v1761_v63 = vpop.f32.mrf.mxu3 }
 0x31d   : > { %v5861_v58 = vadd.f32 %v1761_v63, %v1632_v47  ;;  %2798 = vmatmul.f32.gmra.mxu1 %v5576_v37  ;;  %v6547_v63 = vld [vmem:[#allocation36_spill] sm:$0xff]  ;;  %v6549_v47 = vld [vmem:[#allocation47_spill] sm:$0xff] }
 0x31e   : > { %v1638_v0 = vadd.f32 %v6549_v47, %v6548_v49  ;;  %v5893_v49 = vpop.f32.mrf.mxu2 }
 0x31f   : > { %6541 = vst [vmem:[#allocation16_spill] sm:$0xff] %v5861_v58 }
 0x321   : > { %2435 = vmatmul.f32.gmra.mxu3 %v6543_v12  ;;  %v5887_v12 = vpop.f32.mrf.mxu1 }
 0x322   : > { %6550 = vst [vmem:[#allocation38_spill] sm:$0xff] %v5887_v12 }
 0x324   : > { %v1764_v22 = vpop.f32.mrf.mxu3 }
 0x325   : > { %v5872_v13 = vadd.f32 %v1764_v22, %v1635_v2  ;;  %2801 = vmatmul.f32.gmra.mxu1 %v5605_v57  ;;  %v1641_v2 = vadd.f32 %v6552_v23, %v6551_v21  ;;  %v2953_v21 = vld [vmem:[%s6347_s7 + $0x18] sm:$0xff]  ;;  %v6559_v23 = vld [vmem:[#allocation57_spill] sm:$0xff] }
 0x326   : > { %v5903_v12 = vpop.f32.mrf.mxu2  ;;  %3010 = vmatpush.msra.mxu2 %v2953_v21 }
 0x329   : > { %2438 = vmatmul.f32.gmra.mxu3 %v6547_v63  ;;  %v5899_v6 = vpop.f32.mrf.mxu1 }
 0x32a   : > { %6556 = vst [vmem:[#allocation41_spill] sm:$0xff] %v5899_v6  ;;  %v6562_v6 = vld [vmem:[#allocation60_spill] sm:$0xff] }
 0x32c   : > { %v1767_v58 = vpop.f32.mrf.mxu3 }
 0x32d   : > { %v5880_v59 = vadd.f32 %v1767_v58, %v1638_v0  ;;  %2804 = vmatmul.f32.gmra.mxu1 %v5628_v42  ;;  %v6554_v58 = vld [vmem:[#allocation42_spill] sm:$0xff] }
 0x32e   : > { %v6555_v0 = vld [vmem:[#allocation54_spill] sm:$0xff] }
 0x32f   : > { %v1644_v47 = vadd.f32 %v6555_v0, %v6554_v58 }
 0x331   : > { %2441 = vmatmul.f32.gmra.mxu3 %v5354_v9  ;;  %v5914_v0 = vpop.f32.mrf.mxu1 }
 0x332   : > { %6560 = vst [vmem:[#allocation34_spill] sm:$0xff] %v5914_v0 }
 0x334   : > { %v1770_v22 = vpop.f32.mrf.mxu3 }
 0x335   : > { %v5891_v63 = vadd.f32 %v1770_v22, %v1641_v2  ;;  %2807 = vmatmul.f32.gmra.mxu1 %v5642_v8 }
 0x337   : > { %6553 = vst [vmem:[#allocation30_spill] sm:$0xff] %v5891_v63 }
 0x339   : > { %2444 = vmatmul.f32.gmra.mxu3 %v5367_v62  ;;  %v6558_v62 = vld [vmem:[#allocation45_spill] sm:$0xff]  ;;  %v5924_v21 = vpop.f32.mrf.mxu1 }
 0x33a   : > { %v1647_v2 = vadd.f32 %v6559_v23, %v6558_v62  ;;  %6563 = vst [vmem:[#allocation44_spill] sm:$0xff] %v5924_v21  ;;  %v2952_v62 = vld [vmem:[%s6347_s7 + $0x10] sm:$0xff] }
 0x33b   : > { %3011 = vmatpush.msra.mxu2 %v2952_v62 }
 0x33c   : > { %v1773_v9 = vpop.f32.mrf.mxu3 }
 0x33d   : > { %v5901_v26 = vadd.f32 %v1773_v9, %v1644_v47  ;;  %2810 = vmatmul.f32.gmra.mxu1 %v5653_v1  ;;  %v5918_v47 = vpop.f32.mrf.mxu2  ;;  %v6561_v9 = vld [vmem:[#allocation48_spill] sm:$0xff] }
 0x33f   : > { %6557 = vst [vmem:[#allocation32_spill] sm:$0xff] %v5901_v26  ;;  %v1650_v26 = vadd.f32 %v6562_v6, %v6561_v9 }
 0x341   : > { %2447 = vmatmul.f32.gmra.mxu3 %v5379_v31  ;;  %v2754_v6 = vpop.f32.mrf.mxu1 }
 0x344   : > { %v1776_v22 = vpop.f32.mrf.mxu3 }
 0x345   : > { %v5912_v58 = vadd.f32 %v1776_v22, %v1647_v2  ;;  %2813 = vmatmul.f32.gmra.mxu1 %v5667_v33 }
 0x349   : > { %2450 = vmatmul.f32.gmra.mxu3 %v5392_v25  ;;  %v5931_v25 = vpop.f32.mrf.mxu2 }
 0x34c   : > { %v1779_v63 = vpop.f32.mrf.mxu3 }
 0x34d   : > { %v5922_v31 = vadd.f32 %v1779_v63, %v1650_v26  ;;  %2816 = vmatmul.f32.gmra.mxu1 %v5681_v20 }
 0x351   : > { %2453 = vmatmul.f32.gmra.mxu3 %v5407_v60  ;;  %v5941_v22 = vpop.f32.mrf.mxu2  ;;  %v2951_v60 = vld [vmem:[%s6347_s7 + $0x8] sm:$0xff] }
 0x352   : > { %3012 = vmatpush.msra.mxu2 %v2951_v60 }
 0x354   : > { %v1782_v23 = vpop.f32.mrf.mxu3 }
 0x355   : > { %v5934_v2 = vadd.f32 %v1782_v23, %v5503_v53  ;;  %2819 = vmatmul.f32.gmra.mxu1 %v5696_v17  ;;  %v2757_v53 = vpop.f32.mrf.mxu1 }
 0x357   : > { %6564 = vst [vmem:[#allocation36_spill] sm:$0xff] %v5934_v2  ;;  %v6583_v2 = vld [vmem:[#allocation55_spill] sm:$0xff] }
 0x359   : > { %2456 = vmatmul.f32.gmra.mxu3 %v5420_v46  ;;  %v5951_v62 = vpop.f32.mrf.mxu2 }
 0x35c   : > { %v1785_v63 = vpop.f32.mrf.mxu3 }
 0x35d   : > { %v5939_v26 = vadd.f32 %v1785_v63, %v5515_v39  ;;  %2822 = vmatmul.f32.gmra.mxu1 %v5713_v36  ;;  %v5958_v63 = vpop.f32.mrf.mxu1 }
 0x35f   : > { %6565 = vst [vmem:[#allocation37_spill] sm:$0xff] %v5939_v26 }
 0x361   : > { %2459 = vmatmul.f32.gmra.mxu3 %v5435_v30  ;;  %v2950_v30 = vld [vmem:[%s6347_s7] sm:$0xff] }
 0x362   : > { %3013 = vmatpush.msra.mxu2 %v2950_v30  ;;  %v6570_v30 = vld [vmem:[#allocation23_spill] sm:$0xff] }
 0x364   : > { %v1788_v9 = vpop.f32.mrf.mxu3 }
 0x365   : > { %v5949_v46 = vadd.f32 %v1788_v9, %v5535_v10  ;;  %2825 = vmatmul.f32.gmra.mxu1 %v5727_v61  ;;  %v5965_v10 = vpop.f32.mrf.mxu2  ;;  %v5970_v9 = vpop.f32.mrf.mxu1 }
 0x367   : > { %6566 = vst [vmem:[#allocation47_spill] sm:$0xff] %v5949_v46  ;;  %v6574_v46 = vld [vmem:[#allocation82_spill] sm:$0xff] }
 0x369   : > { %2462 = vmatmul.f32.gmra.mxu3 %v5450_v50 }
 0x36c   : > { %v1791_v39 = vpop.f32.mrf.mxu3 }
 0x36d   : > { %v5956_v23 = vadd.f32 %v1791_v39, %v5549_v35  ;;  %2828 = vmatmul.f32.gmra.mxu1 %v5741_v5  ;;  %v5974_v35 = vpop.f32.mrf.mxu2 }
 0x36f   : > { %6567 = vst [vmem:[#allocation39_spill] sm:$0xff] %v5956_v23 }
 0x371   : > { %2465 = vmatmul.f32.gmra.mxu3 %v5464_v48  ;;  %v5981_v48 = vpop.f32.mrf.mxu1 }
 0x374   : > { %v1794_v60 = vpop.f32.mrf.mxu3 }
 0x375   : > { %v5968_v50 = vadd.f32 %v1794_v60, %v5567_v7  ;;  %2831 = vmatmul.f32.gmra.mxu1 %v5757_v15  ;;  %v6571_v60 = vld [vmem:[#allocation18_spill] sm:$0xff] }
 0x376   : > { %v1581_v0 = vadd.f32 %v6571_v60, %v6570_v30  ;;  %v6576_v30 = vld [vmem:[#allocation50_spill] sm:$0xff] }
 0x377   : > { %6568 = vst [vmem:[#allocation51_spill] sm:$0xff] %v5968_v50 }
 0x378   : > { %v1806_v23 = vadd.f32 %v5648_v29, %v1581_v0  ;;  %v6577_v29 = vld [vmem:[#allocation87_spill] sm:$0xff] }
 0x379   : > { %2468 = vmatmul.f32.gmra.mxu3 %v5480_v16  ;;  %v5988_v16 = vpop.f32.mrf.mxu2 }
 0x37c   : > { %v1797_v39 = vpop.f32.mrf.mxu3 }
 0x37d   : > { %v5977_v21 = vadd.f32 %v1797_v39, %v5585_v51  ;;  %2834 = vmatmul.f32.gmra.mxu1 %v5773_v41  ;;  %v6573_v51 = vld [vmem:[#allocation26_spill] sm:$0xff] }
 0x37e   : > { %v2004_v39 = vadd.f32 %v6573_v51, %v1806_v23 }
 0x37f   : > { %6569 = vst [vmem:[#allocation42_spill] sm:$0xff] %v5977_v21 }
 0x380   : > { %v2166_v60 = vadd.f32 %v6576_v30, %v2004_v39  ;;  %v6580_v39 = vld [vmem:[#allocation53_spill] sm:$0xff] }
 0x381   : > { %2471 = vmatmul.f32.gmra.mxu3 %v5494_v52  ;;  %v5994_v52 = vpop.f32.mrf.mxu1 }
 0x384   : > { %v1800_v7 = vpop.f32.mrf.mxu3 }
 0x385   : > { %v5986_v50 = vadd.f32 %v1800_v7, %v5615_v28  ;;  %2837 = vmatmul.f32.gmra.mxu1 %v5789_v27  ;;  %v6000_v28 = vpop.f32.mrf.mxu2  ;;  %v6578_v27 = vld [vmem:[#allocation7_spill] sm:$0xff] }
 0x386   : > { %v2005_v0 = vadd.f32 %v6578_v27, %v6577_v29 }
 0x387   : > { %6572 = vst [vmem:[#allocation54_spill] sm:$0xff] %v5986_v50 }
 0x389   : > { %2474 = vmatmul.f32.gmra.mxu3 %v5511_v34  ;;  %v6579_v34 = vld [vmem:[#allocation64_spill] sm:$0xff]  ;;  %v6007_v50 = vpop.f32.mrf.mxu1 }
 0x38a   : > { %v2328_v7 = vadd.f32 %v6579_v34, %v2166_v60  ;;  %v6581_v60 = vld [vmem:[#allocation9_spill] sm:$0xff]  ;;  %v6582_v34 = vld [vmem:[#allocation67_spill] sm:$0xff] }
 0x38b   : > { %v2006_v29 = vadd.f32 %v6581_v60, %v5675_v38  ;;  %v6586_v60 = vld [vmem:[#allocation70_spill] sm:$0xff] }
 0x38c   : > { %v1803_v21 = vpop.f32.mrf.mxu3 }
 0x38d   : > { %v5997_v26 = vadd.f32 %v1803_v21, %v6574_v46  ;;  %2840 = vmatmul.f32.gmra.mxu1 %v5805_v44  ;;  %v6013_v46 = vld [vmem:[%s6346_s6] ss:$0 sm:$0xff]  ;;  %v2167_v44 = vadd.f32 %v6580_v39, %v2005_v0  ;;  %v2168_v0 = vadd.f32 %v6583_v2, %v2006_v29  ;;  %v6585_v39 = vld [vmem:[#allocation6_spill] sm:$0xff] }
 0x38f   : > { %6575 = vst [vmem:[#allocation45_spill] sm:$0xff] %v5997_v26 }
 0x391   : > { %2477 = vmatmul.f32.gmra.mxu3 %v5528_v45  ;;  %v6017_v45 = vpop.f32.mrf.mxu2 }
 0x394   : > { %v2430_v23 = vpop.f32.mrf.mxu3 }
 0x395   : > { %v2526_v51 = vadd.f32 %v2430_v23, %v2328_v7  ;;  %v2329_v7 = vadd.f32 %v6582_v34, %v2167_v44 }
 0x397   : > { %v2688_v21 = vadd.f32 %v5673_v43, %v2526_v51 }
 0x399   : > { %v2850_v30 = vadd.f32 %v2754_v6, %v2688_v21  ;;  %2480 = vmatmul.f32.gmra.mxu3 %v5543_v40  ;;  %v6025_v6 = vpop.f32.mrf.mxu1  ;;  %v6584_v21 = vld [vmem:[#allocation88_spill] sm:$0xff]  ;;  %v6032_v34 = vpop.f32.mrf.mxu2 }
 0x39a   : > { %v2007_v38 = vadd.f32 %v6585_v39, %v6584_v21 }
 0x39b   : > { %v2886_v27 = vadd.f32 %v6013_v46, %v2850_v30  ;;  %v2330_v30 = vadd.f32 %v6586_v60, %v2168_v0  ;;  %v6589_v0 = vld [vmem:[#allocation73_spill] sm:$0xff] }
 0x39c   : > { %v2433_v43 = vpop.f32.mrf.mxu3 }
 0x39d   : > { %v2918_v23 = vmax.f32 %v2886_v27, 0.0  ;;  %v2527_v51 = vadd.f32 %v2433_v43, %v2329_v7  ;;  %v6034_v43 = vpop.f32.mrf.mxu0 }
 0x39f   : > { %v2689_v26 = vadd.f32 %v5687_v4, %v2527_v51  ;;  %3014 = vmatmul.f32.vlgmr.msra.gmra.mxu2 %v2918_v23  ;;  %v6588_v23 = vld [vmem:[#allocation3_spill] sm:$0xff] }
 0x3a0   : > { %v2008_v51 = vadd.f32 %v6588_v23, %v5703_v24  ;;  %v6591_v24 = vld [vmem:[#allocation91_spill] sm:$0xff] }
 0x3a1   : > { %v2851_v40 = vadd.f32 %v2757_v53, %v2689_v26  ;;  %2483 = vmatmul.f32.gmra.mxu3 %v5558_v56  ;;  %v6587_v26 = vld [vmem:[#allocation58_spill] sm:$0xff]  ;;  %v6040_v29 = vpop.f32.mrf.mxu1 }
 0x3a2   : > { %v2169_v53 = vadd.f32 %v6587_v26, %v2007_v38 }
 0x3a3   : > { %v2887_v44 = vadd.f32 %v6013_v46, %v2851_v40 }
 0x3a4   : > { %v2436_v27 = vpop.f32.mrf.mxu3  ;;  %v2331_v40 = vadd.f32 %v6589_v0, %v2169_v53 }
 0x3a5   : > { %v2528_v7 = vadd.f32 %v2436_v27, %v2330_v30  ;;  %v2919_v4 = vmax.f32 %v2887_v44, 0.0 }
 0x3a7   : > { %v2690_v2 = vadd.f32 %v5706_v11, %v2528_v7  ;;  %3017 = vmatmul.f32.gmra.mxu2 %v2919_v4  ;;  %v6046_v11 = vpop.f32.mrf.mxu2  ;;  %v6592_v7 = vld [vmem:[#allocation10_spill] sm:$0xff] }
 0x3a8   : > { %v2009_v4 = vadd.f32 %v6592_v7, %v6591_v24 }
 0x3a9   : > { %v2852_v56 = vadd.f32 %v5958_v63, %v2690_v2  ;;  %2486 = vmatmul.f32.gmra.mxu3 %v5576_v37  ;;  %v6590_v63 = vld [vmem:[#allocation61_spill] sm:$0xff]  ;;  %v6050_v37 = vpop.f32.mrf.mxu0  ;;  %v6593_v2 = vld [vmem:[#allocation76_spill] sm:$0xff] }
 0x3aa   : > { %v2170_v44 = vadd.f32 %v6590_v63, %v2008_v51 }
 0x3ab   : > { %v2888_v21 = vadd.f32 %v6013_v46, %v2852_v56  ;;  %v6058_v56 = vpop.f32.mrf.mxu1 }
 0x3ac   : > { %v2439_v39 = vpop.f32.mrf.mxu3  ;;  %v2332_v26 = vadd.f32 %v6593_v2, %v2170_v44 }
 0x3ad   : > { %v2529_v60 = vadd.f32 %v2439_v39, %v2331_v40  ;;  %v2920_v30 = vmax.f32 %v2888_v21, 0.0  ;;  %v6594_v40 = vld [vmem:[#allocation63_spill] sm:$0xff] }
 0x3ae   : > { %v2171_v21 = vadd.f32 %v6594_v40, %v2009_v4 }
 0x3af   : > { %v2691_v38 = vadd.f32 %v5725_v55, %v2529_v60  ;;  %3020 = vmatmul.f32.gmra.mxu2 %v2920_v30  ;;  %v6595_v60 = vld [vmem:[#allocation11_spill] sm:$0xff] }
 0x3b0   : > { %v2010_v30 = vadd.f32 %v6595_v60, %v5735_v54  ;;  %v6598_v54 = vld [vmem:[#allocation12_spill] sm:$0xff] }
 0x3b1   : > { %v2853_v27 = vadd.f32 %v5970_v9, %v2691_v38  ;;  %2489 = vmatmul.f32.gmra.mxu3 %v5605_v57  ;;  %v6062_v9 = vpop.f32.mrf.mxu2  ;;  %v6066_v39 = vpop.f32.mrf.mxu0  ;;  %v6596_v38 = vld [vmem:[#allocation79_spill] sm:$0xff] }
 0x3b2   : > { %v2333_v63 = vadd.f32 %v6596_v38, %v2171_v21  ;;  %v6599_v21 = vld [vmem:[#allocation97_spill] sm:$0xff] }
 0x3b3   : > { %v2889_v53 = vadd.f32 %v6013_v46, %v2853_v27  ;;  %v6072_v7 = vpop.f32.mrf.mxu1 }
 0x3b4   : > { %v2442_v23 = vpop.f32.mrf.mxu3 }
 0x3b5   : > { %v2530_v55 = vadd.f32 %v2442_v23, %v2332_v26  ;;  %v2921_v0 = vmax.f32 %v2889_v53, 0.0  ;;  %v2011_v53 = vadd.f32 %v6598_v54, %v5746_v19  ;;  %v6601_v19 = vld [vmem:[#allocation94_spill] sm:$0xff] }
 0x3b7   : > { %v2692_v51 = vadd.f32 %v5744_v3, %v2530_v55  ;;  %3023 = vmatmul.f32.gmra.mxu2 %v2921_v0 }
 0x3b9   : > { %v2854_v57 = vadd.f32 %v5981_v48, %v2692_v51  ;;  %2492 = vmatmul.f32.gmra.mxu3 %v5628_v42  ;;  %v6597_v48 = vld [vmem:[#allocation66_spill] sm:$0xff]  ;;  %v6078_v26 = vpop.f32.mrf.mxu2  ;;  %v6084_v51 = vpop.f32.mrf.mxu0 }
 0x3ba   : > { %v2172_v2 = vadd.f32 %v6597_v48, %v2010_v30 }
 0x3bb   : > { %v2890_v44 = vadd.f32 %v6013_v46, %v2854_v57 }
 0x3bc   : > { %v2445_v27 = vpop.f32.mrf.mxu3  ;;  %v2334_v23 = vadd.f32 %v5797_v32, %v2172_v2  ;;  %v6602_v32 = vld [vmem:[#allocation5_spill] sm:$0xff] }
 0x3bd   : > { %v2531_v3 = vadd.f32 %v2445_v27, %v2333_v63  ;;  %v2922_v24 = vmax.f32 %v2890_v44, 0.0  ;;  %v2012_v38 = vadd.f32 %v6602_v32, %v6601_v19  ;;  %v6603_v63 = vld [vmem:[#allocation103_spill] sm:$0xff] }
 0x3bf   : > { %v2693_v4 = vadd.f32 %v5765_v14, %v2531_v3  ;;  %3026 = vmatmul.f32.gmra.mxu2 %v2922_v24 }
 0x3c1   : > { %v2855_v42 = vadd.f32 %v5994_v52, %v2693_v4  ;;  %2495 = vmatmul.f32.gmra.mxu3 %v5642_v8  ;;  %v6600_v52 = vld [vmem:[#allocation69_spill] sm:$0xff]  ;;  %v6088_v8 = vpop.f32.mrf.mxu1  ;;  %v6096_v3 = vpop.f32.mrf.mxu2 }
 0x3c2   : > { %v2173_v60 = vadd.f32 %v6600_v52, %v2011_v53  ;;  %v6098_v2 = vpop.f32.mrf.mxu0 }
 0x3c3   : > { %v2891_v55 = vadd.f32 %v6013_v46, %v2855_v42  ;;  %v6604_v42 = vld [vmem:[#allocation100_spill] sm:$0xff] }
 0x3c4   : > { %v2448_v0 = vpop.f32.mrf.mxu3  ;;  %v2335_v44 = vadd.f32 %v6603_v63, %v2173_v60  ;;  %v6609_v63 = vld [vmem:[#allocation99_spill] sm:$0xff] }
 0x3c5   : > { %v2532_v14 = vadd.f32 %v2448_v0, %v2334_v23  ;;  %v2923_v40 = vmax.f32 %v2891_v55, 0.0  ;;  %v6606_v55 = vld [vmem:[#allocation96_spill] sm:$0xff]  ;;  %v6607_v0 = vld [vmem:[#allocation13_spill] sm:$0xff] }
 0x3c7   : > { %v2694_v57 = vadd.f32 %v6599_v21, %v2532_v14  ;;  %3029 = vmatmul.f32.gmra.mxu2 %v2923_v40  ;;  %v2013_v14 = vadd.f32 %v6607_v0, %v6606_v55  ;;  %v6613_v55 = vld [vmem:[#allocation4_spill] sm:$0xff] }
 0x3c9   : > { %v2856_v30 = vadd.f32 %v6007_v50, %v2694_v57  ;;  %2498 = vmatmul.f32.gmra.mxu3 %v5653_v1  ;;  %v6605_v50 = vld [vmem:[#allocation72_spill] sm:$0xff]  ;;  %v6104_v23 = vpop.f32.mrf.mxu1 }
 0x3ca   : > { %v2174_v53 = vadd.f32 %v6605_v50, %v2012_v38  ;;  %v6611_v50 = vld [vmem:[#allocation78_spill] sm:$0xff] }
 0x3cb   : > { %v2892_v27 = vadd.f32 %v6013_v46, %v2856_v30  ;;  %v6110_v30 = vpop.f32.mrf.mxu2 }
 0x3cc   : > { %v2451_v24 = vpop.f32.mrf.mxu3  ;;  %v2336_v40 = vadd.f32 %v5893_v49, %v2174_v53  ;;  %v6610_v49 = vld [vmem:[#allocation8_spill] sm:$0xff] }
 0x3cd   : > { %v2533_v4 = vadd.f32 %v2451_v24, %v2335_v44  ;;  %v2924_v48 = vmax.f32 %v2892_v27, 0.0  ;;  %v2014_v44 = vadd.f32 %v6610_v49, %v6609_v63 }
 0x3cf   : > { %v2695_v54 = vadd.f32 %v6604_v42, %v2533_v4  ;;  %3032 = vmatmul.f32.gmra.mxu2 %v2924_v48  ;;  %v2176_v53 = vadd.f32 %v6611_v50, %v2014_v44 }
 0x3d1   : > { %v2857_v1 = vadd.f32 %v6025_v6, %v2695_v54  ;;  %2501 = vmatmul.f32.gmra.mxu3 %v5667_v33  ;;  %v6608_v6 = vld [vmem:[#allocation75_spill] sm:$0xff]  ;;  %v6114_v33 = vpop.f32.mrf.mxu0  ;;  %v6122_v4 = vpop.f32.mrf.mxu1 }
 0x3d2   : > { %v2175_v32 = vadd.f32 %v6608_v6, %v2013_v14  ;;  %v2338_v14 = vadd.f32 %v5918_v47, %v2176_v53 }
 0x3d3   : > { %v2893_v21 = vadd.f32 %v6013_v46, %v2857_v1 }
 0x3d4   : > { %v2454_v57 = vpop.f32.mrf.mxu3  ;;  %v2337_v27 = vadd.f32 %v5903_v12, %v2175_v32  ;;  %v6612_v12 = vld [vmem:[#allocation102_spill] sm:$0xff]  ;;  %v6615_v32 = vld [vmem:[#allocation17_spill] sm:$0xff] }
 0x3d5   : > { %v2534_v52 = vadd.f32 %v2454_v57, %v2336_v40  ;;  %v2925_v60 = vmax.f32 %v2893_v21, 0.0  ;;  %v2015_v0 = vadd.f32 %v6613_v55, %v6612_v12  ;;  %v2016_v47 = vadd.f32 %v6615_v32, %v5821_v18  ;;  %v6617_v18 = vld [vmem:[#allocation24_spill] sm:$0xff] }
 0x3d7   : > { %v2696_v19 = vadd.f32 %v6034_v43, %v2534_v52  ;;  %3035 = vmatmul.f32.gmra.mxu2 %v2925_v60 }
 0x3d9   : > { %v2858_v38 = vadd.f32 %v6040_v29, %v2696_v19  ;;  %2504 = vmatmul.f32.gmra.mxu3 %v5681_v20  ;;  %v6126_v29 = vpop.f32.mrf.mxu2  ;;  %v6130_v1 = vpop.f32.mrf.mxu0  ;;  %v6614_v19 = vld [vmem:[#allocation81_spill] sm:$0xff] }
 0x3da   : > { %v2796_v52 = vpop.f32.mrf.mxu1 }
 0x3db   : > { %v2894_v24 = vadd.f32 %v6013_v46, %v2858_v38 }
 0x3dc   : > { %v2457_v48 = vpop.f32.mrf.mxu3 }
 0x3dd   : > { %v2535_v43 = vadd.f32 %v2457_v48, %v2337_v27  ;;  %v2926_v42 = vmax.f32 %v2894_v24, 0.0  ;;  %v2394_v24 = vld [vmem:[#allocation2 + $0x19a] sm:$0xff] }
 0x3de   : > { %2843 = vmatmul.f32.gmra.mxu1 %v2394_v24 }
 0x3df   : > { %v2697_v54 = vadd.f32 %v6050_v37, %v2535_v43  ;;  %3038 = vmatmul.f32.gmra.mxu2 %v2926_v42 }
 0x3e1   : > { %v2859_v20 = vadd.f32 %v6058_v56, %v2697_v54  ;;  %2507 = vmatmul.f32.gmra.mxu3 %v5696_v17  ;;  %v2177_v56 = vadd.f32 %v6614_v19, %v2015_v0  ;;  %v6140_v6 = vpop.f32.mrf.mxu2  ;;  %v2637_v44 = vpop.f32.mrf.mxu0 }
 0x3e2   : > { %v2799_v43 = vpop.f32.mrf.mxu1 }
 0x3e3   : > { %v2895_v40 = vadd.f32 %v6013_v46, %v2859_v20  ;;  %v2339_v38 = vadd.f32 %v5931_v25, %v2177_v56  ;;  %v6618_v25 = vld [vmem:[#allocation28_spill] sm:$0xff]  ;;  %v2395_v20 = vld [vmem:[#allocation2 + $0x1a2] sm:$0xff] }
 0x3e4   : > { %v2460_v21 = vpop.f32.mrf.mxu3  ;;  %v2017_v54 = vadd.f32 %v6618_v25, %v6617_v18  ;;  %v6625_v25 = vld [vmem:[#allocation89_spill] sm:$0xff] }
 0x3e5   : > { %v2536_v37 = vadd.f32 %v2460_v21, %v2338_v14  ;;  %v2927_v57 = vmax.f32 %v2895_v40, 0.0 }
 0x3e6   : > { %2846 = vmatmul.f32.gmra.mxu1 %v2395_v20  ;;  %v6627_v20 = vld [vmem:[#allocation40_spill] sm:$0xff] }
 0x3e7   : > { %v2698_v60 = vadd.f32 %v6066_v39, %v2536_v37  ;;  %3041 = vmatmul.f32.gmra.mxu2 %v2927_v57  ;;  %v6620_v37 = vld [vmem:[#allocation22_spill] sm:$0xff]  ;;  %v6621_v57 = vld [vmem:[#allocation31_spill] sm:$0xff] }
 0x3e9   : > { %v2860_v17 = vadd.f32 %v6072_v7, %v2698_v60  ;;  %2510 = vmatmul.f32.gmra.mxu3 %v5713_v36  ;;  %v6616_v7 = vld [vmem:[#allocation84_spill] sm:$0xff]  ;;  %v6154_v12 = vpop.f32.mrf.mxu2  ;;  %v2640_v14 = vpop.f32.mrf.mxu0  ;;  %v2018_v60 = vadd.f32 %v6621_v57, %v6620_v37 }
 0x3ea   : > { %v2178_v36 = vadd.f32 %v6616_v7, %v2016_v47 }
 0x3eb   : > { %v2896_v63 = vadd.f32 %v6013_v46, %v2860_v17 }
 0x3ec   : > { %v2463_v49 = vpop.f32.mrf.mxu3  ;;  %v2340_v50 = vadd.f32 %v5941_v22, %v2178_v36  ;;  %v2802_v22 = vpop.f32.mrf.mxu1 }
 0x3ed   : > { %v2537_v27 = vadd.f32 %v2463_v49, %v2339_v38  ;;  %v2928_v39 = vmax.f32 %v2896_v63, 0.0  ;;  %v6622_v63 = vld [vmem:[#allocation27_spill] sm:$0xff] }
 0x3ef   : > { %v2699_v48 = vadd.f32 %v6084_v51, %v2537_v27  ;;  %3044 = vmatmul.f32.gmra.mxu2 %v2928_v39  ;;  %v6623_v27 = vld [vmem:[#allocation20_spill] sm:$0xff]  ;;  %v6624_v39 = vld [vmem:[#allocation35_spill] sm:$0xff] }
 0x3f1   : > { %v2861_v42 = vadd.f32 %v6088_v8, %v2699_v48  ;;  %2513 = vmatmul.f32.gmra.mxu3 %v5727_v61  ;;  %v6619_v8 = vld [vmem:[#allocation86_spill] sm:$0xff]  ;;  %v6164_v38 = vpop.f32.mrf.mxu2  ;;  %v2643_v49 = vpop.f32.mrf.mxu0 }
 0x3f2   : > { %v2179_v61 = vadd.f32 %v6619_v8, %v2017_v54 }
 0x3f3   : > { %v2897_v53 = vadd.f32 %v6013_v46, %v2861_v42 }
 0x3f4   : > { %v2466_v55 = vpop.f32.mrf.mxu3  ;;  %v2341_v19 = vadd.f32 %v5951_v62, %v2179_v61  ;;  %v2019_v62 = vadd.f32 %v6624_v39, %v6623_v27  ;;  %v2805_v7 = vpop.f32.mrf.mxu1  ;;  %v6632_v39 = vld [vmem:[#allocation46_spill] sm:$0xff] }
 0x3f5   : > { %v2538_v51 = vadd.f32 %v2466_v55, %v2340_v50  ;;  %v2929_v0 = vmax.f32 %v2897_v53, 0.0  ;;  %v6626_v53 = vld [vmem:[#allocation29_spill] sm:$0xff] }
 0x3f6   : > { %v2181_v54 = vadd.f32 %v6625_v25, %v2019_v62  ;;  %v2022_v62 = vadd.f32 %v6632_v39, %v5872_v13 }
 0x3f7   : > { %v2700_v40 = vadd.f32 %v6098_v2, %v2538_v51  ;;  %3047 = vmatmul.f32.gmra.mxu2 %v2929_v0 }
 0x3f8   : > { %v2343_v55 = vadd.f32 %v5974_v35, %v2181_v54  ;;  %v2966_v54 = vld [vmem:[%s3578_s20] sm:$0xff] }
 0x3f9   : > { %v2862_v21 = vadd.f32 %v6104_v23, %v2700_v40  ;;  %2516 = vmatmul.f32.gmra.mxu3 %v5741_v5  ;;  %v2180_v23 = vadd.f32 %v6622_v63, %v2018_v60  ;;  %v6176_v50 = vpop.f32.mrf.mxu2  ;;  %v6630_v60 = vld [vmem:[#allocation43_spill] sm:$0xff] }
 0x3fb   : > { %v2898_v56 = vadd.f32 %v6013_v46, %v2862_v21  ;;  %v2342_v24 = vadd.f32 %v5965_v10, %v2180_v23  ;;  %v2020_v10 = vadd.f32 %v6627_v20, %v6626_v53  ;;  %v6628_v21 = vld [vmem:[#allocation90_spill] sm:$0xff] }
 0x3fc   : > { %v2469_v17 = vpop.f32.mrf.mxu3 }
 0x3fd   : > { %v2539_v32 = vadd.f32 %v2469_v17, %v2341_v19  ;;  %v2930_v47 = vmax.f32 %v2898_v56, 0.0  ;;  %v2182_v37 = vadd.f32 %v6628_v21, %v2020_v10 }
 0x3ff   : > { %v2701_v2 = vadd.f32 %v6114_v33, %v2539_v32  ;;  %3050 = vmatmul.f32.gmra.mxu2 %v2930_v47  ;;  %v2344_v56 = vadd.f32 %v5988_v16, %v2182_v37 }
 0x401   : > { %v2863_v5 = vadd.f32 %v6122_v4, %v2701_v2  ;;  %2519 = vmatmul.f32.gmra.mxu3 %v5757_v15  ;;  %v2646_v15 = vpop.f32.mrf.mxu0  ;;  %v6184_v57 = vpop.f32.mrf.mxu2 }
 0x403   : > { %v2899_v48 = vadd.f32 %v6013_v46, %v2863_v5 }
 0x404   : > { %v2472_v36 = vpop.f32.mrf.mxu3 }
 0x405   : > { %v2540_v42 = vadd.f32 %v2472_v36, %v2342_v24  ;;  %v2931_v18 = vmax.f32 %v2899_v48, 0.0 }
 0x407   : > { %v2702_v33 = vadd.f32 %v6130_v1, %v2540_v42  ;;  %3053 = vmatmul.f32.gmra.mxu2 %v2931_v18  ;;  %v2808_v1 = vpop.f32.mrf.mxu1 }
 0x409   : > { %v2864_v4 = vadd.f32 %v2796_v52, %v2702_v33  ;;  %2522 = vmatmul.f32.gmra.mxu3 %v5773_v41  ;;  %v6629_v41 = vld [vmem:[#allocation16_spill] sm:$0xff]  ;;  %v2649_v32 = vpop.f32.mrf.mxu0  ;;  %v6633_v33 = vld [vmem:[#allocation93_spill] sm:$0xff] }
 0x40a   : > { %v2021_v19 = vadd.f32 %v6630_v60, %v6629_v41  ;;  %v2184_v25 = vadd.f32 %v6633_v33, %v2022_v62  ;;  %v6637_v41 = vld [vmem:[#allocation52_spill] sm:$0xff] }
 0x40b   : > { %v2900_v51 = vadd.f32 %v6013_v46, %v2864_v4  ;;  %v6639_v62 = vld [vmem:[#allocation32_spill] sm:$0xff] }
 0x40c   : > { %v2475_v0 = vpop.f32.mrf.mxu3 }
 0x40d   : > { %v2541_v40 = vadd.f32 %v2475_v0, %v2343_v55  ;;  %v2932_v8 = vmax.f32 %v2900_v51, 0.0 }
 0x40f   : > { %v2703_v61 = vadd.f32 %v2637_v44, %v2541_v40  ;;  %3056 = vmatmul.f32.gmra.mxu2 %v2932_v8  ;;  %v6631_v44 = vld [vmem:[#allocation92_spill] sm:$0xff]  ;;  %v2811_v5 = vpop.f32.mrf.mxu1  ;;  %v6635_v40 = vld [vmem:[#allocation95_spill] sm:$0xff] }
 0x410   : > { %v2183_v23 = vadd.f32 %v6631_v44, %v2021_v19 }
 0x411   : > { %v2865_v52 = vadd.f32 %v2799_v43, %v2703_v61  ;;  %v6191_v43 = vpop.f32.mrf.mxu2  ;;  %v2967_v61 = vld [vmem:[%s3578_s20 + $0x8] sm:$0xff] }
 0x412   : > { %v2345_v16 = vadd.f32 %v6000_v28, %v2183_v23  ;;  %v6634_v28 = vld [vmem:[#allocation49_spill] sm:$0xff] }
 0x413   : > { %v2901_v35 = vadd.f32 %v6013_v46, %v2865_v52  ;;  %v2023_v53 = vadd.f32 %v6634_v28, %v5880_v59  ;;  %v6636_v59 = vld [vmem:[#allocation30_spill] sm:$0xff] }
 0x414   : > { %v2478_v17 = vpop.f32.mrf.mxu3  ;;  %v2024_v60 = vadd.f32 %v6637_v41, %v6636_v59 }
 0x415   : > { %v2542_v47 = vadd.f32 %v2478_v17, %v2344_v56  ;;  %v2933_v2 = vmax.f32 %v2901_v35, 0.0  ;;  %v2185_v8 = vadd.f32 %v6635_v40, %v2023_v53  ;;  %v6642_v53 = vld [vmem:[#allocation59_spill] sm:$0xff]  ;;  %v6643_v40 = vld [vmem:[#allocation21_spill] sm:$0xff] }
 0x417   : > { %v2704_v63 = vadd.f32 %v2640_v14, %v2542_v47  ;;  %3059 = vmatmul.f32.gmra.mxu2 %v2933_v2  ;;  %v2652_v14 = vpop.f32.mrf.mxu0  ;;  %v2814_v4 = vpop.f32.mrf.mxu1  ;;  %v2347_v19 = vadd.f32 %v6032_v34, %v2185_v8 }
 0x419   : > { %v2866_v27 = vadd.f32 %v2802_v22, %v2704_v63  ;;  %v6638_v63 = vld [vmem:[#allocation98_spill] sm:$0xff] }
 0x41a   : > { %v2186_v44 = vadd.f32 %v6638_v63, %v2024_v60 }
 0x41b   : > { %v2902_v24 = vadd.f32 %v6013_v46, %v2866_v27 }
 0x41c   : > { %v2481_v48 = vpop.f32.mrf.mxu3 }
 0x41d   : > { %v2543_v36 = vadd.f32 %v2481_v48, %v2345_v16  ;;  %v2934_v42 = vmax.f32 %v2902_v24, 0.0  ;;  %v6640_v16 = vld [vmem:[#allocation56_spill] sm:$0xff]  ;;  %v2348_v48 = vadd.f32 %v6046_v11, %v2186_v44 }
 0x41e   : > { %v2025_v34 = vadd.f32 %v6640_v16, %v6639_v62  ;;  %v6646_v44 = vld [vmem:[#allocation36_spill] sm:$0xff] }
 0x41f   : > { %v2705_v18 = vadd.f32 %v2643_v49, %v2543_v36  ;;  %3062 = vmatmul.f32.gmra.mxu2 %v2934_v42  ;;  %v2346_v49 = vadd.f32 %v6017_v45, %v2184_v25  ;;  %v2655_v21 = vpop.f32.mrf.mxu0  ;;  %v2817_v35 = vpop.f32.mrf.mxu1 }
 0x421   : > { %v2867_v22 = vadd.f32 %v2805_v7, %v2705_v18 }
 0x422   : > { %v3015_v13 = vpop.f32.mrf.mxu2 }
 0x423   : > { %v3016_v20 = vadd.f32 %v3015_v13, %v2966_v54  ;;  %v2903_v10 = vadd.f32 %v6013_v46, %v2867_v22  ;;  %v6641_v54 = vld [vmem:[#allocation101_spill] sm:$0xff]  ;;  %v2969_v22 = vld [vmem:[%s3578_s20 + $0x18] sm:$0xff] }
 0x424   : > { %v2484_v55 = vpop.f32.mrf.mxu3 }
 0x425   : > { %3111 = vst [vmem:[%s6204_s11] sm:$0xff] %v3016_v20  ;;  %v2544_v7 = vadd.f32 %v2484_v55, %v2346_v49  ;;  %v2935_v51 = vmax.f32 %v2903_v10, 0.0  ;;  %v2026_v20 = vadd.f32 %v6642_v53, %v5912_v58 }
 0x427   : > { %v2706_v0 = vadd.f32 %v2646_v15, %v2544_v7  ;;  %3065 = vmatmul.f32.gmra.mxu2 %v2935_v51  ;;  %v2658_v39 = vpop.f32.mrf.mxu0  ;;  %v2820_v33 = vpop.f32.mrf.mxu1  ;;  %v2188_v8 = vadd.f32 %v6643_v40, %v2026_v20  ;;  %v6652_v40 = vld [vmem:[#allocation47_spill] sm:$0xff] }
 0x429   : > { %v2868_v37 = vadd.f32 %v2808_v1, %v2706_v0  ;;  %v2968_v1 = vld [vmem:[%s3578_s20 + $0x10] sm:$0xff]  ;;  %v2350_v41 = vadd.f32 %v6078_v26, %v2188_v8 }
 0x42a   : > { %v3018_v52 = vpop.f32.mrf.mxu2  ;;  %v6653_v8 = vld [vmem:[#allocation71_spill] sm:$0xff] }
 0x42b   : > { %v3019_v45 = vadd.f32 %v3018_v52, %v2967_v61  ;;  %v2904_v56 = vadd.f32 %v6013_v46, %v2868_v37  ;;  %v2970_v61 = vld [vmem:[%s3578_s20 + $0x20] sm:$0xff]  ;;  %v6644_v52 = vld [vmem:[#allocation62_spill] sm:$0xff] }
 0x42c   : > { %v2487_v17 = vpop.f32.mrf.mxu3 }
 0x42d   : > { %3112 = vst [vmem:[%s6204_s11 + $0x8] sm:$0xff] %v3019_v45  ;;  %v2545_v15 = vadd.f32 %v2487_v17, %v2347_v19  ;;  %v2936_v47 = vmax.f32 %v2904_v56, 0.0 }
 0x42f   : > { %v2707_v2 = vadd.f32 %v2649_v32, %v2545_v15  ;;  %3068 = vmatmul.f32.gmra.mxu2 %v2936_v47  ;;  %v2661_v7 = vpop.f32.mrf.mxu0  ;;  %v6645_v15 = vld [vmem:[#allocation14_spill] sm:$0xff] }
 0x431   : > { %v2869_v23 = vadd.f32 %v2811_v5, %v2707_v2  ;;  %v2187_v5 = vadd.f32 %v6641_v54, %v2025_v34  ;;  %v6650_v54 = vld [vmem:[#allocation68_spill] sm:$0xff] }
 0x432   : > { %v3021_v27 = vpop.f32.mrf.mxu2 }
 0x433   : > { %v3022_v24 = vadd.f32 %v3021_v27, %v2968_v1  ;;  %v2905_v36 = vadd.f32 %v6013_v46, %v2869_v23  ;;  %v2349_v49 = vadd.f32 %v6062_v9, %v2187_v5  ;;  %v2027_v9 = vadd.f32 %v6644_v52, %v5922_v31  ;;  %v6647_v1 = vld [vmem:[#allocation65_spill] sm:$0xff] }
 0x434   : > { %v2490_v42 = vpop.f32.mrf.mxu3  ;;  %v2028_v26 = vadd.f32 %v6647_v1, %v6646_v44 }
 0x435   : > { %3113 = vst [vmem:[%s6204_s11 + $0x10] sm:$0xff] %v3022_v24  ;;  %v2546_v32 = vadd.f32 %v2490_v42, %v2348_v48  ;;  %v2937_v18 = vmax.f32 %v2905_v36, 0.0  ;;  %v2189_v47 = vadd.f32 %v6645_v15, %v2027_v9  ;;  %v6648_v48 = vld [vmem:[#allocation25_spill] sm:$0xff]  ;;  %v2972_v42 = vld [vmem:[%s3578_s20 + $0x30] sm:$0xff]  ;;  %v6656_v15 = vld [vmem:[#allocation74_spill] sm:$0xff] }
 0x436   : > { %v2190_v36 = vadd.f32 %v6648_v48, %v2028_v26  ;;  %v6659_v48 = vld [vmem:[#allocation77_spill] sm:$0xff] }
 0x437   : > { %v2708_v25 = vadd.f32 %v2652_v14, %v2546_v32  ;;  %3071 = vmatmul.f32.gmra.mxu2 %v2937_v18  ;;  %v2664_v56 = vpop.f32.mrf.mxu0  ;;  %v2351_v27 = vadd.f32 %v6096_v3, %v2189_v47 }
 0x439   : > { %v2870_v13 = vadd.f32 %v2814_v4, %v2708_v25  ;;  %v2823_v4 = vpop.f32.mrf.mxu1  ;;  %v6649_v25 = vld [vmem:[#allocation37_spill] sm:$0xff] }
 0x43a   : > { %v3024_v28 = vpop.f32.mrf.mxu2  ;;  %v2029_v5 = vadd.f32 %v6650_v54, %v6649_v25 }
 0x43b   : > { %v3025_v11 = vadd.f32 %v3024_v28, %v2969_v22  ;;  %v2906_v10 = vadd.f32 %v6013_v46, %v2870_v13  ;;  %v2352_v22 = vadd.f32 %v6110_v30, %v2190_v36  ;;  %v2030_v30 = vadd.f32 %v6653_v8, %v6652_v40  ;;  %v6663_v8 = vld [vmem:[#allocation41_spill] sm:$0xff] }
 0x43c   : > { %v2493_v55 = vpop.f32.mrf.mxu3 }
 0x43d   : > { %3114 = vst [vmem:[%s6204_s11 + $0x18] sm:$0xff] %v3025_v11  ;;  %v2547_v14 = vadd.f32 %v2493_v55, %v2349_v49  ;;  %v2938_v51 = vmax.f32 %v2906_v10, 0.0  ;;  %v6651_v10 = vld [vmem:[#allocation15_spill] sm:$0xff] }
 0x43e   : > { %v2191_v55 = vadd.f32 %v6651_v10, %v2029_v5 }
 0x43f   : > { %v2709_v0 = vadd.f32 %v2655_v21, %v2547_v14  ;;  %3074 = vmatmul.f32.gmra.mxu2 %v2938_v51  ;;  %v2667_v32 = vpop.f32.mrf.mxu0 }
 0x441   : > { %v2871_v37 = vadd.f32 %v2817_v35, %v2709_v0  ;;  %v2971_v35 = vld [vmem:[%s3578_s20 + $0x28] sm:$0xff]  ;;  %v2826_v63 = vpop.f32.mrf.mxu1 }
 0x442   : > { %v3027_v58 = vpop.f32.mrf.mxu2 }
 0x443   : > { %v3028_v59 = vadd.f32 %v3027_v58, %v2970_v61  ;;  %v2907_v60 = vadd.f32 %v6013_v46, %v2871_v37  ;;  %v2353_v61 = vadd.f32 %v6126_v29, %v2191_v55 }
 0x444   : > { %v2496_v45 = vpop.f32.mrf.mxu3 }
 0x445   : > { %3115 = vst [vmem:[%s6204_s11 + $0x20] sm:$0xff] %v3028_v59  ;;  %v2548_v21 = vadd.f32 %v2496_v45, %v2350_v41  ;;  %v2939_v19 = vmax.f32 %v2907_v60, 0.0  ;;  %v6654_v60 = vld [vmem:[#allocation33_spill] sm:$0xff] }
 0x446   : > { %v2192_v45 = vadd.f32 %v6654_v60, %v2030_v30 }
 0x447   : > { %v2710_v17 = vadd.f32 %v2658_v39, %v2548_v21  ;;  %3077 = vmatmul.f32.gmra.mxu2 %v2939_v19  ;;  %v2670_v0 = vpop.f32.mrf.mxu0  ;;  %v2974_v21 = vld [vmem:[%s3578_s20 + $0x40] sm:$0xff] }
 0x449   : > { %v2872_v2 = vadd.f32 %v2820_v33, %v2710_v17  ;;  %v2829_v28 = vpop.f32.mrf.mxu1  ;;  %v6655_v17 = vld [vmem:[#allocation39_spill] sm:$0xff] }
 0x44a   : > { %v3030_v31 = vpop.f32.mrf.mxu2  ;;  %v2031_v47 = vadd.f32 %v6656_v15, %v6655_v17  ;;  %v6666_v17 = vld [vmem:[#allocation34_spill] sm:$0xff] }
 0x44b   : > { %v3031_v23 = vadd.f32 %v3030_v31, %v2971_v35  ;;  %v2908_v62 = vadd.f32 %v6013_v46, %v2872_v2  ;;  %v2354_v35 = vadd.f32 %v6140_v6, %v2192_v45 }
 0x44c   : > { %v2499_v16 = vpop.f32.mrf.mxu3 }
 0x44d   : > { %3116 = vst [vmem:[%s6204_s11 + $0x28] sm:$0xff] %v3031_v23  ;;  %v2549_v39 = vadd.f32 %v2499_v16, %v2351_v27  ;;  %v2940_v34 = vmax.f32 %v2908_v62, 0.0  ;;  %v6657_v23 = vld [vmem:[#allocation19_spill] sm:$0xff]  ;;  %v2975_v16 = vld [vmem:[%s3578_s20 + $0x48] sm:$0xff] }
 0x44e   : > { %v2193_v27 = vadd.f32 %v6657_v23, %v2031_v47 }
 0x44f   : > { %v2711_v24 = vadd.f32 %v2661_v7, %v2549_v39  ;;  %3080 = vmatmul.f32.gmra.mxu2 %v2940_v34  ;;  %v2973_v7 = vld [vmem:[%s3578_s20 + $0x38] sm:$0xff]  ;;  %v2673_v31 = vpop.f32.mrf.mxu0 }
 0x451   : > { %v2873_v18 = vadd.f32 %v2823_v4, %v2711_v24  ;;  %v2832_v59 = vpop.f32.mrf.mxu1  ;;  %v6658_v24 = vld [vmem:[#allocation51_spill] sm:$0xff] }
 0x452   : > { %v3033_v33 = vpop.f32.mrf.mxu2  ;;  %v2032_v6 = vadd.f32 %v6659_v48, %v6658_v24 }
 0x453   : > { %v3034_v3 = vadd.f32 %v3033_v33, %v2972_v42  ;;  %v2909_v13 = vadd.f32 %v6013_v46, %v2873_v18  ;;  %v2355_v42 = vadd.f32 %v6154_v12, %v2193_v27 }
 0x454   : > { %v2502_v53 = vpop.f32.mrf.mxu3 }
 0x455   : > { %3117 = vst [vmem:[%s6204_s11 + $0x30] sm:$0xff] %v3034_v3  ;;  %v2550_v20 = vadd.f32 %v2502_v53, %v2352_v22  ;;  %v2941_v11 = vmax.f32 %v2909_v13, 0.0  ;;  %v6660_v3 = vld [vmem:[#allocation38_spill] sm:$0xff]  ;;  %v2976_v13 = vld [vmem:[%s3578_s20 + $0x50] sm:$0xff] }
 0x456   : > { %v2194_v22 = vadd.f32 %v6660_v3, %v2032_v6  ;;  %v2979_v6 = vld [vmem:[%s3578_s20 + $0x68] sm:$0xff] }
 0x457   : > { %v2712_v49 = vadd.f32 %v2664_v56, %v2550_v20  ;;  %3083 = vmatmul.f32.gmra.mxu2 %v2941_v11  ;;  %v2676_v54 = vpop.f32.mrf.mxu0  ;;  %v6661_v11 = vld [vmem:[#allocation42_spill] sm:$0xff] }
 0x458   : > { %v2356_v55 = vadd.f32 %v6164_v38, %v2194_v22 }
 0x459   : > { %v2874_v14 = vadd.f32 %v2826_v63, %v2712_v49  ;;  %v2835_v62 = vpop.f32.mrf.mxu1  ;;  %v6662_v49 = vld [vmem:[#allocation80_spill] sm:$0xff] }
 0x45a   : > { %v3036_v51 = vpop.f32.mrf.mxu2  ;;  %v2033_v12 = vadd.f32 %v6662_v49, %v6661_v11  ;;  %v2981_v49 = vld [vmem:[%s3578_s20 + $0x78] sm:$0xff] }
 0x45b   : > { %v3037_v4 = vadd.f32 %v3036_v51, %v2973_v7  ;;  %v2910_v37 = vadd.f32 %v6013_v46, %v2874_v14 }
 0x45c   : > { %v2505_v58 = vpop.f32.mrf.mxu3  ;;  %v2195_v30 = vadd.f32 %v6663_v8, %v2033_v12 }
 0x45d   : > { %3118 = vst [vmem:[%s6204_s11 + $0x38] sm:$0xff] %v3037_v4  ;;  %v2551_v52 = vadd.f32 %v2505_v58, %v2353_v61  ;;  %v2942_v9 = vmax.f32 %v2910_v37, 0.0  ;;  %v2977_v4 = vld [vmem:[%s3578_s20 + $0x58] sm:$0xff] }
 0x45f   : > { %v2713_v41 = vadd.f32 %v2667_v32, %v2551_v52  ;;  %3086 = vmatmul.f32.gmra.mxu2 %v2942_v9  ;;  %v2679_v61 = vpop.f32.mrf.mxu0  ;;  %v6664_v52 = vld [vmem:[#allocation54_spill] sm:$0xff]  ;;  %v6665_v9 = vld [vmem:[#allocation83_spill] sm:$0xff] }
 0x461   : > { %v2875_v19 = vadd.f32 %v2829_v28, %v2713_v41  ;;  %v2838_v53 = vpop.f32.mrf.mxu1  ;;  %v2357_v41 = vadd.f32 %v6176_v50, %v2195_v30  ;;  %v6667_v50 = vld [vmem:[#allocation45_spill] sm:$0xff] }
 0x462   : > { %v3039_v56 = vpop.f32.mrf.mxu2 }
 0x463   : > { %v3040_v29 = vadd.f32 %v3039_v56, %v2974_v21  ;;  %v2911_v2 = vadd.f32 %v6013_v46, %v2875_v19 }
 0x464   : > { %v2508_v63 = vpop.f32.mrf.mxu3 }
 0x465   : > { %3119 = vst [vmem:[%s6204_s11 + $0x40] sm:$0xff] %v3040_v29  ;;  %v2552_v44 = vadd.f32 %v2508_v63, %v2354_v35  ;;  %v2943_v1 = vmax.f32 %v2911_v2, 0.0  ;;  %v2978_v29 = vld [vmem:[%s3578_s20 + $0x60] sm:$0xff] }
 0x467   : > { %v2714_v26 = vadd.f32 %v2670_v0, %v2552_v44  ;;  %3089 = vmatmul.f32.gmra.mxu2 %v2943_v1  ;;  %v2682_v63 = vpop.f32.mrf.mxu0  ;;  %v6668_v44 = vld [vmem:[#allocation85_spill] sm:$0xff] }
 0x468   : > { %v2035_v1 = vadd.f32 %v6668_v44, %v6667_v50 }
 0x469   : > { %v2876_v39 = vadd.f32 %v2832_v59, %v2714_v26  ;;  %v2034_v59 = vadd.f32 %v6665_v9, %v6664_v52  ;;  %v2841_v45 = vpop.f32.mrf.mxu1 }
 0x46a   : > { %v3042_v34 = vpop.f32.mrf.mxu2 }
 0x46b   : > { %v3043_v36 = vadd.f32 %v3042_v34, %v2975_v16  ;;  %v2912_v32 = vadd.f32 %v6013_v46, %v2876_v39  ;;  %v2196_v15 = vadd.f32 %v6666_v17, %v2034_v59  ;;  %v6669_v34 = vld [vmem:[#allocation44_spill] sm:$0xff]  ;;  %v2987_v59 = vld [vmem:[%s3578_s20 + $0xa8] sm:$0xff] }
 0x46c   : > { %v2511_v18 = vpop.f32.mrf.mxu3  ;;  %v2197_v24 = vadd.f32 %v6669_v34, %v2035_v1  ;;  %v2993_v1 = vld [vmem:[%s3578_s20 + $0xd8] sm:$0xff] }
 0x46d   : > { %3120 = vst [vmem:[%s6204_s11 + $0x48] sm:$0xff] %v3043_v36  ;;  %v2553_v33 = vadd.f32 %v2511_v18, %v2355_v42  ;;  %v2944_v25 = vmax.f32 %v2912_v32, 0.0 }
 0x46e   : > { %v2359_v42 = vadd.f32 %v6191_v43, %v2197_v24 }
 0x46f   : > { %v2715_v5 = vadd.f32 %v2673_v31, %v2553_v33  ;;  %3092 = vmatmul.f32.gmra.mxu2 %v2944_v25  ;;  %v2358_v31 = vadd.f32 %v6184_v57, %v2196_v15  ;;  %v2990_v15 = vld [vmem:[%s3578_s20 + $0xc0] sm:$0xff] }
 0x471   : > { %v2877_v28 = vadd.f32 %v2835_v62, %v2715_v5  ;;  %v2844_v62 = vpop.f32.mrf.mxu1  ;;  %v2685_v5 = vpop.f32.mrf.mxu0 }
 0x472   : > { %v3045_v20 = vpop.f32.mrf.mxu2 }
 0x473   : > { %v3046_v10 = vadd.f32 %v3045_v20, %v2976_v13  ;;  %v2913_v7 = vadd.f32 %v6013_v46, %v2877_v28  ;;  %v2980_v13 = vld [vmem:[%s3578_s20 + $0x70] sm:$0xff] }
 0x474   : > { %v2514_v14 = vpop.f32.mrf.mxu3 }
 0x475   : > { %3121 = vst [vmem:[%s6204_s11 + $0x50] sm:$0xff] %v3046_v10  ;;  %v2554_v51 = vadd.f32 %v2514_v14, %v2356_v55  ;;  %v2945_v0 = vmax.f32 %v2913_v7, 0.0  ;;  %v2982_v55 = vld [vmem:[%s3578_s20 + $0x80] sm:$0xff] }
 0x477   : > { %v2716_v40 = vadd.f32 %v2676_v54, %v2554_v51  ;;  %3095 = vmatmul.f32.gmra.mxu2 %v2945_v0 }
 0x479   : > { %v2878_v37 = vadd.f32 %v2838_v53, %v2716_v40  ;;  %v2847_v3 = vpop.f32.mrf.mxu1  ;;  %v2984_v40 = vld [vmem:[%s3578_s20 + $0x90] sm:$0xff] }
 0x47a   : > { %v3048_v58 = vpop.f32.mrf.mxu2 }
 0x47b   : > { %v3049_v38 = vadd.f32 %v3048_v58, %v2977_v4  ;;  %v2914_v60 = vadd.f32 %v6013_v46, %v2878_v37  ;;  %v2985_v4 = vld [vmem:[%s3578_s20 + $0x98] sm:$0xff]  ;;  %v2986_v58 = vld [vmem:[%s3578_s20 + $0xa0] sm:$0xff] }
 0x47c   : > { %v2517_v21 = vpop.f32.mrf.mxu3 }
 0x47d   : > { %3122 = vst [vmem:[%s6204_s11 + $0x58] sm:$0xff] %v3049_v38  ;;  %v2555_v19 = vadd.f32 %v2517_v21, %v2357_v41  ;;  %v2946_v56 = vmax.f32 %v2914_v60, 0.0  ;;  %v2988_v60 = vld [vmem:[%s3578_s20 + $0xb0] sm:$0xff] }
 0x47f   : > { %v2717_v47 = vadd.f32 %v2679_v61, %v2555_v19  ;;  %3098 = vmatmul.f32.gmra.mxu2 %v2946_v56  ;;  %v2989_v19 = vld [vmem:[%s3578_s20 + $0xb8] sm:$0xff] }
 0x481   : > { %v2879_v35 = vadd.f32 %v2841_v45, %v2717_v47 }
 0x482   : > { %v3051_v2 = vpop.f32.mrf.mxu2 }
 0x483   : > { %v3052_v26 = vadd.f32 %v3051_v2, %v2978_v29  ;;  %v2915_v23 = vadd.f32 %v6013_v46, %v2879_v35  ;;  %v2991_v35 = vld [vmem:[%s3578_s20 + $0xc8] sm:$0xff] }
 0x484   : > { %v2520_v27 = vpop.f32.mrf.mxu3 }
 0x485   : > { %3123 = vst [vmem:[%s6204_s11 + $0x60] sm:$0xff] %v3052_v26  ;;  %v2556_v16 = vadd.f32 %v2520_v27, %v2358_v31  ;;  %v2947_v39 = vmax.f32 %v2915_v23, 0.0  ;;  %v2992_v31 = vld [vmem:[%s3578_s20 + $0xd0] sm:$0xff]  ;;  %v2994_v27 = vld [vmem:[%s3578_s20 + $0xe0] sm:$0xff] }
 0x487   : > { %3101 = vmatmul.f32.gmra.mxu2 %v2947_v39  ;;  %v2718_v48 = vadd.f32 %v2682_v63, %v2556_v16  ;;  %v2995_v39 = vld [vmem:[%s3578_s20 + $0xe8] sm:$0xff] }
 0x489   : > { %v2880_v36 = vadd.f32 %v2844_v62, %v2718_v48  ;;  %v2996_v48 = vld [vmem:[%s3578_s20 + $0xf0] sm:$0xff] }
 0x48a   : > { %v3054_v57 = vpop.f32.mrf.mxu2 }
 0x48b   : > { %v2916_v32 = vadd.f32 %v6013_v46, %v2880_v36  ;;  %v3055_v18 = vadd.f32 %v3054_v57, %v2979_v6  ;;  %v2997_v57 = vld [vmem:[%s3578_s20 + $0xf8] sm:$0xff] }
 0x48c   : > { %v2523_v33 = vpop.f32.mrf.mxu3 }
 0x48d   : > { %v2948_v25 = vmax.f32 %v2916_v32, 0.0  ;;  %3124 = vst [vmem:[%s6204_s11 + $0x68] sm:$0xff] %v3055_v18  ;;  %v2557_v54 = vadd.f32 %v2523_v33, %v2359_v42 }
 0x48f   : > { %3104 = vmatmul.f32.gmra.mxu2 %v2948_v25  ;;  %v2719_v22 = vadd.f32 %v2685_v5, %v2557_v54 }
 0x491   : > { %v2881_v28 = vadd.f32 %v2847_v3, %v2719_v22 }
 0x492   : > { %v3057_v43 = vpop.f32.mrf.mxu2 }
 0x493   : > { %v2917_v53 = vadd.f32 %v6013_v46, %v2881_v28  ;;  %v3058_v20 = vadd.f32 %v3057_v43, %v2980_v13  ;;  %v2983_v46 = vld [vmem:[%s3578_s20 + $0x88] sm:$0xff] }
 0x495   : > { %v2949_v11 = vmax.f32 %v2917_v53, 0.0  ;;  %3125 = vst [vmem:[%s6204_s11 + $0x70] sm:$0xff] %v3058_v20 }
 0x497   : > { %3107 = vmatmul.f32.gmra.mxu2 %v2949_v11 }
 0x49a   : > { %v3060_v12 = vpop.f32.mrf.mxu2 }
 0x49b   : > { %v3061_v10 = vadd.f32 %v3060_v12, %v2981_v49 }
 0x49d   : > { %3126 = vst [vmem:[%s6204_s11 + $0x78] sm:$0xff] %v3061_v10 }
 0x4a2   : > { %v3063_v7 = vpop.f32.mrf.mxu2 }
 0x4a3   : > { %v3064_v14 = vadd.f32 %v3063_v7, %v2982_v55 }
 0x4a5   : > { %3127 = vst [vmem:[%s6204_s11 + $0x80] sm:$0xff] %v3064_v14 }
 0x4aa   : > { %v3066_v51 = vpop.f32.mrf.mxu2 }
 0x4ab   : > { %v3067_v0 = vadd.f32 %v3066_v51, %v2983_v46 }
 0x4ad   : > { %3128 = vst [vmem:[%s6204_s11 + $0x88] sm:$0xff] %v3067_v0 }
 0x4b2   : > { %v3069_v8 = vpop.f32.mrf.mxu2 }
 0x4b3   : > { %v3070_v30 = vadd.f32 %v3069_v8, %v2984_v40 }
 0x4b5   : > { %3129 = vst [vmem:[%s6204_s11 + $0x90] sm:$0xff] %v3070_v30 }
 0x4ba   : > { %v3072_v61 = vpop.f32.mrf.mxu2 }
 0x4bb   : > { %v3073_v37 = vadd.f32 %v3072_v61, %v2985_v4 }
 0x4bd   : > { %3130 = vst [vmem:[%s6204_s11 + $0x98] sm:$0xff] %v3073_v37 }
 0x4c2   : > { %v3075_v52 = vpop.f32.mrf.mxu2 }
 0x4c3   : > { %v3076_v9 = vadd.f32 %v3075_v52, %v2986_v58 }
 0x4c5   : > { %3131 = vst [vmem:[%s6204_s11 + $0xa0] sm:$0xff] %v3076_v9 }
 0x4ca   : > { %v3078_v38 = vpop.f32.mrf.mxu2 }
 0x4cb   : > { %v3079_v41 = vadd.f32 %v3078_v38, %v2987_v59 }
 0x4cd   : > { %3132 = vst [vmem:[%s6204_s11 + $0xa8] sm:$0xff] %v3079_v41 }
 0x4d2   : > { %v3081_v45 = vpop.f32.mrf.mxu2 }
 0x4d3   : > { %v3082_v21 = vadd.f32 %v3081_v45, %v2988_v60 }
 0x4d5   : > { %3133 = vst [vmem:[%s6204_s11 + $0xb0] sm:$0xff] %v3082_v21 }
 0x4da   : > { %v3084_v56 = vpop.f32.mrf.mxu2 }
 0x4db   : > { %v3085_v17 = vadd.f32 %v3084_v56, %v2989_v19 }
 0x4dd   : > { %3134 = vst [vmem:[%s6204_s11 + $0xb8] sm:$0xff] %v3085_v17 }
 0x4e2   : > { %v3087_v47 = vpop.f32.mrf.mxu2 }
 0x4e3   : > { %v3088_v29 = vadd.f32 %v3087_v47, %v2990_v15 }
 0x4e5   : > { %3135 = vst [vmem:[%s6204_s11 + $0xc0] sm:$0xff] %v3088_v29 }
 0x4ea   : > { %v3090_v2 = vpop.f32.mrf.mxu2 }
 0x4eb   : > { %v3091_v63 = vadd.f32 %v3090_v2, %v2991_v35 }
 0x4ed   : > { %3136 = vst [vmem:[%s6204_s11 + $0xc8] sm:$0xff] %v3091_v63 }
 0x4f2   : > { %v3093_v50 = vpop.f32.mrf.mxu2 }
 0x4f3   : > { %v3094_v44 = vadd.f32 %v3093_v50, %v2992_v31 }
 0x4f5   : > { %3137 = vst [vmem:[%s6204_s11 + $0xd0] sm:$0xff] %v3094_v44 }
 0x4fa   : > { %v3096_v26 = vpop.f32.mrf.mxu2 }
 0x4fb   : > { %v3097_v23 = vadd.f32 %v3096_v26, %v2993_v1 }
 0x4fd   : > { %3138 = vst [vmem:[%s6204_s11 + $0xd8] sm:$0xff] %v3097_v23 }
 0x502   : > { %v3099_v62 = vpop.f32.mrf.mxu2 }
 0x503   : > { %v3100_v16 = vadd.f32 %v3099_v62, %v2994_v27 }
 0x505   : > { %3139 = vst [vmem:[%s6204_s11 + $0xe0] sm:$0xff] %v3100_v16 }
 0x50a   : > { %v3102_v34 = vpop.f32.mrf.mxu2 }
 0x50b   : > { %v3103_v24 = vadd.f32 %v3102_v34, %v2995_v39 }
 0x50d   : > { %3140 = vst [vmem:[%s6204_s11 + $0xe8] sm:$0xff] %v3103_v24 }
 0x512   : > { %v3105_v6 = vpop.f32.mrf.mxu2 }
 0x513   : > { %v3106_v36 = vadd.f32 %v3105_v6, %v2996_v48 }
 0x515   : > { %3141 = vst [vmem:[%s6204_s11 + $0xf0] sm:$0xff] %v3106_v36 }
 0x51a   : > { %v3108_v42 = vpop.f32.mrf.mxu2 }
 0x51b   : > { %v3109_v32 = vadd.f32 %v3108_v42, %v2997_v57 }
 0x51d   : > { %3142 = vst [vmem:[%s6204_s11 + $0xf8] sm:$0xff] %v3109_v32 }
 0x51e PF: > { %s18_s27 = sadd.s32 1, %s3465_s27  }
 0x51f   : > { %p15_p4 = scmp.ge.s32.totalorder %s18_s27, 4  }
 0x521   :  { %17 = sbr.rel (!%p15_p4) target bundleno = 1 (0x1), region = 92 }

</bundles_post_ra>
